<compile_context>
chip_gen: v7x
topology: tpu7x:2x2x1
jax: 0.10.0
libtpu: 0.0.40
codegen_flags: <defaults>
</compile_context>

<pallas_src>
import functools
import math

import jax
import jax.numpy as jnp
from jax.experimental import pallas as pl
from jax.experimental.pallas import tpu as pltpu


# --------------------------------------------------------------------------- utils
def _zeros_index_map(ndim):
    return lambda i: (0,) * ndim


def _sigmoid(x):
    # explicit form (exp + div) to stay on well-supported Mosaic lowerings
    return 1.0 / (1.0 + jnp.exp(-x))


def _gru_cell(gi, h, whh_t, bhh, H):
    # PyTorch GRU, gate order (r, z, n); b_hn stays inside the r * (.) term.
    gh = jnp.dot(h, whh_t, preferred_element_type=jnp.float32) + bhh
    i_r, i_z, i_n = gi[:, 0:H], gi[:, H:2 * H], gi[:, 2 * H:3 * H]
    h_r, h_z, h_n = gh[:, 0:H], gh[:, H:2 * H], gh[:, 2 * H:3 * H]
    r = _sigmoid(i_r + h_r)
    z = _sigmoid(i_z + h_z)
    n = jnp.tanh(i_n + r * h_n)
    return (1.0 - z) * n + z * h


# ----------------------------------------------------------------- fused kernel
def _fused_kernel(N, T, H,
                  cols_ref, wconv_ref, bconv_ref,
                  wif_ref, bif_ref, wib_ref, bib_ref,
                  whf_ref, bhf_ref, whb_ref, bhb_ref,
                  fc1w_ref, fc1b_ref, fcw_ref, fcb_ref,
                  m_ref, law_ref, lab_ref, lbw_ref, lbb_ref, gs_ref, gt_ref,
                  l1w_ref, l1b_ref, l2w_ref, l2b_ref,
                  s1_ref, s2_ref, f2w_ref, f2b_ref,
                  o_ref):
    f32 = jnp.float32

    # ---- conv1d (+ folded BN1) + maxpool(3, 3): one matmul per pool phase ----
    wconv = wconv_ref[...]
    y0 = jnp.dot(cols_ref[0], wconv, preferred_element_type=f32)
    y1 = jnp.dot(cols_ref[1], wconv, preferred_element_type=f32)
    y2 = jnp.dot(cols_ref[2], wconv, preferred_element_type=f32)
    pooled = jnp.maximum(jnp.maximum(y0, y1), y2) + bconv_ref[...]   # (T*N, H)

    # ---- biGRU input projections for ALL timesteps in one matmul/direction ----
    gates_f = jnp.dot(pooled, wif_ref[...], preferred_element_type=f32) + bif_ref[...]
    gates_b = jnp.dot(pooled, wib_ref[...], preferred_element_type=f32) + bib_ref[...]

    whf = whf_ref[...]
    bhf = bhf_ref[...]
    whb = whb_ref[...]
    bhb = bhb_ref[...]

    # ---- recurrence: T is small & static -> fully unrolled straight-line code
    # rows of gates_* are time-major: row t*N + n  ==  (timestep t, node n)
    sums = [None] * T                        # per-timestep feature sums (N, 1)
    h_f = jnp.zeros((N, H), f32)
    for t in range(T):
        gi = gates_f[t * N:(t + 1) * N, :]
        h_f = _gru_cell(gi, h_f, whf, bhf, H)
        sums[t] = jnp.sum(h_f, axis=1, keepdims=True)
    h_b = jnp.zeros((N, H), f32)
    for s in range(T):
        t = T - 1 - s                        # backward direction, output at t
        gi = gates_b[t * N:(t + 1) * N, :]
        h_b = _gru_cell(gi, h_b, whb, bhb, H)
        sums[t] = sums[t] + jnp.sum(h_b, axis=1, keepdims=True)

    # ---- AdaptiveAvgPool1d(1) over the 2H GRU features + squeeze -> (N, T) ----
    pooled_nt = jnp.concatenate(sums, axis=1) * (1.0 / (2.0 * H))

    # ---- fc1 -> fc ----
    h1 = jnp.dot(pooled_nt, fc1w_ref[...], preferred_element_type=f32) + fc1b_ref[...]
    x256 = jnp.dot(h1, fcw_ref[...], preferred_element_type=f32) + fcb_ref[...]

    # ---- GINConv: nn((1+eps)*x_i + sum_j x_j); aggregation reassociated ----
    xa = jnp.dot(x256, law_ref[...], preferred_element_type=f32)             # (N, hidden)
    h1g = jnp.maximum(
        jnp.dot(m_ref[...], xa, preferred_element_type=f32) + lab_ref[...], 0.0)
    h2g = jnp.maximum(
        jnp.dot(h1g, lbw_ref[...], preferred_element_type=f32) + lbb_ref[...], 0.0)
    hg = h2g * gs_ref[...] + gt_ref[...]                                     # folded BN

    # ---- relu(lin1) -> dropout(identity, eval) -> lin2 ----
    hl = jnp.maximum(
        jnp.dot(hg, l1w_ref[...], preferred_element_type=f32) + l1b_ref[...], 0.0)
    hl = jnp.dot(hl, l2w_ref[...], preferred_element_type=f32) + l2b_ref[...]

    # ---- edge readout: gather via one-hot matmuls, feature fusion = mul, fc2 ----
    x1 = jnp.dot(s1_ref[...], hl, preferred_element_type=f32)
    x2 = jnp.dot(s2_ref[...], hl, preferred_element_type=f32)
    fused = x1 * x2
    o_ref[...] = jnp.dot(fused, f2w_ref[...], preferred_element_type=f32) + f2b_ref[...]


# --------------------------------------------------------------------- forward
def gin_net2_forward(params, x, edge_index, train_edge_id, bn_eps=1e-5):
    p = params
    f32 = jnp.float32
    N, L, Cin = x.shape
    Cout = p['conv_w'].shape[0]                 # cnn_hidden
    K = p['conv_w'].shape[2]
    Lout = L - K + 1
    T = Lout // 3                               # == floor(in_len / pool_size) here
    H = Cout
    hidden = p['gin_la_w'].shape[0]
    class_num = p['fc2_w'].shape[0]
    LANES = 128
    Cpad = max(LANES, class_num)                # lane-dense final output slab

    # ---- fold BN1 into conv weight/bias (scale folds inside the max, shift after)
    s1 = p['bn1_gamma'] / jnp.sqrt(p['bn1_var'] + bn_eps)
    t1 = p['bn1_beta'] - p['bn1_mean'] * s1
    w_conv = (jnp.transpose(p['conv_w'], (2, 1, 0)) * s1[None, None, :]
              ).reshape(K * Cin, Cout)                                   # (K*Cin, Cout)
    b_conv = (p['conv_b'] * s1 + t1)[None, :]                            # (1, Cout)

    # ---- im2col grouped by maxpool phase (wrapper layout plumbing, tiny arrays)
    # cols[r, t*N + n, k*Cin + c] = x[n, 3*t + r + k, c]
    phases = []
    for r in range(3):
        ks = [x[:, r + k: r + k + 3 * (T - 1) + 1: 3, :] for k in range(K)]
        phases.append(jnp.concatenate(ks, axis=-1))                      # (N, T, K*Cin)
    cols = jnp.stack(phases, axis=0)                                     # (3, N, T, K*Cin)
    cols = jnp.transpose(cols, (0, 2, 1, 3)).reshape(3, T * N, K * Cin)

    # ---- GRU params (PyTorch layout -> x @ W.T form, biases pre-broadcast)
    wif = p['gru_w_ih_f'].T
    bif = p['gru_b_ih_f'][None, :]
    wib = p['gru_w_ih_b'].T
    bib = p['gru_b_ih_b'][None, :]
    whf = p['gru_w_hh_f'].T
    bhf = p['gru_b_hh_f'][None, :]
    whb = p['gru_w_hh_b'].T
    bhb = p['gru_b_hh_b'][None, :]

    # ---- head / GIN / lin / fc2 params
    fc1w = p['fc1_w'].T
    fc1b = p['fc1_b'][None, :]
    fcw = p['fc_w'].T
    fcb = p['fc_b'][None, :]

    src, dst = edge_index[0], edge_index[1]
    A = jnp.zeros((N, N), f32).at[dst, src].add(1.0)
    M = A + (1.0 + p['gin_eps']) * jnp.eye(N, dtype=f32)

    sg = p['gin_bn_gamma'] / jnp.sqrt(p['gin_bn_var'] + bn_eps)
    tg = p['gin_bn_beta'] - p['gin_bn_mean'] * sg
    law = p['gin_la_w'].T
    lab = p['gin_la_b'][None, :]
    lbw = p['gin_lb_w'].T
    lbb = p['gin_lb_b'][None, :]
    l1w = p['lin1_w'].T
    l1b = p['lin1_b'][None, :]
    l2w = p['lin2_w'].T
    l2b = p['lin2_b'][None, :]

    # edge gather as one-hot matmuls (keeps the gather inside the fused kernel)
    node_id = edge_index[:, train_edge_id]
    E = node_id.shape[1]
    S1 = jax.nn.one_hot(node_id[0], N, dtype=f32)
    S2 = jax.nn.one_hot(node_id[1], N, dtype=f32)

    # lane-dense final store: pad fc2 to 128 lanes, slice after the call
    f2w = jnp.zeros((hidden, Cpad), f32).at[:, :class_num].set(p['fc2_w'].T)
    f2b = jnp.zeros((1, Cpad), f32).at[:, :class_num].set(p['fc2_b'][None, :])

    args = (cols, w_conv, b_conv,
            wif, bif, wib, bib,
            whf, bhf, whb, bhb,
            fc1w, fc1b, fcw, fcb,
            M, law, lab, lbw, lbb, sg[None, :], tg[None, :],
            l1w, l1b, l2w, l2b,
            S1, S2, f2w, f2b)
    args = tuple(a.astype(f32) for a in args)

    kernel = functools.partial(_fused_kernel, N, T, H)
    in_specs = [pl.BlockSpec(a.shape, _zeros_index_map(a.ndim)) for a in args]

    out = pl.pallas_call(
        kernel,
        grid=(1,),
        in_specs=in_specs,
        out_specs=pl.BlockSpec((E, Cpad), lambda i: (0, 0)),
        out_shape=jax.ShapeDtypeStruct((E, Cpad), f32),
        compiler_params=pltpu.CompilerParams(dimension_semantics=("arbitrary",)),
    )(*args)
    return out[:, :class_num]


# --------------------------------------------------------------------------- main
if __name__ == "__main__":
    # small shapes consistent with the module (in_len chosen so that
    # floor((in_len-2)/3) == floor(in_len/3), like the default 2000/3 case)
    in_len, in_feature = 32, 8
    cnn_hidden = 4
    pool_size = 3
    gin_in_feature = 256          # must be 256 (fc is hard-coded Linear(256, 256))
    hidden = 64
    class_num = 7
    n_nodes, n_edges, n_train_edges = 8, 16, 6

    Lp = math.floor(in_len / pool_size)
    assert (in_len - 2) // pool_size == Lp, "fc1 input size mismatch"

    key = jax.random.PRNGKey(0)
    keys = iter(jax.random.split(key, 40))

    def rnd(shape, scale=0.1):
        return (scale * jax.random.normal(next(keys), shape)).astype(jnp.float32)

    H = cnn_hidden
    params = {
        'conv_w': rnd((cnn_hidden, in_feature, 3)),
        'conv_b': rnd((cnn_hidden,)),
        'bn1_gamma': jnp.ones((cnn_hidden,), jnp.float32) + rnd((cnn_hidden,)),
        'bn1_beta': rnd((cnn_hidden,)),
        'bn1_mean': jnp.zeros((cnn_hidden,), jnp.float32),
        'bn1_var': jnp.ones((cnn_hidden,), jnp.float32),
        'gru_w_ih_f': rnd((3 * H, H)), 'gru_w_hh_f': rnd((3 * H, H)),
        'gru_b_ih_f': rnd((3 * H,)),   'gru_b_hh_f': rnd((3 * H,)),
        'gru_w_ih_b': rnd((3 * H, H)), 'gru_w_hh_b': rnd((3 * H, H)),
        'gru_b_ih_b': rnd((3 * H,)),   'gru_b_hh_b': rnd((3 * H,)),
        'fc1_w': rnd((gin_in_feature, Lp)),
        'fc1_b': rnd((gin_in_feature,)),
        'fc_w': rnd((256, 256)),
        'fc_b': rnd((256,)),
        'gin_eps': jnp.float32(0.0),                     # train_eps=True, init 0
        'gin_la_w': rnd((hidden, gin_in_feature)),
        'gin_la_b': rnd((hidden,)),
        'gin_lb_w': rnd((hidden, hidden)),
        'gin_lb_b': rnd((hidden,)),
        'gin_bn_gamma': jnp.ones((hidden,), jnp.float32) + rnd((hidden,)),
        'gin_bn_beta': rnd((hidden,)),
        'gin_bn_mean': jnp.zeros((hidden,), jnp.float32),
        'gin_bn_var': jnp.ones((hidden,), jnp.float32),
        'lin1_w': rnd((hidden, hidden)), 'lin1_b': rnd((hidden,)),
        'lin2_w': rnd((hidden, hidden)), 'lin2_b': rnd((hidden,)),
        'fc2_w': rnd((class_num, hidden)), 'fc2_b': rnd((class_num,)),
    }

    x = jax.random.normal(next(keys), (n_nodes, in_len, in_feature), jnp.float32)
    edge_index = jax.random.randint(next(keys), (2, n_edges), 0, n_nodes)
    train_edge_id = jnp.arange(n_train_edges, dtype=jnp.int32)

    fwd = jax.jit(gin_net2_forward)
    out = fwd(params, x, edge_index, train_edge_id)
    out = jax.block_until_ready(out)
    assert out.shape == (n_train_edges, class_num)
    assert bool(jnp.all(jnp.isfinite(out)))
    print("KERNEL_OK")
</pallas_src>

<mosaic_0001>
module attributes {stable_mosaic.version = 11 : i64} {
  func.func private @main(%arg0: i32) attributes {dimension_semantics = [#tpu.dimension_semantics<core_parallel>], iteration_bounds = array<i64: 2>, tpu.core_type = #tpu.core_type<sc_scalar_subcore>, window_params = []} {
    return
  }
}

module attributes {stable_mosaic.version = 11 : i64} {
  func.func private @main(%arg0: i32) attributes {dimension_semantics = [#tpu.dimension_semantics<core_parallel>], iteration_bounds = array<i64: 2>, tpu.core_type = #tpu.core_type<sc_scalar_subcore>, window_params = []} {
    return
  }
}

module attributes {stable_mosaic.version = 11 : i64} {
  func.func @_fused_kernel(%arg0: i32, %arg1: memref<3x80x24xf32, #tpu.memory_space<vmem>>, %arg2: memref<24x4xf32, #tpu.memory_space<vmem>>, %arg3: memref<1x4xf32, #tpu.memory_space<vmem>>, %arg4: memref<4x12xf32, #tpu.memory_space<vmem>>, %arg5: memref<1x12xf32, #tpu.memory_space<vmem>>, %arg6: memref<4x12xf32, #tpu.memory_space<vmem>>, %arg7: memref<1x12xf32, #tpu.memory_space<vmem>>, %arg8: memref<4x12xf32, #tpu.memory_space<vmem>>, %arg9: memref<1x12xf32, #tpu.memory_space<vmem>>, %arg10: memref<4x12xf32, #tpu.memory_space<vmem>>, %arg11: memref<1x12xf32, #tpu.memory_space<vmem>>, %arg12: memref<10x256xf32, #tpu.memory_space<vmem>>, %arg13: memref<1x256xf32, #tpu.memory_space<vmem>>, %arg14: memref<256x256xf32, #tpu.memory_space<vmem>>, %arg15: memref<1x256xf32, #tpu.memory_space<vmem>>, %arg16: memref<8x8xf32, #tpu.memory_space<vmem>>, %arg17: memref<256x64xf32, #tpu.memory_space<vmem>>, %arg18: memref<1x64xf32, #tpu.memory_space<vmem>>, %arg19: memref<64x64xf32, #tpu.memory_space<vmem>>, %arg20: memref<1x64xf32, #tpu.memory_space<vmem>>, %arg21: memref<1x64xf32, #tpu.memory_space<vmem>>, %arg22: memref<1x64xf32, #tpu.memory_space<vmem>>, %arg23: memref<64x64xf32, #tpu.memory_space<vmem>>, %arg24: memref<1x64xf32, #tpu.memory_space<vmem>>, %arg25: memref<64x64xf32, #tpu.memory_space<vmem>>, %arg26: memref<1x64xf32, #tpu.memory_space<vmem>>, %arg27: memref<6x8xf32, #tpu.memory_space<vmem>>, %arg28: memref<6x8xf32, #tpu.memory_space<vmem>>, %arg29: memref<64x128xf32, #tpu.memory_space<vmem>>, %arg30: memref<1x128xf32, #tpu.memory_space<vmem>>, %arg31: memref<6x128xf32, #tpu.memory_space<vmem>>) attributes {dimension_semantics = [#tpu.dimension_semantics<arbitrary>], iteration_bounds = array<i64: 1>, scalar_prefetch = 0 : i64, scratch_operands = 0 : i64, tpu.core_type = #tpu.core_type<tc>, window_params = [{pipeline_mode = #tpu.pipeline_mode<synchronous>, transform_indices = @transform_0, window_bounds = array<i64: 3, 80, 24>}, {pipeline_mode = #tpu.pipeline_mode<synchronous>, transform_indices = @transform_1, window_bounds = array<i64: 24, 4>}, {pipeline_mode = #tpu.pipeline_mode<synchronous>, transform_indices = @transform_2, window_bounds = array<i64: 1, 4>}, {pipeline_mode = #tpu.pipeline_mode<synchronous>, transform_indices = @transform_3, window_bounds = array<i64: 4, 12>}, {pipeline_mode = #tpu.pipeline_mode<synchronous>, transform_indices = @transform_4, window_bounds = array<i64: 1, 12>}, {pipeline_mode = #tpu.pipeline_mode<synchronous>, transform_indices = @transform_5, window_bounds = array<i64: 4, 12>}, {pipeline_mode = #tpu.pipeline_mode<synchronous>, transform_indices = @transform_6, window_bounds = array<i64: 1, 12>}, {pipeline_mode = #tpu.pipeline_mode<synchronous>, transform_indices = @transform_7, window_bounds = array<i64: 4, 12>}, {pipeline_mode = #tpu.pipeline_mode<synchronous>, transform_indices = @transform_8, window_bounds = array<i64: 1, 12>}, {pipeline_mode = #tpu.pipeline_mode<synchronous>, transform_indices = @transform_9, window_bounds = array<i64: 4, 12>}, {pipeline_mode = #tpu.pipeline_mode<synchronous>, transform_indices = @transform_10, window_bounds = array<i64: 1, 12>}, {pipeline_mode = #tpu.pipeline_mode<synchronous>, transform_indices = @transform_11, window_bounds = array<i64: 10, 256>}, {pipeline_mode = #tpu.pipeline_mode<synchronous>, transform_indices = @transform_12, window_bounds = array<i64: 1, 256>}, {pipeline_mode = #tpu.pipeline_mode<synchronous>, transform_indices = @transform_13, window_bounds = array<i64: 256, 256>}, {pipeline_mode = #tpu.pipeline_mode<synchronous>, transform_indices = @transform_14, window_bounds = array<i64: 1, 256>}, {pipeline_mode = #tpu.pipeline_mode<synchronous>, transform_indices = @transform_15, window_bounds = array<i64: 8, 8>}, {pipeline_mode = #tpu.pipeline_mode<synchronous>, transform_indices = @transform_16, window_bounds = array<i64: 256, 64>}, {pipeline_mode = #tpu.pipeline_mode<synchronous>, transform_indices = @transform_17, window_bounds = array<i64: 1, 64>}, {pipeline_mode = #tpu.pipeline_mode<synchronous>, transform_indices = @transform_18, window_bounds = array<i64: 64, 64>}, {pipeline_mode = #tpu.pipeline_mode<synchronous>, transform_indices = @transform_19, window_bounds = array<i64: 1, 64>}, {pipeline_mode = #tpu.pipeline_mode<synchronous>, transform_indices = @transform_20, window_bounds = array<i64: 1, 64>}, {pipeline_mode = #tpu.pipeline_mode<synchronous>, transform_indices = @transform_21, window_bounds = array<i64: 1, 64>}, {pipeline_mode = #tpu.pipeline_mode<synchronous>, transform_indices = @transform_22, window_bounds = array<i64: 64, 64>}, {pipeline_mode = #tpu.pipeline_mode<synchronous>, transform_indices = @transform_23, window_bounds = array<i64: 1, 64>}, {pipeline_mode = #tpu.pipeline_mode<synchronous>, transform_indices = @transform_24, window_bounds = array<i64: 64, 64>}, {pipeline_mode = #tpu.pipeline_mode<synchronous>, transform_indices = @transform_25, window_bounds = array<i64: 1, 64>}, {pipeline_mode = #tpu.pipeline_mode<synchronous>, transform_indices = @transform_26, window_bounds = array<i64: 6, 8>}, {pipeline_mode = #tpu.pipeline_mode<synchronous>, transform_indices = @transform_27, window_bounds = array<i64: 6, 8>}, {pipeline_mode = #tpu.pipeline_mode<synchronous>, transform_indices = @transform_28, window_bounds = array<i64: 64, 128>}, {pipeline_mode = #tpu.pipeline_mode<synchronous>, transform_indices = @transform_29, window_bounds = array<i64: 1, 128>}, {pipeline_mode = #tpu.pipeline_mode<synchronous>, transform_indices = @transform_30, window_bounds = array<i64: 6, 128>}]} {
    %c0 = arith.constant 0 : index
    %c0_0 = arith.constant 0 : index
    %0 = vector.load %arg2[%c0, %c0_0] : memref<24x4xf32, #tpu.memory_space<vmem>>, vector<24x4xf32>
    %c0_1 = arith.constant 0 : index
    %c0_2 = arith.constant 0 : index
    %c0_3 = arith.constant 0 : index
    %1 = vector.load %arg1[%c0_1, %c0_2, %c0_3] : memref<3x80x24xf32, #tpu.memory_space<vmem>>, vector<1x80x24xf32>
    %2 = vector.shape_cast %1 : vector<1x80x24xf32> to vector<80x24xf32>
    %cst = arith.constant dense<0.000000e+00> : vector<80x4xf32>
    %3 = tpu.matmul %2, %0, %cst {dimension_numbers = #tpu.dot_dimension_numbers<[1], [0], [0], [1], [0, 0, 1, 1], [], []>} : vector<80x24xf32>, vector<24x4xf32>, vector<80x4xf32> -> vector<80x4xf32>
    %c1 = arith.constant 1 : index
    %c0_4 = arith.constant 0 : index
    %c0_5 = arith.constant 0 : index
    %4 = vector.load %arg1[%c1, %c0_4, %c0_5] : memref<3x80x24xf32, #tpu.memory_space<vmem>>, vector<1x80x24xf32>
    %5 = vector.shape_cast %4 : vector<1x80x24xf32> to vector<80x24xf32>
    %cst_6 = arith.constant dense<0.000000e+00> : vector<80x4xf32>
    %6 = tpu.matmul %5, %0, %cst_6 {dimension_numbers = #tpu.dot_dimension_numbers<[1], [0], [0], [1], [0, 0, 1, 1], [], []>} : vector<80x24xf32>, vector<24x4xf32>, vector<80x4xf32> -> vector<80x4xf32>
    %c2 = arith.constant 2 : index
    %c0_7 = arith.constant 0 : index
    %c0_8 = arith.constant 0 : index
    %7 = vector.load %arg1[%c2, %c0_7, %c0_8] : memref<3x80x24xf32, #tpu.memory_space<vmem>>, vector<1x80x24xf32>
    %8 = vector.shape_cast %7 : vector<1x80x24xf32> to vector<80x24xf32>
    %cst_9 = arith.constant dense<0.000000e+00> : vector<80x4xf32>
    %9 = tpu.matmul %8, %0, %cst_9 {dimension_numbers = #tpu.dot_dimension_numbers<[1], [0], [0], [1], [0, 0, 1, 1], [], []>} : vector<80x24xf32>, vector<24x4xf32>, vector<80x4xf32> -> vector<80x4xf32>
    %10 = arith.maximumf %3, %6 : vector<80x4xf32>
    %11 = arith.maximumf %10, %9 : vector<80x4xf32>
    %c0_10 = arith.constant 0 : index
    %c0_11 = arith.constant 0 : index
    %12 = vector.load %arg3[%c0_10, %c0_11] : memref<1x4xf32, #tpu.memory_space<vmem>>, vector<1x4xf32>
    %13 = vector.broadcast %12 : vector<1x4xf32> to vector<80x4xf32>
    %14 = arith.addf %11, %13 : vector<80x4xf32>
    %c0_12 = arith.constant 0 : index
    %c0_13 = arith.constant 0 : index
    %15 = vector.load %arg4[%c0_12, %c0_13] : memref<4x12xf32, #tpu.memory_space<vmem>>, vector<4x12xf32>
    %cst_14 = arith.constant dense<0.000000e+00> : vector<80x12xf32>
    %16 = tpu.matmul %14, %15, %cst_14 {dimension_numbers = #tpu.dot_dimension_numbers<[1], [0], [0], [1], [0, 0, 1, 1], [], []>} : vector<80x4xf32>, vector<4x12xf32>, vector<80x12xf32> -> vector<80x12xf32>
    %c0_15 = arith.constant 0 : index
    %c0_16 = arith.constant 0 : index
    %17 = vector.load %arg5[%c0_15, %c0_16] : memref<1x12xf32, #tpu.memory_space<vmem>>, vector<1x12xf32>
    %18 = vector.broadcast %17 : vector<1x12xf32> to vector<80x12xf32>
    %19 = arith.addf %16, %18 : vector<80x12xf32>
    %c0_17 = arith.constant 0 : index
    %c0_18 = arith.constant 0 : index
    %20 = vector.load %arg6[%c0_17, %c0_18] : memref<4x12xf32, #tpu.memory_space<vmem>>, vector<4x12xf32>
    %cst_19 = arith.constant dense<0.000000e+00> : vector<80x12xf32>
    %21 = tpu.matmul %14, %20, %cst_19 {dimension_numbers = #tpu.dot_dimension_numbers<[1], [0], [0], [1], [0, 0, 1, 1], [], []>} : vector<80x4xf32>, vector<4x12xf32>, vector<80x12xf32> -> vector<80x12xf32>
    %c0_20 = arith.constant 0 : index
    %c0_21 = arith.constant 0 : index
    %22 = vector.load %arg7[%c0_20, %c0_21] : memref<1x12xf32, #tpu.memory_space<vmem>>, vector<1x12xf32>
    %23 = vector.broadcast %22 : vector<1x12xf32> to vector<80x12xf32>
    %24 = arith.addf %21, %23 : vector<80x12xf32>
    %c0_22 = arith.constant 0 : index
    %c0_23 = arith.constant 0 : index
    %25 = vector.load %arg8[%c0_22, %c0_23] : memref<4x12xf32, #tpu.memory_space<vmem>>, vector<4x12xf32>
    %c0_24 = arith.constant 0 : index
    %c0_25 = arith.constant 0 : index
    %26 = vector.load %arg9[%c0_24, %c0_25] : memref<1x12xf32, #tpu.memory_space<vmem>>, vector<1x12xf32>
    %c0_26 = arith.constant 0 : index
    %c0_27 = arith.constant 0 : index
    %27 = vector.load %arg10[%c0_26, %c0_27] : memref<4x12xf32, #tpu.memory_space<vmem>>, vector<4x12xf32>
    %c0_28 = arith.constant 0 : index
    %c0_29 = arith.constant 0 : index
    %28 = vector.load %arg11[%c0_28, %c0_29] : memref<1x12xf32, #tpu.memory_space<vmem>>, vector<1x12xf32>
    %cst_30 = arith.constant 0.000000e+00 : f32
    %29 = vector.broadcast %cst_30 : f32 to vector<8x4xf32>
    %30 = vector.extract_strided_slice %19 {offsets = [0, 0], sizes = [8, 12], strides = [1, 1]} : vector<80x12xf32> to vector<8x12xf32>
    %cst_31 = arith.constant dense<0.000000e+00> : vector<8x12xf32>
    %31 = tpu.matmul %29, %25, %cst_31 {dimension_numbers = #tpu.dot_dimension_numbers<[1], [0], [0], [1], [0, 0, 1, 1], [], []>} : vector<8x4xf32>, vector<4x12xf32>, vector<8x12xf32> -> vector<8x12xf32>
    %32 = vector.broadcast %26 : vector<1x12xf32> to vector<8x12xf32>
    %33 = arith.addf %31, %32 : vector<8x12xf32>
    %34 = vector.extract_strided_slice %30 {offsets = [0, 0], sizes = [8, 4], strides = [1, 1]} : vector<8x12xf32> to vector<8x4xf32>
    %35 = vector.extract_strided_slice %30 {offsets = [0, 4], sizes = [8, 4], strides = [1, 1]} : vector<8x12xf32> to vector<8x4xf32>
    %36 = vector.extract_strided_slice %30 {offsets = [0, 8], sizes = [8, 4], strides = [1, 1]} : vector<8x12xf32> to vector<8x4xf32>
    %37 = vector.extract_strided_slice %33 {offsets = [0, 0], sizes = [8, 4], strides = [1, 1]} : vector<8x12xf32> to vector<8x4xf32>
    %38 = vector.extract_strided_slice %33 {offsets = [0, 4], sizes = [8, 4], strides = [1, 1]} : vector<8x12xf32> to vector<8x4xf32>
    %39 = vector.extract_strided_slice %33 {offsets = [0, 8], sizes = [8, 4], strides = [1, 1]} : vector<8x12xf32> to vector<8x4xf32>
    %40 = arith.addf %34, %37 : vector<8x4xf32>
    %cst_32 = arith.constant 0.000000e+00 : f32
    %41 = vector.broadcast %cst_32 : f32 to vector<8x4xf32>
    %42 = arith.subf %41, %40 : vector<8x4xf32>
    %43 = math.exp %42 : vector<8x4xf32>
    %cst_33 = arith.constant 1.000000e+00 : f32
    %44 = vector.broadcast %cst_33 : f32 to vector<8x4xf32>
    %45 = arith.addf %44, %43 : vector<8x4xf32>
    %cst_34 = arith.constant 1.000000e+00 : f32
    %46 = vector.broadcast %cst_34 : f32 to vector<8x4xf32>
    %47 = arith.divf %46, %45 : vector<8x4xf32>
    %48 = arith.addf %35, %38 : vector<8x4xf32>
    %cst_35 = arith.constant 0.000000e+00 : f32
    %49 = vector.broadcast %cst_35 : f32 to vector<8x4xf32>
    %50 = arith.subf %49, %48 : vector<8x4xf32>
    %51 = math.exp %50 : vector<8x4xf32>
    %cst_36 = arith.constant 1.000000e+00 : f32
    %52 = vector.broadcast %cst_36 : f32 to vector<8x4xf32>
    %53 = arith.addf %52, %51 : vector<8x4xf32>
    %cst_37 = arith.constant 1.000000e+00 : f32
    %54 = vector.broadcast %cst_37 : f32 to vector<8x4xf32>
    %55 = arith.divf %54, %53 : vector<8x4xf32>
    %56 = arith.mulf %47, %39 : vector<8x4xf32>
    %57 = arith.addf %36, %56 : vector<8x4xf32>
    %58 = math.tanh %57 : vector<8x4xf32>
    %cst_38 = arith.constant 1.000000e+00 : f32
    %59 = vector.broadcast %cst_38 : f32 to vector<8x4xf32>
    %60 = arith.subf %59, %55 : vector<8x4xf32>
    %61 = arith.mulf %60, %58 : vector<8x4xf32>
    %62 = arith.mulf %55, %29 : vector<8x4xf32>
    %63 = arith.addf %61, %62 : vector<8x4xf32>
    %cst_39 = arith.constant dense<0.000000e+00> : vector<8xf32>
    %64 = vector.multi_reduction <add>, %63, %cst_39 [1] : vector<8x4xf32> to vector<8xf32>
    %65 = vector.shape_cast %64 : vector<8xf32> to vector<8x1xf32>
    %66 = vector.extract_strided_slice %19 {offsets = [8, 0], sizes = [8, 12], strides = [1, 1]} : vector<80x12xf32> to vector<8x12xf32>
    %cst_40 = arith.constant dense<0.000000e+00> : vector<8x12xf32>
    %67 = tpu.matmul %63, %25, %cst_40 {dimension_numbers = #tpu.dot_dimension_numbers<[1], [0], [0], [1], [0, 0, 1, 1], [], []>} : vector<8x4xf32>, vector<4x12xf32>, vector<8x12xf32> -> vector<8x12xf32>
    %68 = vector.broadcast %26 : vector<1x12xf32> to vector<8x12xf32>
    %69 = arith.addf %67, %68 : vector<8x12xf32>
    %70 = vector.extract_strided_slice %66 {offsets = [0, 0], sizes = [8, 4], strides = [1, 1]} : vector<8x12xf32> to vector<8x4xf32>
    %71 = vector.extract_strided_slice %66 {offsets = [0, 4], sizes = [8, 4], strides = [1, 1]} : vector<8x12xf32> to vector<8x4xf32>
    %72 = vector.extract_strided_slice %66 {offsets = [0, 8], sizes = [8, 4], strides = [1, 1]} : vector<8x12xf32> to vector<8x4xf32>
    %73 = vector.extract_strided_slice %69 {offsets = [0, 0], sizes = [8, 4], strides = [1, 1]} : vector<8x12xf32> to vector<8x4xf32>
    %74 = vector.extract_strided_slice %69 {offsets = [0, 4], sizes = [8, 4], strides = [1, 1]} : vector<8x12xf32> to vector<8x4xf32>
    %75 = vector.extract_strided_slice %69 {offsets = [0, 8], sizes = [8, 4], strides = [1, 1]} : vector<8x12xf32> to vector<8x4xf32>
    %76 = arith.addf %70, %73 : vector<8x4xf32>
    %cst_41 = arith.constant 0.000000e+00 : f32
    %77 = vector.broadcast %cst_41 : f32 to vector<8x4xf32>
    %78 = arith.subf %77, %76 : vector<8x4xf32>
    %79 = math.exp %78 : vector<8x4xf32>
    %cst_42 = arith.constant 1.000000e+00 : f32
    %80 = vector.broadcast %cst_42 : f32 to vector<8x4xf32>
    %81 = arith.addf %80, %79 : vector<8x4xf32>
    %cst_43 = arith.constant 1.000000e+00 : f32
    %82 = vector.broadcast %cst_43 : f32 to vector<8x4xf32>
    %83 = arith.divf %82, %81 : vector<8x4xf32>
    %84 = arith.addf %71, %74 : vector<8x4xf32>
    %cst_44 = arith.constant 0.000000e+00 : f32
    %85 = vector.broadcast %cst_44 : f32 to vector<8x4xf32>
    %86 = arith.subf %85, %84 : vector<8x4xf32>
    %87 = math.exp %86 : vector<8x4xf32>
    %cst_45 = arith.constant 1.000000e+00 : f32
    %88 = vector.broadcast %cst_45 : f32 to vector<8x4xf32>
    %89 = arith.addf %88, %87 : vector<8x4xf32>
    %cst_46 = arith.constant 1.000000e+00 : f32
    %90 = vector.broadcast %cst_46 : f32 to vector<8x4xf32>
    %91 = arith.divf %90, %89 : vector<8x4xf32>
    %92 = arith.mulf %83, %75 : vector<8x4xf32>
    %93 = arith.addf %72, %92 : vector<8x4xf32>
    %94 = math.tanh %93 : vector<8x4xf32>
    %cst_47 = arith.constant 1.000000e+00 : f32
    %95 = vector.broadcast %cst_47 : f32 to vector<8x4xf32>
    %96 = arith.subf %95, %91 : vector<8x4xf32>
    %97 = arith.mulf %96, %94 : vector<8x4xf32>
    %98 = arith.mulf %91, %63 : vector<8x4xf32>
    %99 = arith.addf %97, %98 : vector<8x4xf32>
    %cst_48 = arith.constant dense<0.000000e+00> : vector<8xf32>
    %100 = vector.multi_reduction <add>, %99, %cst_48 [1] : vector<8x4xf32> to vector<8xf32>
    %101 = vector.shape_cast %100 : vector<8xf32> to vector<8x1xf32>
    %102 = vector.extract_strided_slice %19 {offsets = [16, 0], sizes = [8, 12], strides = [1, 1]} : vector<80x12xf32> to vector<8x12xf32>
    %cst_49 = arith.constant dense<0.000000e+00> : vector<8x12xf32>
    %103 = tpu.matmul %99, %25, %cst_49 {dimension_numbers = #tpu.dot_dimension_numbers<[1], [0], [0], [1], [0, 0, 1, 1], [], []>} : vector<8x4xf32>, vector<4x12xf32>, vector<8x12xf32> -> vector<8x12xf32>
    %104 = vector.broadcast %26 : vector<1x12xf32> to vector<8x12xf32>
    %105 = arith.addf %103, %104 : vector<8x12xf32>
    %106 = vector.extract_strided_slice %102 {offsets = [0, 0], sizes = [8, 4], strides = [1, 1]} : vector<8x12xf32> to vector<8x4xf32>
    %107 = vector.extract_strided_slice %102 {offsets = [0, 4], sizes = [8, 4], strides = [1, 1]} : vector<8x12xf32> to vector<8x4xf32>
    %108 = vector.extract_strided_slice %102 {offsets = [0, 8], sizes = [8, 4], strides = [1, 1]} : vector<8x12xf32> to vector<8x4xf32>
    %109 = vector.extract_strided_slice %105 {offsets = [0, 0], sizes = [8, 4], strides = [1, 1]} : vector<8x12xf32> to vector<8x4xf32>
    %110 = vector.extract_strided_slice %105 {offsets = [0, 4], sizes = [8, 4], strides = [1, 1]} : vector<8x12xf32> to vector<8x4xf32>
    %111 = vector.extract_strided_slice %105 {offsets = [0, 8], sizes = [8, 4], strides = [1, 1]} : vector<8x12xf32> to vector<8x4xf32>
    %112 = arith.addf %106, %109 : vector<8x4xf32>
    %cst_50 = arith.constant 0.000000e+00 : f32
    %113 = vector.broadcast %cst_50 : f32 to vector<8x4xf32>
    %114 = arith.subf %113, %112 : vector<8x4xf32>
    %115 = math.exp %114 : vector<8x4xf32>
    %cst_51 = arith.constant 1.000000e+00 : f32
    %116 = vector.broadcast %cst_51 : f32 to vector<8x4xf32>
    %117 = arith.addf %116, %115 : vector<8x4xf32>
    %cst_52 = arith.constant 1.000000e+00 : f32
    %118 = vector.broadcast %cst_52 : f32 to vector<8x4xf32>
    %119 = arith.divf %118, %117 : vector<8x4xf32>
    %120 = arith.addf %107, %110 : vector<8x4xf32>
    %cst_53 = arith.constant 0.000000e+00 : f32
    %121 = vector.broadcast %cst_53 : f32 to vector<8x4xf32>
    %122 = arith.subf %121, %120 : vector<8x4xf32>
    %123 = math.exp %122 : vector<8x4xf32>
    %cst_54 = arith.constant 1.000000e+00 : f32
    %124 = vector.broadcast %cst_54 : f32 to vector<8x4xf32>
    %125 = arith.addf %124, %123 : vector<8x4xf32>
    %cst_55 = arith.constant 1.000000e+00 : f32
    %126 = vector.broadcast %cst_55 : f32 to vector<8x4xf32>
    %127 = arith.divf %126, %125 : vector<8x4xf32>
    %128 = arith.mulf %119, %111 : vector<8x4xf32>
    %129 = arith.addf %108, %128 : vector<8x4xf32>
    %130 = math.tanh %129 : vector<8x4xf32>
    %cst_56 = arith.constant 1.000000e+00 : f32
    %131 = vector.broadcast %cst_56 : f32 to vector<8x4xf32>
    %132 = arith.subf %131, %127 : vector<8x4xf32>
    %133 = arith.mulf %132, %130 : vector<8x4xf32>
    %134 = arith.mulf %127, %99 : vector<8x4xf32>
    %135 = arith.addf %133, %134 : vector<8x4xf32>
    %cst_57 = arith.constant dense<0.000000e+00> : vector<8xf32>
    %136 = vector.multi_reduction <add>, %135, %cst_57 [1] : vector<8x4xf32> to vector<8xf32>
    %137 = vector.shape_cast %136 : vector<8xf32> to vector<8x1xf32>
    %138 = vector.extract_strided_slice %19 {offsets = [24, 0], sizes = [8, 12], strides = [1, 1]} : vector<80x12xf32> to vector<8x12xf32>
    %cst_58 = arith.constant dense<0.000000e+00> : vector<8x12xf32>
    %139 = tpu.matmul %135, %25, %cst_58 {dimension_numbers = #tpu.dot_dimension_numbers<[1], [0], [0], [1], [0, 0, 1, 1], [], []>} : vector<8x4xf32>, vector<4x12xf32>, vector<8x12xf32> -> vector<8x12xf32>
    %140 = vector.broadcast %26 : vector<1x12xf32> to vector<8x12xf32>
    %141 = arith.addf %139, %140 : vector<8x12xf32>
    %142 = vector.extract_strided_slice %138 {offsets = [0, 0], sizes = [8, 4], strides = [1, 1]} : vector<8x12xf32> to vector<8x4xf32>
    %143 = vector.extract_strided_slice %138 {offsets = [0, 4], sizes = [8, 4], strides = [1, 1]} : vector<8x12xf32> to vector<8x4xf32>
    %144 = vector.extract_strided_slice %138 {offsets = [0, 8], sizes = [8, 4], strides = [1, 1]} : vector<8x12xf32> to vector<8x4xf32>
    %145 = vector.extract_strided_slice %141 {offsets = [0, 0], sizes = [8, 4], strides = [1, 1]} : vector<8x12xf32> to vector<8x4xf32>
    %146 = vector.extract_strided_slice %141 {offsets = [0, 4], sizes = [8, 4], strides = [1, 1]} : vector<8x12xf32> to vector<8x4xf32>
    %147 = vector.extract_strided_slice %141 {offsets = [0, 8], sizes = [8, 4], strides = [1, 1]} : vector<8x12xf32> to vector<8x4xf32>
    %148 = arith.addf %142, %145 : vector<8x4xf32>
    %cst_59 = arith.constant 0.000000e+00 : f32
    %149 = vector.broadcast %cst_59 : f32 to vector<8x4xf32>
    %150 = arith.subf %149, %148 : vector<8x4xf32>
    %151 = math.exp %150 : vector<8x4xf32>
    %cst_60 = arith.constant 1.000000e+00 : f32
    %152 = vector.broadcast %cst_60 : f32 to vector<8x4xf32>
    %153 = arith.addf %152, %151 : vector<8x4xf32>
    %cst_61 = arith.constant 1.000000e+00 : f32
    %154 = vector.broadcast %cst_61 : f32 to vector<8x4xf32>
    %155 = arith.divf %154, %153 : vector<8x4xf32>
    %156 = arith.addf %143, %146 : vector<8x4xf32>
    %cst_62 = arith.constant 0.000000e+00 : f32
    %157 = vector.broadcast %cst_62 : f32 to vector<8x4xf32>
    %158 = arith.subf %157, %156 : vector<8x4xf32>
    %159 = math.exp %158 : vector<8x4xf32>
    %cst_63 = arith.constant 1.000000e+00 : f32
    %160 = vector.broadcast %cst_63 : f32 to vector<8x4xf32>
    %161 = arith.addf %160, %159 : vector<8x4xf32>
    %cst_64 = arith.constant 1.000000e+00 : f32
    %162 = vector.broadcast %cst_64 : f32 to vector<8x4xf32>
    %163 = arith.divf %162, %161 : vector<8x4xf32>
    %164 = arith.mulf %155, %147 : vector<8x4xf32>
    %165 = arith.addf %144, %164 : vector<8x4xf32>
    %166 = math.tanh %165 : vector<8x4xf32>
    %cst_65 = arith.constant 1.000000e+00 : f32
    %167 = vector.broadcast %cst_65 : f32 to vector<8x4xf32>
    %168 = arith.subf %167, %163 : vector<8x4xf32>
    %169 = arith.mulf %168, %166 : vector<8x4xf32>
    %170 = arith.mulf %163, %135 : vector<8x4xf32>
    %171 = arith.addf %169, %170 : vector<8x4xf32>
    %cst_66 = arith.constant dense<0.000000e+00> : vector<8xf32>
    %172 = vector.multi_reduction <add>, %171, %cst_66 [1] : vector<8x4xf32> to vector<8xf32>
    %173 = vector.shape_cast %172 : vector<8xf32> to vector<8x1xf32>
    %174 = vector.extract_strided_slice %19 {offsets = [32, 0], sizes = [8, 12], strides = [1, 1]} : vector<80x12xf32> to vector<8x12xf32>
    %cst_67 = arith.constant dense<0.000000e+00> : vector<8x12xf32>
    %175 = tpu.matmul %171, %25, %cst_67 {dimension_numbers = #tpu.dot_dimension_numbers<[1], [0], [0], [1], [0, 0, 1, 1], [], []>} : vector<8x4xf32>, vector<4x12xf32>, vector<8x12xf32> -> vector<8x12xf32>
    %176 = vector.broadcast %26 : vector<1x12xf32> to vector<8x12xf32>
    %177 = arith.addf %175, %176 : vector<8x12xf32>
    %178 = vector.extract_strided_slice %174 {offsets = [0, 0], sizes = [8, 4], strides = [1, 1]} : vector<8x12xf32> to vector<8x4xf32>
    %179 = vector.extract_strided_slice %174 {offsets = [0, 4], sizes = [8, 4], strides = [1, 1]} : vector<8x12xf32> to vector<8x4xf32>
    %180 = vector.extract_strided_slice %174 {offsets = [0, 8], sizes = [8, 4], strides = [1, 1]} : vector<8x12xf32> to vector<8x4xf32>
    %181 = vector.extract_strided_slice %177 {offsets = [0, 0], sizes = [8, 4], strides = [1, 1]} : vector<8x12xf32> to vector<8x4xf32>
    %182 = vector.extract_strided_slice %177 {offsets = [0, 4], sizes = [8, 4], strides = [1, 1]} : vector<8x12xf32> to vector<8x4xf32>
    %183 = vector.extract_strided_slice %177 {offsets = [0, 8], sizes = [8, 4], strides = [1, 1]} : vector<8x12xf32> to vector<8x4xf32>
    %184 = arith.addf %178, %181 : vector<8x4xf32>
    %cst_68 = arith.constant 0.000000e+00 : f32
    %185 = vector.broadcast %cst_68 : f32 to vector<8x4xf32>
    %186 = arith.subf %185, %184 : vector<8x4xf32>
    %187 = math.exp %186 : vector<8x4xf32>
    %cst_69 = arith.constant 1.000000e+00 : f32
    %188 = vector.broadcast %cst_69 : f32 to vector<8x4xf32>
    %189 = arith.addf %188, %187 : vector<8x4xf32>
    %cst_70 = arith.constant 1.000000e+00 : f32
    %190 = vector.broadcast %cst_70 : f32 to vector<8x4xf32>
    %191 = arith.divf %190, %189 : vector<8x4xf32>
    %192 = arith.addf %179, %182 : vector<8x4xf32>
    %cst_71 = arith.constant 0.000000e+00 : f32
    %193 = vector.broadcast %cst_71 : f32 to vector<8x4xf32>
    %194 = arith.subf %193, %192 : vector<8x4xf32>
    %195 = math.exp %194 : vector<8x4xf32>
    %cst_72 = arith.constant 1.000000e+00 : f32
    %196 = vector.broadcast %cst_72 : f32 to vector<8x4xf32>
    %197 = arith.addf %196, %195 : vector<8x4xf32>
    %cst_73 = arith.constant 1.000000e+00 : f32
    %198 = vector.broadcast %cst_73 : f32 to vector<8x4xf32>
    %199 = arith.divf %198, %197 : vector<8x4xf32>
    %200 = arith.mulf %191, %183 : vector<8x4xf32>
    %201 = arith.addf %180, %200 : vector<8x4xf32>
    %202 = math.tanh %201 : vector<8x4xf32>
    %cst_74 = arith.constant 1.000000e+00 : f32
    %203 = vector.broadcast %cst_74 : f32 to vector<8x4xf32>
    %204 = arith.subf %203, %199 : vector<8x4xf32>
    %205 = arith.mulf %204, %202 : vector<8x4xf32>
    %206 = arith.mulf %199, %171 : vector<8x4xf32>
    %207 = arith.addf %205, %206 : vector<8x4xf32>
    %cst_75 = arith.constant dense<0.000000e+00> : vector<8xf32>
    %208 = vector.multi_reduction <add>, %207, %cst_75 [1] : vector<8x4xf32> to vector<8xf32>
    %209 = vector.shape_cast %208 : vector<8xf32> to vector<8x1xf32>
    %210 = vector.extract_strided_slice %19 {offsets = [40, 0], sizes = [8, 12], strides = [1, 1]} : vector<80x12xf32> to vector<8x12xf32>
    %cst_76 = arith.constant dense<0.000000e+00> : vector<8x12xf32>
    %211 = tpu.matmul %207, %25, %cst_76 {dimension_numbers = #tpu.dot_dimension_numbers<[1], [0], [0], [1], [0, 0, 1, 1], [], []>} : vector<8x4xf32>, vector<4x12xf32>, vector<8x12xf32> -> vector<8x12xf32>
    %212 = vector.broadcast %26 : vector<1x12xf32> to vector<8x12xf32>
    %213 = arith.addf %211, %212 : vector<8x12xf32>
    %214 = vector.extract_strided_slice %210 {offsets = [0, 0], sizes = [8, 4], strides = [1, 1]} : vector<8x12xf32> to vector<8x4xf32>
    %215 = vector.extract_strided_slice %210 {offsets = [0, 4], sizes = [8, 4], strides = [1, 1]} : vector<8x12xf32> to vector<8x4xf32>
    %216 = vector.extract_strided_slice %210 {offsets = [0, 8], sizes = [8, 4], strides = [1, 1]} : vector<8x12xf32> to vector<8x4xf32>
    %217 = vector.extract_strided_slice %213 {offsets = [0, 0], sizes = [8, 4], strides = [1, 1]} : vector<8x12xf32> to vector<8x4xf32>
    %218 = vector.extract_strided_slice %213 {offsets = [0, 4], sizes = [8, 4], strides = [1, 1]} : vector<8x12xf32> to vector<8x4xf32>
    %219 = vector.extract_strided_slice %213 {offsets = [0, 8], sizes = [8, 4], strides = [1, 1]} : vector<8x12xf32> to vector<8x4xf32>
    %220 = arith.addf %214, %217 : vector<8x4xf32>
    %cst_77 = arith.constant 0.000000e+00 : f32
    %221 = vector.broadcast %cst_77 : f32 to vector<8x4xf32>
    %222 = arith.subf %221, %220 : vector<8x4xf32>
    %223 = math.exp %222 : vector<8x4xf32>
    %cst_78 = arith.constant 1.000000e+00 : f32
    %224 = vector.broadcast %cst_78 : f32 to vector<8x4xf32>
    %225 = arith.addf %224, %223 : vector<8x4xf32>
    %cst_79 = arith.constant 1.000000e+00 : f32
    %226 = vector.broadcast %cst_79 : f32 to vector<8x4xf32>
    %227 = arith.divf %226, %225 : vector<8x4xf32>
    %228 = arith.addf %215, %218 : vector<8x4xf32>
    %cst_80 = arith.constant 0.000000e+00 : f32
    %229 = vector.broadcast %cst_80 : f32 to vector<8x4xf32>
    %230 = arith.subf %229, %228 : vector<8x4xf32>
    %231 = math.exp %230 : vector<8x4xf32>
    %cst_81 = arith.constant 1.000000e+00 : f32
    %232 = vector.broadcast %cst_81 : f32 to vector<8x4xf32>
    %233 = arith.addf %232, %231 : vector<8x4xf32>
    %cst_82 = arith.constant 1.000000e+00 : f32
    %234 = vector.broadcast %cst_82 : f32 to vector<8x4xf32>
    %235 = arith.divf %234, %233 : vector<8x4xf32>
    %236 = arith.mulf %227, %219 : vector<8x4xf32>
    %237 = arith.addf %216, %236 : vector<8x4xf32>
    %238 = math.tanh %237 : vector<8x4xf32>
    %cst_83 = arith.constant 1.000000e+00 : f32
    %239 = vector.broadcast %cst_83 : f32 to vector<8x4xf32>
    %240 = arith.subf %239, %235 : vector<8x4xf32>
    %241 = arith.mulf %240, %238 : vector<8x4xf32>
    %242 = arith.mulf %235, %207 : vector<8x4xf32>
    %243 = arith.addf %241, %242 : vector<8x4xf32>
    %cst_84 = arith.constant dense<0.000000e+00> : vector<8xf32>
    %244 = vector.multi_reduction <add>, %243, %cst_84 [1] : vector<8x4xf32> to vector<8xf32>
    %245 = vector.shape_cast %244 : vector<8xf32> to vector<8x1xf32>
    %246 = vector.extract_strided_slice %19 {offsets = [48, 0], sizes = [8, 12], strides = [1, 1]} : vector<80x12xf32> to vector<8x12xf32>
    %cst_85 = arith.constant dense<0.000000e+00> : vector<8x12xf32>
    %247 = tpu.matmul %243, %25, %cst_85 {dimension_numbers = #tpu.dot_dimension_numbers<[1], [0], [0], [1], [0, 0, 1, 1], [], []>} : vector<8x4xf32>, vector<4x12xf32>, vector<8x12xf32> -> vector<8x12xf32>
    %248 = vector.broadcast %26 : vector<1x12xf32> to vector<8x12xf32>
    %249 = arith.addf %247, %248 : vector<8x12xf32>
    %250 = vector.extract_strided_slice %246 {offsets = [0, 0], sizes = [8, 4], strides = [1, 1]} : vector<8x12xf32> to vector<8x4xf32>
    %251 = vector.extract_strided_slice %246 {offsets = [0, 4], sizes = [8, 4], strides = [1, 1]} : vector<8x12xf32> to vector<8x4xf32>
    %252 = vector.extract_strided_slice %246 {offsets = [0, 8], sizes = [8, 4], strides = [1, 1]} : vector<8x12xf32> to vector<8x4xf32>
    %253 = vector.extract_strided_slice %249 {offsets = [0, 0], sizes = [8, 4], strides = [1, 1]} : vector<8x12xf32> to vector<8x4xf32>
    %254 = vector.extract_strided_slice %249 {offsets = [0, 4], sizes = [8, 4], strides = [1, 1]} : vector<8x12xf32> to vector<8x4xf32>
    %255 = vector.extract_strided_slice %249 {offsets = [0, 8], sizes = [8, 4], strides = [1, 1]} : vector<8x12xf32> to vector<8x4xf32>
    %256 = arith.addf %250, %253 : vector<8x4xf32>
    %cst_86 = arith.constant 0.000000e+00 : f32
    %257 = vector.broadcast %cst_86 : f32 to vector<8x4xf32>
    %258 = arith.subf %257, %256 : vector<8x4xf32>
    %259 = math.exp %258 : vector<8x4xf32>
    %cst_87 = arith.constant 1.000000e+00 : f32
    %260 = vector.broadcast %cst_87 : f32 to vector<8x4xf32>
    %261 = arith.addf %260, %259 : vector<8x4xf32>
    %cst_88 = arith.constant 1.000000e+00 : f32
    %262 = vector.broadcast %cst_88 : f32 to vector<8x4xf32>
    %263 = arith.divf %262, %261 : vector<8x4xf32>
    %264 = arith.addf %251, %254 : vector<8x4xf32>
    %cst_89 = arith.constant 0.000000e+00 : f32
    %265 = vector.broadcast %cst_89 : f32 to vector<8x4xf32>
    %266 = arith.subf %265, %264 : vector<8x4xf32>
    %267 = math.exp %266 : vector<8x4xf32>
    %cst_90 = arith.constant 1.000000e+00 : f32
    %268 = vector.broadcast %cst_90 : f32 to vector<8x4xf32>
    %269 = arith.addf %268, %267 : vector<8x4xf32>
    %cst_91 = arith.constant 1.000000e+00 : f32
    %270 = vector.broadcast %cst_91 : f32 to vector<8x4xf32>
    %271 = arith.divf %270, %269 : vector<8x4xf32>
    %272 = arith.mulf %263, %255 : vector<8x4xf32>
    %273 = arith.addf %252, %272 : vector<8x4xf32>
    %274 = math.tanh %273 : vector<8x4xf32>
    %cst_92 = arith.constant 1.000000e+00 : f32
    %275 = vector.broadcast %cst_92 : f32 to vector<8x4xf32>
    %276 = arith.subf %275, %271 : vector<8x4xf32>
    %277 = arith.mulf %276, %274 : vector<8x4xf32>
    %278 = arith.mulf %271, %243 : vector<8x4xf32>
    %279 = arith.addf %277, %278 : vector<8x4xf32>
    %cst_93 = arith.constant dense<0.000000e+00> : vector<8xf32>
    %280 = vector.multi_reduction <add>, %279, %cst_93 [1] : vector<8x4xf32> to vector<8xf32>
    %281 = vector.shape_cast %280 : vector<8xf32> to vector<8x1xf32>
    %282 = vector.extract_strided_slice %19 {offsets = [56, 0], sizes = [8, 12], strides = [1, 1]} : vector<80x12xf32> to vector<8x12xf32>
    %cst_94 = arith.constant dense<0.000000e+00> : vector<8x12xf32>
    %283 = tpu.matmul %279, %25, %cst_94 {dimension_numbers = #tpu.dot_dimension_numbers<[1], [0], [0], [1], [0, 0, 1, 1], [], []>} : vector<8x4xf32>, vector<4x12xf32>, vector<8x12xf32> -> vector<8x12xf32>
    %284 = vector.broadcast %26 : vector<1x12xf32> to vector<8x12xf32>
    %285 = arith.addf %283, %284 : vector<8x12xf32>
    %286 = vector.extract_strided_slice %282 {offsets = [0, 0], sizes = [8, 4], strides = [1, 1]} : vector<8x12xf32> to vector<8x4xf32>
    %287 = vector.extract_strided_slice %282 {offsets = [0, 4], sizes = [8, 4], strides = [1, 1]} : vector<8x12xf32> to vector<8x4xf32>
    %288 = vector.extract_strided_slice %282 {offsets = [0, 8], sizes = [8, 4], strides = [1, 1]} : vector<8x12xf32> to vector<8x4xf32>
    %289 = vector.extract_strided_slice %285 {offsets = [0, 0], sizes = [8, 4], strides = [1, 1]} : vector<8x12xf32> to vector<8x4xf32>
    %290 = vector.extract_strided_slice %285 {offsets = [0, 4], sizes = [8, 4], strides = [1, 1]} : vector<8x12xf32> to vector<8x4xf32>
    %291 = vector.extract_strided_slice %285 {offsets = [0, 8], sizes = [8, 4], strides = [1, 1]} : vector<8x12xf32> to vector<8x4xf32>
    %292 = arith.addf %286, %289 : vector<8x4xf32>
    %cst_95 = arith.constant 0.000000e+00 : f32
    %293 = vector.broadcast %cst_95 : f32 to vector<8x4xf32>
    %294 = arith.subf %293, %292 : vector<8x4xf32>
    %295 = math.exp %294 : vector<8x4xf32>
    %cst_96 = arith.constant 1.000000e+00 : f32
    %296 = vector.broadcast %cst_96 : f32 to vector<8x4xf32>
    %297 = arith.addf %296, %295 : vector<8x4xf32>
    %cst_97 = arith.constant 1.000000e+00 : f32
    %298 = vector.broadcast %cst_97 : f32 to vector<8x4xf32>
    %299 = arith.divf %298, %297 : vector<8x4xf32>
    %300 = arith.addf %287, %290 : vector<8x4xf32>
    %cst_98 = arith.constant 0.000000e+00 : f32
    %301 = vector.broadcast %cst_98 : f32 to vector<8x4xf32>
    %302 = arith.subf %301, %300 : vector<8x4xf32>
    %303 = math.exp %302 : vector<8x4xf32>
    %cst_99 = arith.constant 1.000000e+00 : f32
    %304 = vector.broadcast %cst_99 : f32 to vector<8x4xf32>
    %305 = arith.addf %304, %303 : vector<8x4xf32>
    %cst_100 = arith.constant 1.000000e+00 : f32
    %306 = vector.broadcast %cst_100 : f32 to vector<8x4xf32>
    %307 = arith.divf %306, %305 : vector<8x4xf32>
    %308 = arith.mulf %299, %291 : vector<8x4xf32>
    %309 = arith.addf %288, %308 : vector<8x4xf32>
    %310 = math.tanh %309 : vector<8x4xf32>
    %cst_101 = arith.constant 1.000000e+00 : f32
    %311 = vector.broadcast %cst_101 : f32 to vector<8x4xf32>
    %312 = arith.subf %311, %307 : vector<8x4xf32>
    %313 = arith.mulf %312, %310 : vector<8x4xf32>
    %314 = arith.mulf %307, %279 : vector<8x4xf32>
    %315 = arith.addf %313, %314 : vector<8x4xf32>
    %cst_102 = arith.constant dense<0.000000e+00> : vector<8xf32>
    %316 = vector.multi_reduction <add>, %315, %cst_102 [1] : vector<8x4xf32> to vector<8xf32>
    %317 = vector.shape_cast %316 : vector<8xf32> to vector<8x1xf32>
    %318 = vector.extract_strided_slice %19 {offsets = [64, 0], sizes = [8, 12], strides = [1, 1]} : vector<80x12xf32> to vector<8x12xf32>
    %cst_103 = arith.constant dense<0.000000e+00> : vector<8x12xf32>
    %319 = tpu.matmul %315, %25, %cst_103 {dimension_numbers = #tpu.dot_dimension_numbers<[1], [0], [0], [1], [0, 0, 1, 1], [], []>} : vector<8x4xf32>, vector<4x12xf32>, vector<8x12xf32> -> vector<8x12xf32>
    %320 = vector.broadcast %26 : vector<1x12xf32> to vector<8x12xf32>
    %321 = arith.addf %319, %320 : vector<8x12xf32>
    %322 = vector.extract_strided_slice %318 {offsets = [0, 0], sizes = [8, 4], strides = [1, 1]} : vector<8x12xf32> to vector<8x4xf32>
    %323 = vector.extract_strided_slice %318 {offsets = [0, 4], sizes = [8, 4], strides = [1, 1]} : vector<8x12xf32> to vector<8x4xf32>
    %324 = vector.extract_strided_slice %318 {offsets = [0, 8], sizes = [8, 4], strides = [1, 1]} : vector<8x12xf32> to vector<8x4xf32>
    %325 = vector.extract_strided_slice %321 {offsets = [0, 0], sizes = [8, 4], strides = [1, 1]} : vector<8x12xf32> to vector<8x4xf32>
    %326 = vector.extract_strided_slice %321 {offsets = [0, 4], sizes = [8, 4], strides = [1, 1]} : vector<8x12xf32> to vector<8x4xf32>
    %327 = vector.extract_strided_slice %321 {offsets = [0, 8], sizes = [8, 4], strides = [1, 1]} : vector<8x12xf32> to vector<8x4xf32>
    %328 = arith.addf %322, %325 : vector<8x4xf32>
    %cst_104 = arith.constant 0.000000e+00 : f32
    %329 = vector.broadcast %cst_104 : f32 to vector<8x4xf32>
    %330 = arith.subf %329, %328 : vector<8x4xf32>
    %331 = math.exp %330 : vector<8x4xf32>
    %cst_105 = arith.constant 1.000000e+00 : f32
    %332 = vector.broadcast %cst_105 : f32 to vector<8x4xf32>
    %333 = arith.addf %332, %331 : vector<8x4xf32>
    %cst_106 = arith.constant 1.000000e+00 : f32
    %334 = vector.broadcast %cst_106 : f32 to vector<8x4xf32>
    %335 = arith.divf %334, %333 : vector<8x4xf32>
    %336 = arith.addf %323, %326 : vector<8x4xf32>
    %cst_107 = arith.constant 0.000000e+00 : f32
    %337 = vector.broadcast %cst_107 : f32 to vector<8x4xf32>
    %338 = arith.subf %337, %336 : vector<8x4xf32>
    %339 = math.exp %338 : vector<8x4xf32>
    %cst_108 = arith.constant 1.000000e+00 : f32
    %340 = vector.broadcast %cst_108 : f32 to vector<8x4xf32>
    %341 = arith.addf %340, %339 : vector<8x4xf32>
    %cst_109 = arith.constant 1.000000e+00 : f32
    %342 = vector.broadcast %cst_109 : f32 to vector<8x4xf32>
    %343 = arith.divf %342, %341 : vector<8x4xf32>
    %344 = arith.mulf %335, %327 : vector<8x4xf32>
    %345 = arith.addf %324, %344 : vector<8x4xf32>
    %346 = math.tanh %345 : vector<8x4xf32>
    %cst_110 = arith.constant 1.000000e+00 : f32
    %347 = vector.broadcast %cst_110 : f32 to vector<8x4xf32>
    %348 = arith.subf %347, %343 : vector<8x4xf32>
    %349 = arith.mulf %348, %346 : vector<8x4xf32>
    %350 = arith.mulf %343, %315 : vector<8x4xf32>
    %351 = arith.addf %349, %350 : vector<8x4xf32>
    %cst_111 = arith.constant dense<0.000000e+00> : vector<8xf32>
    %352 = vector.multi_reduction <add>, %351, %cst_111 [1] : vector<8x4xf32> to vector<8xf32>
    %353 = vector.shape_cast %352 : vector<8xf32> to vector<8x1xf32>
    %354 = vector.extract_strided_slice %19 {offsets = [72, 0], sizes = [8, 12], strides = [1, 1]} : vector<80x12xf32> to vector<8x12xf32>
    %cst_112 = arith.constant dense<0.000000e+00> : vector<8x12xf32>
    %355 = tpu.matmul %351, %25, %cst_112 {dimension_numbers = #tpu.dot_dimension_numbers<[1], [0], [0], [1], [0, 0, 1, 1], [], []>} : vector<8x4xf32>, vector<4x12xf32>, vector<8x12xf32> -> vector<8x12xf32>
    %356 = vector.broadcast %26 : vector<1x12xf32> to vector<8x12xf32>
    %357 = arith.addf %355, %356 : vector<8x12xf32>
    %358 = vector.extract_strided_slice %354 {offsets = [0, 0], sizes = [8, 4], strides = [1, 1]} : vector<8x12xf32> to vector<8x4xf32>
    %359 = vector.extract_strided_slice %354 {offsets = [0, 4], sizes = [8, 4], strides = [1, 1]} : vector<8x12xf32> to vector<8x4xf32>
    %360 = vector.extract_strided_slice %354 {offsets = [0, 8], sizes = [8, 4], strides = [1, 1]} : vector<8x12xf32> to vector<8x4xf32>
    %361 = vector.extract_strided_slice %357 {offsets = [0, 0], sizes = [8, 4], strides = [1, 1]} : vector<8x12xf32> to vector<8x4xf32>
    %362 = vector.extract_strided_slice %357 {offsets = [0, 4], sizes = [8, 4], strides = [1, 1]} : vector<8x12xf32> to vector<8x4xf32>
    %363 = vector.extract_strided_slice %357 {offsets = [0, 8], sizes = [8, 4], strides = [1, 1]} : vector<8x12xf32> to vector<8x4xf32>
    %364 = arith.addf %358, %361 : vector<8x4xf32>
    %cst_113 = arith.constant 0.000000e+00 : f32
    %365 = vector.broadcast %cst_113 : f32 to vector<8x4xf32>
    %366 = arith.subf %365, %364 : vector<8x4xf32>
    %367 = math.exp %366 : vector<8x4xf32>
    %cst_114 = arith.constant 1.000000e+00 : f32
    %368 = vector.broadcast %cst_114 : f32 to vector<8x4xf32>
    %369 = arith.addf %368, %367 : vector<8x4xf32>
    %cst_115 = arith.constant 1.000000e+00 : f32
    %370 = vector.broadcast %cst_115 : f32 to vector<8x4xf32>
    %371 = arith.divf %370, %369 : vector<8x4xf32>
    %372 = arith.addf %359, %362 : vector<8x4xf32>
    %cst_116 = arith.constant 0.000000e+00 : f32
    %373 = vector.broadcast %cst_116 : f32 to vector<8x4xf32>
    %374 = arith.subf %373, %372 : vector<8x4xf32>
    %375 = math.exp %374 : vector<8x4xf32>
    %cst_117 = arith.constant 1.000000e+00 : f32
    %376 = vector.broadcast %cst_117 : f32 to vector<8x4xf32>
    %377 = arith.addf %376, %375 : vector<8x4xf32>
    %cst_118 = arith.constant 1.000000e+00 : f32
    %378 = vector.broadcast %cst_118 : f32 to vector<8x4xf32>
    %379 = arith.divf %378, %377 : vector<8x4xf32>
    %380 = arith.mulf %371, %363 : vector<8x4xf32>
    %381 = arith.addf %360, %380 : vector<8x4xf32>
    %382 = math.tanh %381 : vector<8x4xf32>
    %cst_119 = arith.constant 1.000000e+00 : f32
    %383 = vector.broadcast %cst_119 : f32 to vector<8x4xf32>
    %384 = arith.subf %383, %379 : vector<8x4xf32>
    %385 = arith.mulf %384, %382 : vector<8x4xf32>
    %386 = arith.mulf %379, %351 : vector<8x4xf32>
    %387 = arith.addf %385, %386 : vector<8x4xf32>
    %cst_120 = arith.constant dense<0.000000e+00> : vector<8xf32>
    %388 = vector.multi_reduction <add>, %387, %cst_120 [1] : vector<8x4xf32> to vector<8xf32>
    %389 = vector.shape_cast %388 : vector<8xf32> to vector<8x1xf32>
    %cst_121 = arith.constant 0.000000e+00 : f32
    %390 = vector.broadcast %cst_121 : f32 to vector<8x4xf32>
    %391 = vector.extract_strided_slice %24 {offsets = [72, 0], sizes = [8, 12], strides = [1, 1]} : vector<80x12xf32> to vector<8x12xf32>
    %cst_122 = arith.constant dense<0.000000e+00> : vector<8x12xf32>
    %392 = tpu.matmul %390, %27, %cst_122 {dimension_numbers = #tpu.dot_dimension_numbers<[1], [0], [0], [1], [0, 0, 1, 1], [], []>} : vector<8x4xf32>, vector<4x12xf32>, vector<8x12xf32> -> vector<8x12xf32>
    %393 = vector.broadcast %28 : vector<1x12xf32> to vector<8x12xf32>
    %394 = arith.addf %392, %393 : vector<8x12xf32>
    %395 = vector.extract_strided_slice %391 {offsets = [0, 0], sizes = [8, 4], strides = [1, 1]} : vector<8x12xf32> to vector<8x4xf32>
    %396 = vector.extract_strided_slice %391 {offsets = [0, 4], sizes = [8, 4], strides = [1, 1]} : vector<8x12xf32> to vector<8x4xf32>
    %397 = vector.extract_strided_slice %391 {offsets = [0, 8], sizes = [8, 4], strides = [1, 1]} : vector<8x12xf32> to vector<8x4xf32>
    %398 = vector.extract_strided_slice %394 {offsets = [0, 0], sizes = [8, 4], strides = [1, 1]} : vector<8x12xf32> to vector<8x4xf32>
    %399 = vector.extract_strided_slice %394 {offsets = [0, 4], sizes = [8, 4], strides = [1, 1]} : vector<8x12xf32> to vector<8x4xf32>
    %400 = vector.extract_strided_slice %394 {offsets = [0, 8], sizes = [8, 4], strides = [1, 1]} : vector<8x12xf32> to vector<8x4xf32>
    %401 = arith.addf %395, %398 : vector<8x4xf32>
    %cst_123 = arith.constant 0.000000e+00 : f32
    %402 = vector.broadcast %cst_123 : f32 to vector<8x4xf32>
    %403 = arith.subf %402, %401 : vector<8x4xf32>
    %404 = math.exp %403 : vector<8x4xf32>
    %cst_124 = arith.constant 1.000000e+00 : f32
    %405 = vector.broadcast %cst_124 : f32 to vector<8x4xf32>
    %406 = arith.addf %405, %404 : vector<8x4xf32>
    %cst_125 = arith.constant 1.000000e+00 : f32
    %407 = vector.broadcast %cst_125 : f32 to vector<8x4xf32>
    %408 = arith.divf %407, %406 : vector<8x4xf32>
    %409 = arith.addf %396, %399 : vector<8x4xf32>
    %cst_126 = arith.constant 0.000000e+00 : f32
    %410 = vector.broadcast %cst_126 : f32 to vector<8x4xf32>
    %411 = arith.subf %410, %409 : vector<8x4xf32>
    %412 = math.exp %411 : vector<8x4xf32>
    %cst_127 = arith.constant 1.000000e+00 : f32
    %413 = vector.broadcast %cst_127 : f32 to vector<8x4xf32>
    %414 = arith.addf %413, %412 : vector<8x4xf32>
    %cst_128 = arith.constant 1.000000e+00 : f32
    %415 = vector.broadcast %cst_128 : f32 to vector<8x4xf32>
    %416 = arith.divf %415, %414 : vector<8x4xf32>
    %417 = arith.mulf %408, %400 : vector<8x4xf32>
    %418 = arith.addf %397, %417 : vector<8x4xf32>
    %419 = math.tanh %418 : vector<8x4xf32>
    %cst_129 = arith.constant 1.000000e+00 : f32
    %420 = vector.broadcast %cst_129 : f32 to vector<8x4xf32>
    %421 = arith.subf %420, %416 : vector<8x4xf32>
    %422 = arith.mulf %421, %419 : vector<8x4xf32>
    %423 = arith.mulf %416, %390 : vector<8x4xf32>
    %424 = arith.addf %422, %423 : vector<8x4xf32>
    %cst_130 = arith.constant dense<0.000000e+00> : vector<8xf32>
    %425 = vector.multi_reduction <add>, %424, %cst_130 [1] : vector<8x4xf32> to vector<8xf32>
    %426 = vector.shape_cast %425 : vector<8xf32> to vector<8x1xf32>
    %427 = arith.addf %389, %426 : vector<8x1xf32>
    %428 = vector.extract_strided_slice %24 {offsets = [64, 0], sizes = [8, 12], strides = [1, 1]} : vector<80x12xf32> to vector<8x12xf32>
    %cst_131 = arith.constant dense<0.000000e+00> : vector<8x12xf32>
    %429 = tpu.matmul %424, %27, %cst_131 {dimension_numbers = #tpu.dot_dimension_numbers<[1], [0], [0], [1], [0, 0, 1, 1], [], []>} : vector<8x4xf32>, vector<4x12xf32>, vector<8x12xf32> -> vector<8x12xf32>
    %430 = vector.broadcast %28 : vector<1x12xf32> to vector<8x12xf32>
    %431 = arith.addf %429, %430 : vector<8x12xf32>
    %432 = vector.extract_strided_slice %428 {offsets = [0, 0], sizes = [8, 4], strides = [1, 1]} : vector<8x12xf32> to vector<8x4xf32>
    %433 = vector.extract_strided_slice %428 {offsets = [0, 4], sizes = [8, 4], strides = [1, 1]} : vector<8x12xf32> to vector<8x4xf32>
    %434 = vector.extract_strided_slice %428 {offsets = [0, 8], sizes = [8, 4], strides = [1, 1]} : vector<8x12xf32> to vector<8x4xf32>
    %435 = vector.extract_strided_slice %431 {offsets = [0, 0], sizes = [8, 4], strides = [1, 1]} : vector<8x12xf32> to vector<8x4xf32>
    %436 = vector.extract_strided_slice %431 {offsets = [0, 4], sizes = [8, 4], strides = [1, 1]} : vector<8x12xf32> to vector<8x4xf32>
    %437 = vector.extract_strided_slice %431 {offsets = [0, 8], sizes = [8, 4], strides = [1, 1]} : vector<8x12xf32> to vector<8x4xf32>
    %438 = arith.addf %432, %435 : vector<8x4xf32>
    %cst_132 = arith.constant 0.000000e+00 : f32
    %439 = vector.broadcast %cst_132 : f32 to vector<8x4xf32>
    %440 = arith.subf %439, %438 : vector<8x4xf32>
    %441 = math.exp %440 : vector<8x4xf32>
    %cst_133 = arith.constant 1.000000e+00 : f32
    %442 = vector.broadcast %cst_133 : f32 to vector<8x4xf32>
    %443 = arith.addf %442, %441 : vector<8x4xf32>
    %cst_134 = arith.constant 1.000000e+00 : f32
    %444 = vector.broadcast %cst_134 : f32 to vector<8x4xf32>
    %445 = arith.divf %444, %443 : vector<8x4xf32>
    %446 = arith.addf %433, %436 : vector<8x4xf32>
    %cst_135 = arith.constant 0.000000e+00 : f32
    %447 = vector.broadcast %cst_135 : f32 to vector<8x4xf32>
    %448 = arith.subf %447, %446 : vector<8x4xf32>
    %449 = math.exp %448 : vector<8x4xf32>
    %cst_136 = arith.constant 1.000000e+00 : f32
    %450 = vector.broadcast %cst_136 : f32 to vector<8x4xf32>
    %451 = arith.addf %450, %449 : vector<8x4xf32>
    %cst_137 = arith.constant 1.000000e+00 : f32
    %452 = vector.broadcast %cst_137 : f32 to vector<8x4xf32>
    %453 = arith.divf %452, %451 : vector<8x4xf32>
    %454 = arith.mulf %445, %437 : vector<8x4xf32>
    %455 = arith.addf %434, %454 : vector<8x4xf32>
    %456 = math.tanh %455 : vector<8x4xf32>
    %cst_138 = arith.constant 1.000000e+00 : f32
    %457 = vector.broadcast %cst_138 : f32 to vector<8x4xf32>
    %458 = arith.subf %457, %453 : vector<8x4xf32>
    %459 = arith.mulf %458, %456 : vector<8x4xf32>
    %460 = arith.mulf %453, %424 : vector<8x4xf32>
    %461 = arith.addf %459, %460 : vector<8x4xf32>
    %cst_139 = arith.constant dense<0.000000e+00> : vector<8xf32>
    %462 = vector.multi_reduction <add>, %461, %cst_139 [1] : vector<8x4xf32> to vector<8xf32>
    %463 = vector.shape_cast %462 : vector<8xf32> to vector<8x1xf32>
    %464 = arith.addf %353, %463 : vector<8x1xf32>
    %465 = vector.extract_strided_slice %24 {offsets = [56, 0], sizes = [8, 12], strides = [1, 1]} : vector<80x12xf32> to vector<8x12xf32>
    %cst_140 = arith.constant dense<0.000000e+00> : vector<8x12xf32>
    %466 = tpu.matmul %461, %27, %cst_140 {dimension_numbers = #tpu.dot_dimension_numbers<[1], [0], [0], [1], [0, 0, 1, 1], [], []>} : vector<8x4xf32>, vector<4x12xf32>, vector<8x12xf32> -> vector<8x12xf32>
    %467 = vector.broadcast %28 : vector<1x12xf32> to vector<8x12xf32>
    %468 = arith.addf %466, %467 : vector<8x12xf32>
    %469 = vector.extract_strided_slice %465 {offsets = [0, 0], sizes = [8, 4], strides = [1, 1]} : vector<8x12xf32> to vector<8x4xf32>
    %470 = vector.extract_strided_slice %465 {offsets = [0, 4], sizes = [8, 4], strides = [1, 1]} : vector<8x12xf32> to vector<8x4xf32>
    %471 = vector.extract_strided_slice %465 {offsets = [0, 8], sizes = [8, 4], strides = [1, 1]} : vector<8x12xf32> to vector<8x4xf32>
    %472 = vector.extract_strided_slice %468 {offsets = [0, 0], sizes = [8, 4], strides = [1, 1]} : vector<8x12xf32> to vector<8x4xf32>
    %473 = vector.extract_strided_slice %468 {offsets = [0, 4], sizes = [8, 4], strides = [1, 1]} : vector<8x12xf32> to vector<8x4xf32>
    %474 = vector.extract_strided_slice %468 {offsets = [0, 8], sizes = [8, 4], strides = [1, 1]} : vector<8x12xf32> to vector<8x4xf32>
    %475 = arith.addf %469, %472 : vector<8x4xf32>
    %cst_141 = arith.constant 0.000000e+00 : f32
    %476 = vector.broadcast %cst_141 : f32 to vector<8x4xf32>
    %477 = arith.subf %476, %475 : vector<8x4xf32>
    %478 = math.exp %477 : vector<8x4xf32>
    %cst_142 = arith.constant 1.000000e+00 : f32
    %479 = vector.broadcast %cst_142 : f32 to vector<8x4xf32>
    %480 = arith.addf %479, %478 : vector<8x4xf32>
    %cst_143 = arith.constant 1.000000e+00 : f32
    %481 = vector.broadcast %cst_143 : f32 to vector<8x4xf32>
    %482 = arith.divf %481, %480 : vector<8x4xf32>
    %483 = arith.addf %470, %473 : vector<8x4xf32>
    %cst_144 = arith.constant 0.000000e+00 : f32
    %484 = vector.broadcast %cst_144 : f32 to vector<8x4xf32>
    %485 = arith.subf %484, %483 : vector<8x4xf32>
    %486 = math.exp %485 : vector<8x4xf32>
    %cst_145 = arith.constant 1.000000e+00 : f32
    %487 = vector.broadcast %cst_145 : f32 to vector<8x4xf32>
    %488 = arith.addf %487, %486 : vector<8x4xf32>
    %cst_146 = arith.constant 1.000000e+00 : f32
    %489 = vector.broadcast %cst_146 : f32 to vector<8x4xf32>
    %490 = arith.divf %489, %488 : vector<8x4xf32>
    %491 = arith.mulf %482, %474 : vector<8x4xf32>
    %492 = arith.addf %471, %491 : vector<8x4xf32>
    %493 = math.tanh %492 : vector<8x4xf32>
    %cst_147 = arith.constant 1.000000e+00 : f32
    %494 = vector.broadcast %cst_147 : f32 to vector<8x4xf32>
    %495 = arith.subf %494, %490 : vector<8x4xf32>
    %496 = arith.mulf %495, %493 : vector<8x4xf32>
    %497 = arith.mulf %490, %461 : vector<8x4xf32>
    %498 = arith.addf %496, %497 : vector<8x4xf32>
    %cst_148 = arith.constant dense<0.000000e+00> : vector<8xf32>
    %499 = vector.multi_reduction <add>, %498, %cst_148 [1] : vector<8x4xf32> to vector<8xf32>
    %500 = vector.shape_cast %499 : vector<8xf32> to vector<8x1xf32>
    %501 = arith.addf %317, %500 : vector<8x1xf32>
    %502 = vector.extract_strided_slice %24 {offsets = [48, 0], sizes = [8, 12], strides = [1, 1]} : vector<80x12xf32> to vector<8x12xf32>
    %cst_149 = arith.constant dense<0.000000e+00> : vector<8x12xf32>
    %503 = tpu.matmul %498, %27, %cst_149 {dimension_numbers = #tpu.dot_dimension_numbers<[1], [0], [0], [1], [0, 0, 1, 1], [], []>} : vector<8x4xf32>, vector<4x12xf32>, vector<8x12xf32> -> vector<8x12xf32>
    %504 = vector.broadcast %28 : vector<1x12xf32> to vector<8x12xf32>
    %505 = arith.addf %503, %504 : vector<8x12xf32>
    %506 = vector.extract_strided_slice %502 {offsets = [0, 0], sizes = [8, 4], strides = [1, 1]} : vector<8x12xf32> to vector<8x4xf32>
    %507 = vector.extract_strided_slice %502 {offsets = [0, 4], sizes = [8, 4], strides = [1, 1]} : vector<8x12xf32> to vector<8x4xf32>
    %508 = vector.extract_strided_slice %502 {offsets = [0, 8], sizes = [8, 4], strides = [1, 1]} : vector<8x12xf32> to vector<8x4xf32>
    %509 = vector.extract_strided_slice %505 {offsets = [0, 0], sizes = [8, 4], strides = [1, 1]} : vector<8x12xf32> to vector<8x4xf32>
    %510 = vector.extract_strided_slice %505 {offsets = [0, 4], sizes = [8, 4], strides = [1, 1]} : vector<8x12xf32> to vector<8x4xf32>
    %511 = vector.extract_strided_slice %505 {offsets = [0, 8], sizes = [8, 4], strides = [1, 1]} : vector<8x12xf32> to vector<8x4xf32>
    %512 = arith.addf %506, %509 : vector<8x4xf32>
    %cst_150 = arith.constant 0.000000e+00 : f32
    %513 = vector.broadcast %cst_150 : f32 to vector<8x4xf32>
    %514 = arith.subf %513, %512 : vector<8x4xf32>
    %515 = math.exp %514 : vector<8x4xf32>
    %cst_151 = arith.constant 1.000000e+00 : f32
    %516 = vector.broadcast %cst_151 : f32 to vector<8x4xf32>
    %517 = arith.addf %516, %515 : vector<8x4xf32>
    %cst_152 = arith.constant 1.000000e+00 : f32
    %518 = vector.broadcast %cst_152 : f32 to vector<8x4xf32>
    %519 = arith.divf %518, %517 : vector<8x4xf32>
    %520 = arith.addf %507, %510 : vector<8x4xf32>
    %cst_153 = arith.constant 0.000000e+00 : f32
    %521 = vector.broadcast %cst_153 : f32 to vector<8x4xf32>
    %522 = arith.subf %521, %520 : vector<8x4xf32>
    %523 = math.exp %522 : vector<8x4xf32>
    %cst_154 = arith.constant 1.000000e+00 : f32
    %524 = vector.broadcast %cst_154 : f32 to vector<8x4xf32>
    %525 = arith.addf %524, %523 : vector<8x4xf32>
    %cst_155 = arith.constant 1.000000e+00 : f32
    %526 = vector.broadcast %cst_155 : f32 to vector<8x4xf32>
    %527 = arith.divf %526, %525 : vector<8x4xf32>
    %528 = arith.mulf %519, %511 : vector<8x4xf32>
    %529 = arith.addf %508, %528 : vector<8x4xf32>
    %530 = math.tanh %529 : vector<8x4xf32>
    %cst_156 = arith.constant 1.000000e+00 : f32
    %531 = vector.broadcast %cst_156 : f32 to vector<8x4xf32>
    %532 = arith.subf %531, %527 : vector<8x4xf32>
    %533 = arith.mulf %532, %530 : vector<8x4xf32>
    %534 = arith.mulf %527, %498 : vector<8x4xf32>
    %535 = arith.addf %533, %534 : vector<8x4xf32>
    %cst_157 = arith.constant dense<0.000000e+00> : vector<8xf32>
    %536 = vector.multi_reduction <add>, %535, %cst_157 [1] : vector<8x4xf32> to vector<8xf32>
    %537 = vector.shape_cast %536 : vector<8xf32> to vector<8x1xf32>
    %538 = arith.addf %281, %537 : vector<8x1xf32>
    %539 = vector.extract_strided_slice %24 {offsets = [40, 0], sizes = [8, 12], strides = [1, 1]} : vector<80x12xf32> to vector<8x12xf32>
    %cst_158 = arith.constant dense<0.000000e+00> : vector<8x12xf32>
    %540 = tpu.matmul %535, %27, %cst_158 {dimension_numbers = #tpu.dot_dimension_numbers<[1], [0], [0], [1], [0, 0, 1, 1], [], []>} : vector<8x4xf32>, vector<4x12xf32>, vector<8x12xf32> -> vector<8x12xf32>
    %541 = vector.broadcast %28 : vector<1x12xf32> to vector<8x12xf32>
    %542 = arith.addf %540, %541 : vector<8x12xf32>
    %543 = vector.extract_strided_slice %539 {offsets = [0, 0], sizes = [8, 4], strides = [1, 1]} : vector<8x12xf32> to vector<8x4xf32>
    %544 = vector.extract_strided_slice %539 {offsets = [0, 4], sizes = [8, 4], strides = [1, 1]} : vector<8x12xf32> to vector<8x4xf32>
    %545 = vector.extract_strided_slice %539 {offsets = [0, 8], sizes = [8, 4], strides = [1, 1]} : vector<8x12xf32> to vector<8x4xf32>
    %546 = vector.extract_strided_slice %542 {offsets = [0, 0], sizes = [8, 4], strides = [1, 1]} : vector<8x12xf32> to vector<8x4xf32>
    %547 = vector.extract_strided_slice %542 {offsets = [0, 4], sizes = [8, 4], strides = [1, 1]} : vector<8x12xf32> to vector<8x4xf32>
    %548 = vector.extract_strided_slice %542 {offsets = [0, 8], sizes = [8, 4], strides = [1, 1]} : vector<8x12xf32> to vector<8x4xf32>
    %549 = arith.addf %543, %546 : vector<8x4xf32>
    %cst_159 = arith.constant 0.000000e+00 : f32
    %550 = vector.broadcast %cst_159 : f32 to vector<8x4xf32>
    %551 = arith.subf %550, %549 : vector<8x4xf32>
    %552 = math.exp %551 : vector<8x4xf32>
    %cst_160 = arith.constant 1.000000e+00 : f32
    %553 = vector.broadcast %cst_160 : f32 to vector<8x4xf32>
    %554 = arith.addf %553, %552 : vector<8x4xf32>
    %cst_161 = arith.constant 1.000000e+00 : f32
    %555 = vector.broadcast %cst_161 : f32 to vector<8x4xf32>
    %556 = arith.divf %555, %554 : vector<8x4xf32>
    %557 = arith.addf %544, %547 : vector<8x4xf32>
    %cst_162 = arith.constant 0.000000e+00 : f32
    %558 = vector.broadcast %cst_162 : f32 to vector<8x4xf32>
    %559 = arith.subf %558, %557 : vector<8x4xf32>
    %560 = math.exp %559 : vector<8x4xf32>
    %cst_163 = arith.constant 1.000000e+00 : f32
    %561 = vector.broadcast %cst_163 : f32 to vector<8x4xf32>
    %562 = arith.addf %561, %560 : vector<8x4xf32>
    %cst_164 = arith.constant 1.000000e+00 : f32
    %563 = vector.broadcast %cst_164 : f32 to vector<8x4xf32>
    %564 = arith.divf %563, %562 : vector<8x4xf32>
    %565 = arith.mulf %556, %548 : vector<8x4xf32>
    %566 = arith.addf %545, %565 : vector<8x4xf32>
    %567 = math.tanh %566 : vector<8x4xf32>
    %cst_165 = arith.constant 1.000000e+00 : f32
    %568 = vector.broadcast %cst_165 : f32 to vector<8x4xf32>
    %569 = arith.subf %568, %564 : vector<8x4xf32>
    %570 = arith.mulf %569, %567 : vector<8x4xf32>
    %571 = arith.mulf %564, %535 : vector<8x4xf32>
    %572 = arith.addf %570, %571 : vector<8x4xf32>
    %cst_166 = arith.constant dense<0.000000e+00> : vector<8xf32>
    %573 = vector.multi_reduction <add>, %572, %cst_166 [1] : vector<8x4xf32> to vector<8xf32>
    %574 = vector.shape_cast %573 : vector<8xf32> to vector<8x1xf32>
    %575 = arith.addf %245, %574 : vector<8x1xf32>
    %576 = vector.extract_strided_slice %24 {offsets = [32, 0], sizes = [8, 12], strides = [1, 1]} : vector<80x12xf32> to vector<8x12xf32>
    %cst_167 = arith.constant dense<0.000000e+00> : vector<8x12xf32>
    %577 = tpu.matmul %572, %27, %cst_167 {dimension_numbers = #tpu.dot_dimension_numbers<[1], [0], [0], [1], [0, 0, 1, 1], [], []>} : vector<8x4xf32>, vector<4x12xf32>, vector<8x12xf32> -> vector<8x12xf32>
    %578 = vector.broadcast %28 : vector<1x12xf32> to vector<8x12xf32>
    %579 = arith.addf %577, %578 : vector<8x12xf32>
    %580 = vector.extract_strided_slice %576 {offsets = [0, 0], sizes = [8, 4], strides = [1, 1]} : vector<8x12xf32> to vector<8x4xf32>
    %581 = vector.extract_strided_slice %576 {offsets = [0, 4], sizes = [8, 4], strides = [1, 1]} : vector<8x12xf32> to vector<8x4xf32>
    %582 = vector.extract_strided_slice %576 {offsets = [0, 8], sizes = [8, 4], strides = [1, 1]} : vector<8x12xf32> to vector<8x4xf32>
    %583 = vector.extract_strided_slice %579 {offsets = [0, 0], sizes = [8, 4], strides = [1, 1]} : vector<8x12xf32> to vector<8x4xf32>
    %584 = vector.extract_strided_slice %579 {offsets = [0, 4], sizes = [8, 4], strides = [1, 1]} : vector<8x12xf32> to vector<8x4xf32>
    %585 = vector.extract_strided_slice %579 {offsets = [0, 8], sizes = [8, 4], strides = [1, 1]} : vector<8x12xf32> to vector<8x4xf32>
    %586 = arith.addf %580, %583 : vector<8x4xf32>
    %cst_168 = arith.constant 0.000000e+00 : f32
    %587 = vector.broadcast %cst_168 : f32 to vector<8x4xf32>
    %588 = arith.subf %587, %586 : vector<8x4xf32>
    %589 = math.exp %588 : vector<8x4xf32>
    %cst_169 = arith.constant 1.000000e+00 : f32
    %590 = vector.broadcast %cst_169 : f32 to vector<8x4xf32>
    %591 = arith.addf %590, %589 : vector<8x4xf32>
    %cst_170 = arith.constant 1.000000e+00 : f32
    %592 = vector.broadcast %cst_170 : f32 to vector<8x4xf32>
    %593 = arith.divf %592, %591 : vector<8x4xf32>
    %594 = arith.addf %581, %584 : vector<8x4xf32>
    %cst_171 = arith.constant 0.000000e+00 : f32
    %595 = vector.broadcast %cst_171 : f32 to vector<8x4xf32>
    %596 = arith.subf %595, %594 : vector<8x4xf32>
    %597 = math.exp %596 : vector<8x4xf32>
    %cst_172 = arith.constant 1.000000e+00 : f32
    %598 = vector.broadcast %cst_172 : f32 to vector<8x4xf32>
    %599 = arith.addf %598, %597 : vector<8x4xf32>
    %cst_173 = arith.constant 1.000000e+00 : f32
    %600 = vector.broadcast %cst_173 : f32 to vector<8x4xf32>
    %601 = arith.divf %600, %599 : vector<8x4xf32>
    %602 = arith.mulf %593, %585 : vector<8x4xf32>
    %603 = arith.addf %582, %602 : vector<8x4xf32>
    %604 = math.tanh %603 : vector<8x4xf32>
    %cst_174 = arith.constant 1.000000e+00 : f32
    %605 = vector.broadcast %cst_174 : f32 to vector<8x4xf32>
    %606 = arith.subf %605, %601 : vector<8x4xf32>
    %607 = arith.mulf %606, %604 : vector<8x4xf32>
    %608 = arith.mulf %601, %572 : vector<8x4xf32>
    %609 = arith.addf %607, %608 : vector<8x4xf32>
    %cst_175 = arith.constant dense<0.000000e+00> : vector<8xf32>
    %610 = vector.multi_reduction <add>, %609, %cst_175 [1] : vector<8x4xf32> to vector<8xf32>
    %611 = vector.shape_cast %610 : vector<8xf32> to vector<8x1xf32>
    %612 = arith.addf %209, %611 : vector<8x1xf32>
    %613 = vector.extract_strided_slice %24 {offsets = [24, 0], sizes = [8, 12], strides = [1, 1]} : vector<80x12xf32> to vector<8x12xf32>
    %cst_176 = arith.constant dense<0.000000e+00> : vector<8x12xf32>
    %614 = tpu.matmul %609, %27, %cst_176 {dimension_numbers = #tpu.dot_dimension_numbers<[1], [0], [0], [1], [0, 0, 1, 1], [], []>} : vector<8x4xf32>, vector<4x12xf32>, vector<8x12xf32> -> vector<8x12xf32>
    %615 = vector.broadcast %28 : vector<1x12xf32> to vector<8x12xf32>
    %616 = arith.addf %614, %615 : vector<8x12xf32>
    %617 = vector.extract_strided_slice %613 {offsets = [0, 0], sizes = [8, 4], strides = [1, 1]} : vector<8x12xf32> to vector<8x4xf32>
    %618 = vector.extract_strided_slice %613 {offsets = [0, 4], sizes = [8, 4], strides = [1, 1]} : vector<8x12xf32> to vector<8x4xf32>
    %619 = vector.extract_strided_slice %613 {offsets = [0, 8], sizes = [8, 4], strides = [1, 1]} : vector<8x12xf32> to vector<8x4xf32>
    %620 = vector.extract_strided_slice %616 {offsets = [0, 0], sizes = [8, 4], strides = [1, 1]} : vector<8x12xf32> to vector<8x4xf32>
    %621 = vector.extract_strided_slice %616 {offsets = [0, 4], sizes = [8, 4], strides = [1, 1]} : vector<8x12xf32> to vector<8x4xf32>
    %622 = vector.extract_strided_slice %616 {offsets = [0, 8], sizes = [8, 4], strides = [1, 1]} : vector<8x12xf32> to vector<8x4xf32>
    %623 = arith.addf %617, %620 : vector<8x4xf32>
    %cst_177 = arith.constant 0.000000e+00 : f32
    %624 = vector.broadcast %cst_177 : f32 to vector<8x4xf32>
    %625 = arith.subf %624, %623 : vector<8x4xf32>
    %626 = math.exp %625 : vector<8x4xf32>
    %cst_178 = arith.constant 1.000000e+00 : f32
    %627 = vector.broadcast %cst_178 : f32 to vector<8x4xf32>
    %628 = arith.addf %627, %626 : vector<8x4xf32>
    %cst_179 = arith.constant 1.000000e+00 : f32
    %629 = vector.broadcast %cst_179 : f32 to vector<8x4xf32>
    %630 = arith.divf %629, %628 : vector<8x4xf32>
    %631 = arith.addf %618, %621 : vector<8x4xf32>
    %cst_180 = arith.constant 0.000000e+00 : f32
    %632 = vector.broadcast %cst_180 : f32 to vector<8x4xf32>
    %633 = arith.subf %632, %631 : vector<8x4xf32>
    %634 = math.exp %633 : vector<8x4xf32>
    %cst_181 = arith.constant 1.000000e+00 : f32
    %635 = vector.broadcast %cst_181 : f32 to vector<8x4xf32>
    %636 = arith.addf %635, %634 : vector<8x4xf32>
    %cst_182 = arith.constant 1.000000e+00 : f32
    %637 = vector.broadcast %cst_182 : f32 to vector<8x4xf32>
    %638 = arith.divf %637, %636 : vector<8x4xf32>
    %639 = arith.mulf %630, %622 : vector<8x4xf32>
    %640 = arith.addf %619, %639 : vector<8x4xf32>
    %641 = math.tanh %640 : vector<8x4xf32>
    %cst_183 = arith.constant 1.000000e+00 : f32
    %642 = vector.broadcast %cst_183 : f32 to vector<8x4xf32>
    %643 = arith.subf %642, %638 : vector<8x4xf32>
    %644 = arith.mulf %643, %641 : vector<8x4xf32>
    %645 = arith.mulf %638, %609 : vector<8x4xf32>
    %646 = arith.addf %644, %645 : vector<8x4xf32>
    %cst_184 = arith.constant dense<0.000000e+00> : vector<8xf32>
    %647 = vector.multi_reduction <add>, %646, %cst_184 [1] : vector<8x4xf32> to vector<8xf32>
    %648 = vector.shape_cast %647 : vector<8xf32> to vector<8x1xf32>
    %649 = arith.addf %173, %648 : vector<8x1xf32>
    %650 = vector.extract_strided_slice %24 {offsets = [16, 0], sizes = [8, 12], strides = [1, 1]} : vector<80x12xf32> to vector<8x12xf32>
    %cst_185 = arith.constant dense<0.000000e+00> : vector<8x12xf32>
    %651 = tpu.matmul %646, %27, %cst_185 {dimension_numbers = #tpu.dot_dimension_numbers<[1], [0], [0], [1], [0, 0, 1, 1], [], []>} : vector<8x4xf32>, vector<4x12xf32>, vector<8x12xf32> -> vector<8x12xf32>
    %652 = vector.broadcast %28 : vector<1x12xf32> to vector<8x12xf32>
    %653 = arith.addf %651, %652 : vector<8x12xf32>
    %654 = vector.extract_strided_slice %650 {offsets = [0, 0], sizes = [8, 4], strides = [1, 1]} : vector<8x12xf32> to vector<8x4xf32>
    %655 = vector.extract_strided_slice %650 {offsets = [0, 4], sizes = [8, 4], strides = [1, 1]} : vector<8x12xf32> to vector<8x4xf32>
    %656 = vector.extract_strided_slice %650 {offsets = [0, 8], sizes = [8, 4], strides = [1, 1]} : vector<8x12xf32> to vector<8x4xf32>
    %657 = vector.extract_strided_slice %653 {offsets = [0, 0], sizes = [8, 4], strides = [1, 1]} : vector<8x12xf32> to vector<8x4xf32>
    %658 = vector.extract_strided_slice %653 {offsets = [0, 4], sizes = [8, 4], strides = [1, 1]} : vector<8x12xf32> to vector<8x4xf32>
    %659 = vector.extract_strided_slice %653 {offsets = [0, 8], sizes = [8, 4], strides = [1, 1]} : vector<8x12xf32> to vector<8x4xf32>
    %660 = arith.addf %654, %657 : vector<8x4xf32>
    %cst_186 = arith.constant 0.000000e+00 : f32
    %661 = vector.broadcast %cst_186 : f32 to vector<8x4xf32>
    %662 = arith.subf %661, %660 : vector<8x4xf32>
    %663 = math.exp %662 : vector<8x4xf32>
    %cst_187 = arith.constant 1.000000e+00 : f32
    %664 = vector.broadcast %cst_187 : f32 to vector<8x4xf32>
    %665 = arith.addf %664, %663 : vector<8x4xf32>
    %cst_188 = arith.constant 1.000000e+00 : f32
    %666 = vector.broadcast %cst_188 : f32 to vector<8x4xf32>
    %667 = arith.divf %666, %665 : vector<8x4xf32>
    %668 = arith.addf %655, %658 : vector<8x4xf32>
    %cst_189 = arith.constant 0.000000e+00 : f32
    %669 = vector.broadcast %cst_189 : f32 to vector<8x4xf32>
    %670 = arith.subf %669, %668 : vector<8x4xf32>
    %671 = math.exp %670 : vector<8x4xf32>
    %cst_190 = arith.constant 1.000000e+00 : f32
    %672 = vector.broadcast %cst_190 : f32 to vector<8x4xf32>
    %673 = arith.addf %672, %671 : vector<8x4xf32>
    %cst_191 = arith.constant 1.000000e+00 : f32
    %674 = vector.broadcast %cst_191 : f32 to vector<8x4xf32>
    %675 = arith.divf %674, %673 : vector<8x4xf32>
    %676 = arith.mulf %667, %659 : vector<8x4xf32>
    %677 = arith.addf %656, %676 : vector<8x4xf32>
    %678 = math.tanh %677 : vector<8x4xf32>
    %cst_192 = arith.constant 1.000000e+00 : f32
    %679 = vector.broadcast %cst_192 : f32 to vector<8x4xf32>
    %680 = arith.subf %679, %675 : vector<8x4xf32>
    %681 = arith.mulf %680, %678 : vector<8x4xf32>
    %682 = arith.mulf %675, %646 : vector<8x4xf32>
    %683 = arith.addf %681, %682 : vector<8x4xf32>
    %cst_193 = arith.constant dense<0.000000e+00> : vector<8xf32>
    %684 = vector.multi_reduction <add>, %683, %cst_193 [1] : vector<8x4xf32> to vector<8xf32>
    %685 = vector.shape_cast %684 : vector<8xf32> to vector<8x1xf32>
    %686 = arith.addf %137, %685 : vector<8x1xf32>
    %687 = vector.extract_strided_slice %24 {offsets = [8, 0], sizes = [8, 12], strides = [1, 1]} : vector<80x12xf32> to vector<8x12xf32>
    %cst_194 = arith.constant dense<0.000000e+00> : vector<8x12xf32>
    %688 = tpu.matmul %683, %27, %cst_194 {dimension_numbers = #tpu.dot_dimension_numbers<[1], [0], [0], [1], [0, 0, 1, 1], [], []>} : vector<8x4xf32>, vector<4x12xf32>, vector<8x12xf32> -> vector<8x12xf32>
    %689 = vector.broadcast %28 : vector<1x12xf32> to vector<8x12xf32>
    %690 = arith.addf %688, %689 : vector<8x12xf32>
    %691 = vector.extract_strided_slice %687 {offsets = [0, 0], sizes = [8, 4], strides = [1, 1]} : vector<8x12xf32> to vector<8x4xf32>
    %692 = vector.extract_strided_slice %687 {offsets = [0, 4], sizes = [8, 4], strides = [1, 1]} : vector<8x12xf32> to vector<8x4xf32>
    %693 = vector.extract_strided_slice %687 {offsets = [0, 8], sizes = [8, 4], strides = [1, 1]} : vector<8x12xf32> to vector<8x4xf32>
    %694 = vector.extract_strided_slice %690 {offsets = [0, 0], sizes = [8, 4], strides = [1, 1]} : vector<8x12xf32> to vector<8x4xf32>
    %695 = vector.extract_strided_slice %690 {offsets = [0, 4], sizes = [8, 4], strides = [1, 1]} : vector<8x12xf32> to vector<8x4xf32>
    %696 = vector.extract_strided_slice %690 {offsets = [0, 8], sizes = [8, 4], strides = [1, 1]} : vector<8x12xf32> to vector<8x4xf32>
    %697 = arith.addf %691, %694 : vector<8x4xf32>
    %cst_195 = arith.constant 0.000000e+00 : f32
    %698 = vector.broadcast %cst_195 : f32 to vector<8x4xf32>
    %699 = arith.subf %698, %697 : vector<8x4xf32>
    %700 = math.exp %699 : vector<8x4xf32>
    %cst_196 = arith.constant 1.000000e+00 : f32
    %701 = vector.broadcast %cst_196 : f32 to vector<8x4xf32>
    %702 = arith.addf %701, %700 : vector<8x4xf32>
    %cst_197 = arith.constant 1.000000e+00 : f32
    %703 = vector.broadcast %cst_197 : f32 to vector<8x4xf32>
    %704 = arith.divf %703, %702 : vector<8x4xf32>
    %705 = arith.addf %692, %695 : vector<8x4xf32>
    %cst_198 = arith.constant 0.000000e+00 : f32
    %706 = vector.broadcast %cst_198 : f32 to vector<8x4xf32>
    %707 = arith.subf %706, %705 : vector<8x4xf32>
    %708 = math.exp %707 : vector<8x4xf32>
    %cst_199 = arith.constant 1.000000e+00 : f32
    %709 = vector.broadcast %cst_199 : f32 to vector<8x4xf32>
    %710 = arith.addf %709, %708 : vector<8x4xf32>
    %cst_200 = arith.constant 1.000000e+00 : f32
    %711 = vector.broadcast %cst_200 : f32 to vector<8x4xf32>
    %712 = arith.divf %711, %710 : vector<8x4xf32>
    %713 = arith.mulf %704, %696 : vector<8x4xf32>
    %714 = arith.addf %693, %713 : vector<8x4xf32>
    %715 = math.tanh %714 : vector<8x4xf32>
    %cst_201 = arith.constant 1.000000e+00 : f32
    %716 = vector.broadcast %cst_201 : f32 to vector<8x4xf32>
    %717 = arith.subf %716, %712 : vector<8x4xf32>
    %718 = arith.mulf %717, %715 : vector<8x4xf32>
    %719 = arith.mulf %712, %683 : vector<8x4xf32>
    %720 = arith.addf %718, %719 : vector<8x4xf32>
    %cst_202 = arith.constant dense<0.000000e+00> : vector<8xf32>
    %721 = vector.multi_reduction <add>, %720, %cst_202 [1] : vector<8x4xf32> to vector<8xf32>
    %722 = vector.shape_cast %721 : vector<8xf32> to vector<8x1xf32>
    %723 = arith.addf %101, %722 : vector<8x1xf32>
    %724 = vector.extract_strided_slice %24 {offsets = [0, 0], sizes = [8, 12], strides = [1, 1]} : vector<80x12xf32> to vector<8x12xf32>
    %cst_203 = arith.constant dense<0.000000e+00> : vector<8x12xf32>
    %725 = tpu.matmul %720, %27, %cst_203 {dimension_numbers = #tpu.dot_dimension_numbers<[1], [0], [0], [1], [0, 0, 1, 1], [], []>} : vector<8x4xf32>, vector<4x12xf32>, vector<8x12xf32> -> vector<8x12xf32>
    %726 = vector.broadcast %28 : vector<1x12xf32> to vector<8x12xf32>
    %727 = arith.addf %725, %726 : vector<8x12xf32>
    %728 = vector.extract_strided_slice %724 {offsets = [0, 0], sizes = [8, 4], strides = [1, 1]} : vector<8x12xf32> to vector<8x4xf32>
    %729 = vector.extract_strided_slice %724 {offsets = [0, 4], sizes = [8, 4], strides = [1, 1]} : vector<8x12xf32> to vector<8x4xf32>
    %730 = vector.extract_strided_slice %724 {offsets = [0, 8], sizes = [8, 4], strides = [1, 1]} : vector<8x12xf32> to vector<8x4xf32>
    %731 = vector.extract_strided_slice %727 {offsets = [0, 0], sizes = [8, 4], strides = [1, 1]} : vector<8x12xf32> to vector<8x4xf32>
    %732 = vector.extract_strided_slice %727 {offsets = [0, 4], sizes = [8, 4], strides = [1, 1]} : vector<8x12xf32> to vector<8x4xf32>
    %733 = vector.extract_strided_slice %727 {offsets = [0, 8], sizes = [8, 4], strides = [1, 1]} : vector<8x12xf32> to vector<8x4xf32>
    %734 = arith.addf %728, %731 : vector<8x4xf32>
    %cst_204 = arith.constant 0.000000e+00 : f32
    %735 = vector.broadcast %cst_204 : f32 to vector<8x4xf32>
    %736 = arith.subf %735, %734 : vector<8x4xf32>
    %737 = math.exp %736 : vector<8x4xf32>
    %cst_205 = arith.constant 1.000000e+00 : f32
    %738 = vector.broadcast %cst_205 : f32 to vector<8x4xf32>
    %739 = arith.addf %738, %737 : vector<8x4xf32>
    %cst_206 = arith.constant 1.000000e+00 : f32
    %740 = vector.broadcast %cst_206 : f32 to vector<8x4xf32>
    %741 = arith.divf %740, %739 : vector<8x4xf32>
    %742 = arith.addf %729, %732 : vector<8x4xf32>
    %cst_207 = arith.constant 0.000000e+00 : f32
    %743 = vector.broadcast %cst_207 : f32 to vector<8x4xf32>
    %744 = arith.subf %743, %742 : vector<8x4xf32>
    %745 = math.exp %744 : vector<8x4xf32>
    %cst_208 = arith.constant 1.000000e+00 : f32
    %746 = vector.broadcast %cst_208 : f32 to vector<8x4xf32>
    %747 = arith.addf %746, %745 : vector<8x4xf32>
    %cst_209 = arith.constant 1.000000e+00 : f32
    %748 = vector.broadcast %cst_209 : f32 to vector<8x4xf32>
    %749 = arith.divf %748, %747 : vector<8x4xf32>
    %750 = arith.mulf %741, %733 : vector<8x4xf32>
    %751 = arith.addf %730, %750 : vector<8x4xf32>
    %752 = math.tanh %751 : vector<8x4xf32>
    %cst_210 = arith.constant 1.000000e+00 : f32
    %753 = vector.broadcast %cst_210 : f32 to vector<8x4xf32>
    %754 = arith.subf %753, %749 : vector<8x4xf32>
    %755 = arith.mulf %754, %752 : vector<8x4xf32>
    %756 = arith.mulf %749, %720 : vector<8x4xf32>
    %757 = arith.addf %755, %756 : vector<8x4xf32>
    %cst_211 = arith.constant dense<0.000000e+00> : vector<8xf32>
    %758 = vector.multi_reduction <add>, %757, %cst_211 [1] : vector<8x4xf32> to vector<8xf32>
    %759 = vector.shape_cast %758 : vector<8xf32> to vector<8x1xf32>
    %760 = arith.addf %65, %759 : vector<8x1xf32>
    %761 = tpu.concatenate %760, %723, %686, %649, %612, %575, %538, %501, %464, %427 in 1 : vector<8x1xf32>, vector<8x1xf32>, vector<8x1xf32>, vector<8x1xf32>, vector<8x1xf32>, vector<8x1xf32>, vector<8x1xf32>, vector<8x1xf32>, vector<8x1xf32>, vector<8x1xf32> -> vector<8x10xf32>
    %cst_212 = arith.constant 1.250000e-01 : f32
    %762 = vector.broadcast %cst_212 : f32 to vector<8x10xf32>
    %763 = arith.mulf %761, %762 : vector<8x10xf32>
    %c0_213 = arith.constant 0 : index
    %c0_214 = arith.constant 0 : index
    %764 = vector.load %arg12[%c0_213, %c0_214] : memref<10x256xf32, #tpu.memory_space<vmem>>, vector<10x256xf32>
    %cst_215 = arith.constant dense<0.000000e+00> : vector<8x256xf32>
    %765 = tpu.matmul %763, %764, %cst_215 {dimension_numbers = #tpu.dot_dimension_numbers<[1], [0], [0], [1], [0, 0, 1, 1], [], []>} : vector<8x10xf32>, vector<10x256xf32>, vector<8x256xf32> -> vector<8x256xf32>
    %c0_216 = arith.constant 0 : index
    %c0_217 = arith.constant 0 : index
    %766 = vector.load %arg13[%c0_216, %c0_217] : memref<1x256xf32, #tpu.memory_space<vmem>>, vector<1x256xf32>
    %767 = vector.broadcast %766 : vector<1x256xf32> to vector<8x256xf32>
    %768 = arith.addf %765, %767 : vector<8x256xf32>
    %c0_218 = arith.constant 0 : index
    %c0_219 = arith.constant 0 : index
    %769 = vector.load %arg14[%c0_218, %c0_219] : memref<256x256xf32, #tpu.memory_space<vmem>>, vector<256x256xf32>
    %cst_220 = arith.constant dense<0.000000e+00> : vector<8x256xf32>
    %770 = tpu.matmul %768, %769, %cst_220 {dimension_numbers = #tpu.dot_dimension_numbers<[1], [0], [0], [1], [0, 0, 1, 1], [], []>} : vector<8x256xf32>, vector<256x256xf32>, vector<8x256xf32> -> vector<8x256xf32>
    %c0_221 = arith.constant 0 : index
    %c0_222 = arith.constant 0 : index
    %771 = vector.load %arg15[%c0_221, %c0_222] : memref<1x256xf32, #tpu.memory_space<vmem>>, vector<1x256xf32>
    %772 = vector.broadcast %771 : vector<1x256xf32> to vector<8x256xf32>
    %773 = arith.addf %770, %772 : vector<8x256xf32>
    %c0_223 = arith.constant 0 : index
    %c0_224 = arith.constant 0 : index
    %774 = vector.load %arg17[%c0_223, %c0_224] : memref<256x64xf32, #tpu.memory_space<vmem>>, vector<256x64xf32>
    %cst_225 = arith.constant dense<0.000000e+00> : vector<8x64xf32>
    %775 = tpu.matmul %773, %774, %cst_225 {dimension_numbers = #tpu.dot_dimension_numbers<[1], [0], [0], [1], [0, 0, 1, 1], [], []>} : vector<8x256xf32>, vector<256x64xf32>, vector<8x64xf32> -> vector<8x64xf32>
    %c0_226 = arith.constant 0 : index
    %c0_227 = arith.constant 0 : index
    %776 = vector.load %arg16[%c0_226, %c0_227] : memref<8x8xf32, #tpu.memory_space<vmem>>, vector<8x8xf32>
    %cst_228 = arith.constant dense<0.000000e+00> : vector<8x64xf32>
    %777 = tpu.matmul %776, %775, %cst_228 {dimension_numbers = #tpu.dot_dimension_numbers<[1], [0], [0], [1], [0, 0, 1, 1], [], []>} : vector<8x8xf32>, vector<8x64xf32>, vector<8x64xf32> -> vector<8x64xf32>
    %c0_229 = arith.constant 0 : index
    %c0_230 = arith.constant 0 : index
    %778 = vector.load %arg18[%c0_229, %c0_230] : memref<1x64xf32, #tpu.memory_space<vmem>>, vector<1x64xf32>
    %779 = vector.broadcast %778 : vector<1x64xf32> to vector<8x64xf32>
    %780 = arith.addf %777, %779 : vector<8x64xf32>
    %cst_231 = arith.constant 0.000000e+00 : f32
    %781 = vector.broadcast %cst_231 : f32 to vector<8x64xf32>
    %782 = arith.maximumf %780, %781 : vector<8x64xf32>
    %c0_232 = arith.constant 0 : index
    %c0_233 = arith.constant 0 : index
    %783 = vector.load %arg19[%c0_232, %c0_233] : memref<64x64xf32, #tpu.memory_space<vmem>>, vector<64x64xf32>
    %cst_234 = arith.constant dense<0.000000e+00> : vector<8x64xf32>
    %784 = tpu.matmul %782, %783, %cst_234 {dimension_numbers = #tpu.dot_dimension_numbers<[1], [0], [0], [1], [0, 0, 1, 1], [], []>} : vector<8x64xf32>, vector<64x64xf32>, vector<8x64xf32> -> vector<8x64xf32>
    %c0_235 = arith.constant 0 : index
    %c0_236 = arith.constant 0 : index
    %785 = vector.load %arg20[%c0_235, %c0_236] : memref<1x64xf32, #tpu.memory_space<vmem>>, vector<1x64xf32>
    %786 = vector.broadcast %785 : vector<1x64xf32> to vector<8x64xf32>
    %787 = arith.addf %784, %786 : vector<8x64xf32>
    %cst_237 = arith.constant 0.000000e+00 : f32
    %788 = vector.broadcast %cst_237 : f32 to vector<8x64xf32>
    %789 = arith.maximumf %787, %788 : vector<8x64xf32>
    %c0_238 = arith.constant 0 : index
    %c0_239 = arith.constant 0 : index
    %790 = vector.load %arg21[%c0_238, %c0_239] : memref<1x64xf32, #tpu.memory_space<vmem>>, vector<1x64xf32>
    %791 = vector.broadcast %790 : vector<1x64xf32> to vector<8x64xf32>
    %792 = arith.mulf %789, %791 : vector<8x64xf32>
    %c0_240 = arith.constant 0 : index
    %c0_241 = arith.constant 0 : index
    %793 = vector.load %arg22[%c0_240, %c0_241] : memref<1x64xf32, #tpu.memory_space<vmem>>, vector<1x64xf32>
    %794 = vector.broadcast %793 : vector<1x64xf32> to vector<8x64xf32>
    %795 = arith.addf %792, %794 : vector<8x64xf32>
    %c0_242 = arith.constant 0 : index
    %c0_243 = arith.constant 0 : index
    %796 = vector.load %arg23[%c0_242, %c0_243] : memref<64x64xf32, #tpu.memory_space<vmem>>, vector<64x64xf32>
    %cst_244 = arith.constant dense<0.000000e+00> : vector<8x64xf32>
    %797 = tpu.matmul %795, %796, %cst_244 {dimension_numbers = #tpu.dot_dimension_numbers<[1], [0], [0], [1], [0, 0, 1, 1], [], []>} : vector<8x64xf32>, vector<64x64xf32>, vector<8x64xf32> -> vector<8x64xf32>
    %c0_245 = arith.constant 0 : index
    %c0_246 = arith.constant 0 : index
    %798 = vector.load %arg24[%c0_245, %c0_246] : memref<1x64xf32, #tpu.memory_space<vmem>>, vector<1x64xf32>
    %799 = vector.broadcast %798 : vector<1x64xf32> to vector<8x64xf32>
    %800 = arith.addf %797, %799 : vector<8x64xf32>
    %cst_247 = arith.constant 0.000000e+00 : f32
    %801 = vector.broadcast %cst_247 : f32 to vector<8x64xf32>
    %802 = arith.maximumf %800, %801 : vector<8x64xf32>
    %c0_248 = arith.constant 0 : index
    %c0_249 = arith.constant 0 : index
    %803 = vector.load %arg25[%c0_248, %c0_249] : memref<64x64xf32, #tpu.memory_space<vmem>>, vector<64x64xf32>
    %cst_250 = arith.constant dense<0.000000e+00> : vector<8x64xf32>
    %804 = tpu.matmul %802, %803, %cst_250 {dimension_numbers = #tpu.dot_dimension_numbers<[1], [0], [0], [1], [0, 0, 1, 1], [], []>} : vector<8x64xf32>, vector<64x64xf32>, vector<8x64xf32> -> vector<8x64xf32>
    %c0_251 = arith.constant 0 : index
    %c0_252 = arith.constant 0 : index
    %805 = vector.load %arg26[%c0_251, %c0_252] : memref<1x64xf32, #tpu.memory_space<vmem>>, vector<1x64xf32>
    %806 = vector.broadcast %805 : vector<1x64xf32> to vector<8x64xf32>
    %807 = arith.addf %804, %806 : vector<8x64xf32>
    %c0_253 = arith.constant 0 : index
    %c0_254 = arith.constant 0 : index
    %808 = vector.load %arg27[%c0_253, %c0_254] : memref<6x8xf32, #tpu.memory_space<vmem>>, vector<6x8xf32>
    %cst_255 = arith.constant dense<0.000000e+00> : vector<6x64xf32>
    %809 = tpu.matmul %808, %807, %cst_255 {dimension_numbers = #tpu.dot_dimension_numbers<[1], [0], [0], [1], [0, 0, 1, 1], [], []>} : vector<6x8xf32>, vector<8x64xf32>, vector<6x64xf32> -> vector<6x64xf32>
    %c0_256 = arith.constant 0 : index
    %c0_257 = arith.constant 0 : index
    %810 = vector.load %arg28[%c0_256, %c0_257] : memref<6x8xf32, #tpu.memory_space<vmem>>, vector<6x8xf32>
    %cst_258 = arith.constant dense<0.000000e+00> : vector<6x64xf32>
    %811 = tpu.matmul %810, %807, %cst_258 {dimension_numbers = #tpu.dot_dimension_numbers<[1], [0], [0], [1], [0, 0, 1, 1], [], []>} : vector<6x8xf32>, vector<8x64xf32>, vector<6x64xf32> -> vector<6x64xf32>
    %812 = arith.mulf %809, %811 : vector<6x64xf32>
    %c0_259 = arith.constant 0 : index
    %c0_260 = arith.constant 0 : index
    %813 = vector.load %arg29[%c0_259, %c0_260] : memref<64x128xf32, #tpu.memory_space<vmem>>, vector<64x128xf32>
    %cst_261 = arith.constant dense<0.000000e+00> : vector<6x128xf32>
    %814 = tpu.matmul %812, %813, %cst_261 {dimension_numbers = #tpu.dot_dimension_numbers<[1], [0], [0], [1], [0, 0, 1, 1], [], []>} : vector<6x64xf32>, vector<64x128xf32>, vector<6x128xf32> -> vector<6x128xf32>
    %c0_262 = arith.constant 0 : index
    %c0_263 = arith.constant 0 : index
    %815 = vector.load %arg30[%c0_262, %c0_263] : memref<1x128xf32, #tpu.memory_space<vmem>>, vector<1x128xf32>
    %816 = vector.broadcast %815 : vector<1x128xf32> to vector<6x128xf32>
    %817 = arith.addf %814, %816 : vector<6x128xf32>
    %c0_264 = arith.constant 0 : index
    %c0_265 = arith.constant 0 : index
    %818 = vector.load %arg31[%c0_264, %c0_265] : memref<6x128xf32, #tpu.memory_space<vmem>>, vector<6x128xf32>
    tpu.vector_store %arg31[%c0_264, %c0_265], %817 {strides = array<i32>} : memref<6x128xf32, #tpu.memory_space<vmem>>, vector<6x128xf32>,
    return
  }
  func.func @transform_0(%arg0: i32) -> (i32, i32, i32) {
    %c0_i32 = arith.constant 0 : i32
    %c0_i32_0 = arith.constant 0 : i32
    %c0_i32_1 = arith.constant 0 : i32
    %c0_i32_2 = arith.constant 0 : i32
    return %c0_i32, %c0_i32_0, %c0_i32_1 : i32, i32, i32
  }
  func.func @transform_1(%arg0: i32) -> (i32, i32) {
    %c0_i32 = arith.constant 0 : i32
    %c0_i32_0 = arith.constant 0 : i32
    %c0_i32_1 = arith.constant 0 : i32
    return %c0_i32, %c0_i32_0 : i32, i32
  }
  func.func @transform_2(%arg0: i32) -> (i32, i32) {
    %c0_i32 = arith.constant 0 : i32
    %c0_i32_0 = arith.constant 0 : i32
    %c0_i32_1 = arith.constant 0 : i32
    return %c0_i32, %c0_i32_0 : i32, i32
  }
  func.func @transform_3(%arg0: i32) -> (i32, i32) {
    %c0_i32 = arith.constant 0 : i32
    %c0_i32_0 = arith.constant 0 : i32
    %c0_i32_1 = arith.constant 0 : i32
    return %c0_i32, %c0_i32_0 : i32, i32
  }
  func.func @transform_4(%arg0: i32) -> (i32, i32) {
    %c0_i32 = arith.constant 0 : i32
    %c0_i32_0 = arith.constant 0 : i32
    %c0_i32_1 = arith.constant 0 : i32
    return %c0_i32, %c0_i32_0 : i32, i32
  }
  func.func @transform_5(%arg0: i32) -> (i32, i32) {
    %c0_i32 = arith.constant 0 : i32
    %c0_i32_0 = arith.constant 0 : i32
    %c0_i32_1 = arith.constant 0 : i32
    return %c0_i32, %c0_i32_0 : i32, i32
  }
  func.func @transform_6(%arg0: i32) -> (i32, i32) {
    %c0_i32 = arith.constant 0 : i32
    %c0_i32_0 = arith.constant 0 : i32
    %c0_i32_1 = arith.constant 0 : i32
    return %c0_i32, %c0_i32_0 : i32, i32
  }
  func.func @transform_7(%arg0: i32) -> (i32, i32) {
    %c0_i32 = arith.constant 0 : i32
    %c0_i32_0 = arith.constant 0 : i32
    %c0_i32_1 = arith.constant 0 : i32
    return %c0_i32, %c0_i32_0 : i32, i32
  }
  func.func @transform_8(%arg0: i32) -> (i32, i32) {
    %c0_i32 = arith.constant 0 : i32
    %c0_i32_0 = arith.constant 0 : i32
    %c0_i32_1 = arith.constant 0 : i32
    return %c0_i32, %c0_i32_0 : i32, i32
  }
  func.func @transform_9(%arg0: i32) -> (i32, i32) {
    %c0_i32 = arith.constant 0 : i32
    %c0_i32_0 = arith.constant 0 : i32
    %c0_i32_1 = arith.constant 0 : i32
    return %c0_i32, %c0_i32_0 : i32, i32
  }
  func.func @transform_10(%arg0: i32) -> (i32, i32) {
    %c0_i32 = arith.constant 0 : i32
    %c0_i32_0 = arith.constant 0 : i32
    %c0_i32_1 = arith.constant 0 : i32
    return %c0_i32, %c0_i32_0 : i32, i32
  }
  func.func @transform_11(%arg0: i32) -> (i32, i32) {
    %c0_i32 = arith.constant 0 : i32
    %c0_i32_0 = arith.constant 0 : i32
    %c0_i32_1 = arith.constant 0 : i32
    return %c0_i32, %c0_i32_0 : i32, i32
  }
  func.func @transform_12(%arg0: i32) -> (i32, i32) {
    %c0_i32 = arith.constant 0 : i32
    %c0_i32_0 = arith.constant 0 : i32
    %c0_i32_1 = arith.constant 0 : i32
    return %c0_i32, %c0_i32_0 : i32, i32
  }
  func.func @transform_13(%arg0: i32) -> (i32, i32) {
    %c0_i32 = arith.constant 0 : i32
    %c0_i32_0 = arith.constant 0 : i32
    %c0_i32_1 = arith.constant 0 : i32
    return %c0_i32, %c0_i32_0 : i32, i32
  }
  func.func @transform_14(%arg0: i32) -> (i32, i32) {
    %c0_i32 = arith.constant 0 : i32
    %c0_i32_0 = arith.constant 0 : i32
    %c0_i32_1 = arith.constant 0 : i32
    return %c0_i32, %c0_i32_0 : i32, i32
  }
  func.func @transform_15(%arg0: i32) -> (i32, i32) {
    %c0_i32 = arith.constant 0 : i32
    %c0_i32_0 = arith.constant 0 : i32
    %c0_i32_1 = arith.constant 0 : i32
    return %c0_i32, %c0_i32_0 : i32, i32
  }
  func.func @transform_16(%arg0: i32) -> (i32, i32) {
    %c0_i32 = arith.constant 0 : i32
    %c0_i32_0 = arith.constant 0 : i32
    %c0_i32_1 = arith.constant 0 : i32
    return %c0_i32, %c0_i32_0 : i32, i32
  }
  func.func @transform_17(%arg0: i32) -> (i32, i32) {
    %c0_i32 = arith.constant 0 : i32
    %c0_i32_0 = arith.constant 0 : i32
    %c0_i32_1 = arith.constant 0 : i32
    return %c0_i32, %c0_i32_0 : i32, i32
  }
  func.func @transform_18(%arg0: i32) -> (i32, i32) {
    %c0_i32 = arith.constant 0 : i32
    %c0_i32_0 = arith.constant 0 : i32
    %c0_i32_1 = arith.constant 0 : i32
    return %c0_i32, %c0_i32_0 : i32, i32
  }
  func.func @transform_19(%arg0: i32) -> (i32, i32) {
    %c0_i32 = arith.constant 0 : i32
    %c0_i32_0 = arith.constant 0 : i32
    %c0_i32_1 = arith.constant 0 : i32
    return %c0_i32, %c0_i32_0 : i32, i32
  }
  func.func @transform_20(%arg0: i32) -> (i32, i32) {
    %c0_i32 = arith.constant 0 : i32
    %c0_i32_0 = arith.constant 0 : i32
    %c0_i32_1 = arith.constant 0 : i32
    return %c0_i32, %c0_i32_0 : i32, i32
  }
  func.func @transform_21(%arg0: i32) -> (i32, i32) {
    %c0_i32 = arith.constant 0 : i32
    %c0_i32_0 = arith.constant 0 : i32
    %c0_i32_1 = arith.constant 0 : i32
    return %c0_i32, %c0_i32_0 : i32, i32
  }
  func.func @transform_22(%arg0: i32) -> (i32, i32) {
    %c0_i32 = arith.constant 0 : i32
    %c0_i32_0 = arith.constant 0 : i32
    %c0_i32_1 = arith.constant 0 : i32
    return %c0_i32, %c0_i32_0 : i32, i32
  }
  func.func @transform_23(%arg0: i32) -> (i32, i32) {
    %c0_i32 = arith.constant 0 : i32
    %c0_i32_0 = arith.constant 0 : i32
    %c0_i32_1 = arith.constant 0 : i32
    return %c0_i32, %c0_i32_0 : i32, i32
  }
  func.func @transform_24(%arg0: i32) -> (i32, i32) {
    %c0_i32 = arith.constant 0 : i32
    %c0_i32_0 = arith.constant 0 : i32
    %c0_i32_1 = arith.constant 0 : i32
    return %c0_i32, %c0_i32_0 : i32, i32
  }
  func.func @transform_25(%arg0: i32) -> (i32, i32) {
    %c0_i32 = arith.constant 0 : i32
    %c0_i32_0 = arith.constant 0 : i32
    %c0_i32_1 = arith.constant 0 : i32
    return %c0_i32, %c0_i32_0 : i32, i32
  }
  func.func @transform_26(%arg0: i32) -> (i32, i32) {
    %c0_i32 = arith.constant 0 : i32
    %c0_i32_0 = arith.constant 0 : i32
    %c0_i32_1 = arith.constant 0 : i32
    return %c0_i32, %c0_i32_0 : i32, i32
  }
  func.func @transform_27(%arg0: i32) -> (i32, i32) {
    %c0_i32 = arith.constant 0 : i32
    %c0_i32_0 = arith.constant 0 : i32
    %c0_i32_1 = arith.constant 0 : i32
    return %c0_i32, %c0_i32_0 : i32, i32
  }
  func.func @transform_28(%arg0: i32) -> (i32, i32) {
    %c0_i32 = arith.constant 0 : i32
    %c0_i32_0 = arith.constant 0 : i32
    %c0_i32_1 = arith.constant 0 : i32
    return %c0_i32, %c0_i32_0 : i32, i32
  }
  func.func @transform_29(%arg0: i32) -> (i32, i32) {
    %c0_i32 = arith.constant 0 : i32
    %c0_i32_0 = arith.constant 0 : i32
    %c0_i32_1 = arith.constant 0 : i32
    return %c0_i32, %c0_i32_0 : i32, i32
  }
  func.func @transform_30(%arg0: i32) -> (i32, i32) {
    %c0_i32 = arith.constant 0 : i32
    %c0_i32_0 = arith.constant 0 : i32
    %c0_i32_1 = arith.constant 0 : i32
    return %c0_i32, %c0_i32_0 : i32, i32
  }
}

</mosaic_0001>

<bundles_post_ra>
// kernel: gin_net2_forward.1
= control target key start
LH: loop header
LB: loop body
LE: loop exit
PB: predicated region body
PF: predicated region fallthrough
CT: control target
= control target key end

     0   :  { %s5009_s6 = smov 1   ;;  %s5010_s10 = smov 2   ;;  %s5912_s0 = inlined_call_operand.smem [shape: u32[31], index: -1, kind: input, shape index: {}] }
   0x1   :  { %s5055_s5 = sld [smem:[%s5912_s0]]   ;;  %s5011_s14 = smov 3  }
   0x2   :  { %s5060_s9 = sld [smem:[%s5912_s0 + %s5009_s6]]   ;;  %s5012_s18 = smov 4  }
   0x3   :  { %s5065_s13 = sld [smem:[%s5912_s0 + %s5010_s10]]   ;;  %s5013_s22 = smov 5  }
   0x4   :  { %s5070_s17 = sld [smem:[%s5912_s0 + %s5011_s14]]   ;;  %s5014_s26 = smov 6  }
   0x5   :  { %s5075_s21 = sld [smem:[%s5912_s0 + %s5012_s18]]   ;;  %s5015_s30 = smov 7  }
   0x6   :  { %s5080_s25 = sld [smem:[%s5912_s0 + %s5013_s22]]   ;;  %s5016_s4 = smov 8  }
   0x7   :  { %s5085_s29 = sld [smem:[%s5912_s0 + %s5014_s26]]   ;;  %s5017_s10 = smov 9  }
   0x8   :  { %s5090_s3 = sld [smem:[%s5912_s0 + %s5015_s30]]   ;;  %s5018_s15 = smov 10  }
   0x9   :  { %s5095_s8 = sld [smem:[%s5912_s0 + %s5016_s4]]   ;;  %s5019_s20 = smov 11  }
   0xa   :  { %s5100_s14 = sld [smem:[%s5912_s0 + %s5017_s10]]   ;;  %s5020_s26 = smov 12  }
   0xb   :  { %s5105_s19 = sld [smem:[%s5912_s0 + %s5018_s15]]   ;;  %s5021_s1 = smov 13  }
   0xc   :  { %s5110_s24 = sld [smem:[%s5912_s0 + %s5019_s20]]   ;;  %s5022_s7 = smov 14  }
   0xd   :  { %s5115_s30 = sld [smem:[%s5912_s0 + %s5020_s26]]   ;;  %s5023_s15 = smov 15  }
   0xe   :  { %s5120_s6 = sld [smem:[%s5912_s0 + %s5021_s1]]   ;;  %s5024_s22 = smov 16  }
   0xf   :  { %s5125_s12 = sld [smem:[%s5912_s0 + %s5022_s7]]   ;;  %s5025_s28 = smov 17  }
  0x10   :  { %s5130_s20 = sld [smem:[%s5912_s0 + %s5023_s15]]   ;;  %s5026_s7 = smov 18  }
  0x11   :  { %s5135_s27 = sld [smem:[%s5912_s0 + %s5024_s22]]   ;;  %s5027_s15 = smov 19  }
  0x12   :  { %s5140_s4 = sld [smem:[%s5912_s0 + %s5025_s28]]   ;;  %s5028_s22 = smov 20  }
  0x13   :  { %5916 = sst [smem:[#allocation5_spill]] %s5115_s30  ;;  %s5029_s28 = smov 21  }
  0x14   :  { %s5155_s30 = sld [smem:[%s5912_s0 + %s5028_s22]]   ;;  %s5032_s22 = smov 24  }
  0x15   :  { %5917 = sst [smem:[#allocation6_spill]] %s5125_s12 }
  0x16   :  { %5918 = sst [smem:[#allocation7_spill]] %s5130_s20 }
  0x17   :  { %s5145_s12 = sld [smem:[%s5912_s0 + %s5026_s7]]   ;;  %s5030_s7 = smov 22  }
  0x18   :  { %5919 = sst [smem:[#allocation8_spill]] %s5140_s4 }
  0x19   :  { %s5150_s20 = sld [smem:[%s5912_s0 + %s5027_s15]]   ;;  %s5031_s15 = smov 23  }
  0x1a   :  { %5922 = sst [smem:[#allocation11_spill]] %s5155_s30 }
  0x1b   :  { %s5160_s4 = sld [smem:[%s5912_s0 + %s5029_s28]]   ;;  %s5033_s28 = smov 25  }
  0x1c   :  { %s5175_s30 = sld [smem:[%s5912_s0 + %s5032_s22]]   ;;  %s5036_s22 = smov 28  }
  0x1d   :  { %5920 = sst [smem:[#allocation9_spill]] %s5145_s12 }
  0x1e   :  { %s5165_s12 = sld [smem:[%s5912_s0 + %s5030_s7]]   ;;  %s5034_s7 = smov 26  }
  0x1f   :  { %5921 = sst [smem:[#allocation10_spill]] %s5150_s20 }
  0x20   :  { %s5170_s20 = sld [smem:[%s5912_s0 + %s5031_s15]]   ;;  %s5035_s15 = smov 27  }
  0x21   :  { %5923 = sst [smem:[#allocation12_spill]] %s5160_s4 }
  0x22   :  { %5926 = sst [smem:[#allocation15_spill]] %s5175_s30 }
  0x23   :  { %s5180_s4 = sld [smem:[%s5912_s0 + %s5033_s28]]   ;;  %s5037_s28 = smov 29  }
  0x24   :  { %5924 = sst [smem:[#allocation13_spill]] %s5165_s12 }
  0x25   :  { %s5185_s12 = sld [smem:[%s5912_s0 + %s5034_s7]]   ;;  %s5038_s7 = smov 30  }
  0x26   :  { %5925 = sst [smem:[#allocation14_spill]] %s5170_s20 }
  0x27   :  { %s5190_s20 = sld [smem:[%s5912_s0 + %s5035_s15]]  }
  0x28   :  { %s5195_s30 = sld [smem:[%s5912_s0 + %s5036_s22]]  }
  0x29   :  { %5927 = sst [smem:[#allocation16_spill]] %s5180_s4 }
  0x2a   :  { %s5200_s4 = sld [smem:[%s5912_s0 + %s5037_s28]]  }
  0x2b   :  { %5928 = sst [smem:[#allocation17_spill]] %s5185_s12 }
  0x2c   :  { %s5205_s12 = sld [smem:[%s5912_s0 + %s5038_s7]]  }
  0x2d   :  { %v127_v0 = vld [vmem:[%s5060_s9] sm:$0xff]  ;;  %v128_v1 = vld [vmem:[%s5060_s9 + $0x8] sm:$0xff]  ;;  %vm140_vm0 = vcmask 195584   ;;  %v129_v4 = vld [vmem:[%s5060_s9 + $0x10] sm:$0xff] }
  0x2e   :  { %v4660_v2 = vpack.c.bf16 %v128_v1, %v127_v0  ;;  %v130_v3 = vld [vmem:[%s5055_s5] sm:$0xff]  ;;  %v131_v6 = vld [vmem:[%s5055_s5 + $0x8] sm:$0xff]  ;;  %v132_v7 = vld [vmem:[%s5055_s5 + $0x10] sm:$0xff] }
  0x2f   :  { %4378 = vmatprep.mubr.msk.f32.mxu0 %vm140_vm0, %v130_v3  ;;  %v4074_v5 = vld [vmem:[%s5055_s5 + $0x60] sm:$0xff]  ;;  %v4075_v8 = vld [vmem:[%s5055_s5 + $0x68] sm:$0xff]  ;;  %v4076_v9 = vld [vmem:[%s5055_s5 + $0x70] sm:$0xff] }
  0x30   :  { %4661 = vmatprep.subr.bf16.mxu0 %v4660_v2  ;;  %4822 = vmatprep.subr.bf16.mxu1 %v4660_v2  ;;  %v133_v10 = vld [vmem:[%s5055_s5 + $0x18] sm:$0xff]  ;;  %v134_v11 = vld [vmem:[%s5055_s5 + $0x20] sm:$0xff] }
  0x31   :  { %4663 = vmatpush3.bf16.msra.mxu0 %v4660_v2  ;;  %4824 = vmatpush3.bf16.msra.mxu1 %v4660_v2 }
  0x32   :  { %4376 = vmatprep.subr.mxu0 %v129_v4  ;;  %4823 = vmatprep.subr.mxu1 %v129_v4 }
  0x33   :  { %4402 = vmatprep.mubr.msk.f32.mxu1 %vm140_vm0, %v4074_v5 }
  0x35   :  { %4377 = vmatpush3.msra.mxu0 %v129_v4  ;;  %4825 = vmatpush3.msra.mxu1 %v129_v4 }
  0x36   :  { %4379 = vmatmul.mubr.msk.f32.vlgmr.msra.gmra.mrb[0].mxu0 %vm140_vm0, %v131_v6  ;;  %4665 = vmatprep.subr.bf16.mxu0 %v4660_v2 }
  0x37   :  { %4381 = vmatprep.mubr.msk.f32.mxu0 %vm140_vm0, %v132_v7  ;;  %4667 = vmatpush3.bf16.msra.mxu0 %v4660_v2 }
  0x38   :  { %4403 = vmatmul.mubr.msk.f32.vlgmr.msra.gmra.mrb[0].mxu1 %vm140_vm0, %v4075_v8  ;;  %4397 = vmatprep.subr.mxu0 %v129_v4 }
  0x39   :  { %66 = vsyncpa [#allocation3], 0  ;;  %4405 = vmatprep.mubr.msk.f32.mxu1 %vm140_vm0, %v4076_v9  ;;  %v4077_v12 = vld [vmem:[%s5055_s5 + $0x78] sm:$0xff]  ;;  %v4078_v13 = vld [vmem:[%s5055_s5 + $0x80] sm:$0xff]  ;;  %vm674_vm1 = vcmask 1043456   ;;  %v5039_v36 = vmov 0.0  }
  0x3a   :  { %4382 = vmatmul.mubr.msk.f32.gmra.mrb[2].mxu0 %vm140_vm0, %v133_v10  ;;  %v135_v14 = vld [vmem:[%s5055_s5 + $0x28] sm:$0xff]  ;;  %v136_v15 = vld [vmem:[%s5055_s5 + $0x30] sm:$0xff]  ;;  %v137_v18 = vld [vmem:[%s5055_s5 + $0x38] sm:$0xff]  ;;  %vm643_vm2 = vcmask 31744   ;;  %vm5040_vm3 = vmmov 0   ;;  %s5041_s0 = smov 120  }
  0x3b   :  { %4384 = vmatprep.mubr.msk.f32.mxu0 %vm140_vm0, %v134_v11  ;;  %4398 = vmatpush3.msra.mxu0 %v129_v4  ;;  %v4079_v16 = vld [vmem:[%s5055_s5 + $0x88] sm:$0xff]  ;;  %v4080_v17 = vld [vmem:[%s5055_s5 + $0x90] sm:$0xff]  ;;  %v138_v19 = vld [vmem:[%s5055_s5 + $0x40] sm:$0xff]  ;;  %s5043_s9 = smov 124   ;;  %vm3088_vm4 = vcmask 1041408   ;;  %vm5044_vm5 = vmmov 1  }
  0x3c   :  { %4406 = vmatmul.mubr.msk.f32.gmra.mrb[2].mxu1 %vm140_vm0, %v4077_v12  ;;  %4669 = vmatprep.subr.bf16.mxu0 %v4660_v2  ;;  %v4081_v20 = vld [vmem:[%s5055_s5 + $0x98] sm:$0xff]  ;;  %v139_v21 = vld [vmem:[%s5055_s5 + $0x48] sm:$0xff]  ;;  %v4072_v22 = vld [vmem:[%s5055_s5 + $0x50] sm:$0xff]  ;;  %vm3050_vm7 = vcmask 7168   ;;  %vm3052_vm8 = vcmask 15360   ;;  %vm3054_vm9 = vcmask 23552  }
  0x3d   :  { %4408 = vmatprep.mubr.msk.f32.mxu1 %vm140_vm0, %v4078_v13  ;;  %v4073_v23 = vld [vmem:[%s5055_s5 + $0x58] sm:$0xff]  ;;  %v4092_v24 = vld [vmem:[%s5055_s5 + $0xa0] sm:$0xff]  ;;  %v4093_v25 = vld [vmem:[%s5055_s5 + $0xa8] sm:$0xff]  ;;  %vm3057_vm10 = vcmask 39936   ;;  %vm3059_vm11 = vcmask 48128   ;;  %vm3061_vm12 = vcmask 56320  }
  0x3e   :  { %4385 = vmatmul.mubr.msk.f32.gmra.mrb[4].mxu0 %vm140_vm0, %v135_v14  ;;  %v4094_v26 = vld [vmem:[%s5055_s5 + $0xb0] sm:$0xff]  ;;  %v4095_v27 = vld [vmem:[%s5055_s5 + $0xb8] sm:$0xff]  ;;  %v4096_v28 = vld [vmem:[%s5055_s5 + $0xc0] sm:$0xff]  ;;  %vm3063_vm13 = vcmask 64512   ;;  %vm3065_vm14 = vcmask 72704   ;;  %vm3084_vm15 = vcmask 80896  }
  0x3f   :  { %4387 = vmatprep.mubr.msk.f32.mxu0 %vm140_vm0, %v136_v15  ;;  %v4097_v29 = vld [vmem:[%s5055_s5 + $0xc8] sm:$0xff]  ;;  %v4098_v30 = vld [vmem:[%s5055_s5 + $0xd0] sm:$0xff]  ;;  %v4099_v31 = vld [vmem:[%s5055_s5 + $0xd8] sm:$0xff]  ;;  %s5941_s15 = sld [smem:[#allocation17_spill]] }
  0x40   :  { %4409 = vmatmul.mubr.msk.f32.gmra.mrb[4].mxu1 %vm140_vm0, %v4079_v16  ;;  %v4100_v32 = vld [vmem:[%s5055_s5 + $0xe0] sm:$0xff]  ;;  %v4101_v33 = vld [vmem:[%s5055_s5 + $0xe8] sm:$0xff]  ;;  %s5042_s5 = smov 8   ;;  %vm4673_vm6 = vmpackc.low %vm3088_vm4, %vm5044_vm5 }
  0x41   :  { %4411 = vmatprep.mubr.msk.f32.mxu1 %vm140_vm0, %v4080_v17  ;;  %v635_v34 = vld [vmem:[%s5070_s17] sm:$0xf]  ;;  %s5930_s17 = sld [smem:[#allocation6_spill]] }
  0x42   :  { %4388 = vmatmul.mubr.msk.f32.gmra.mrb[6].mxu0 %vm140_vm0, %v137_v18  ;;  %4435 = vmatprep.subr.msk.mxu1 %vm674_vm1, %v635_v34  ;;  %v793_v35 = vld [vmem:[%s5080_s25] sm:$0xf]  ;;  %s5932_s25 = sld [smem:[#allocation7_spill]] }
  0x43   :  { %4390 = vmatprep.mubr.msk.f32.mxu0 %vm140_vm0, %v138_v19  ;;  %4436 = vmatpush3.msk.msra.mxu1 %vm674_vm1, %v635_v34  ;;  %v4112_v5 = vld [vmem:[%s5065_s13] ss:$0 sm:$0xff]  ;;  %s5929_s13 = sld [smem:[#allocation5_spill]] }
  0x44   :  { %4412 = vmatmul.mubr.msk.f32.gmra.mrb[6].mxu1 %vm140_vm0, %v4081_v20  ;;  %4469 = vmatprep.subr.mxu1 %v5039_v36  ;;  %v5280_v13 = vld [vmem:[%s5090_s3] sm:$0xf]  ;;  %s5934_s3 = sld [smem:[#allocation13_spill]] }
  0x46   :  { %4391 = vmatmul.mubr.msk.f32.gmra.mrb[8].mxu0 %vm140_vm0, %v139_v21 }
  0x47   :  { %4399 = vmatprep.mubr.msk.f32.mxu0 %vm140_vm0, %v4072_v22 }
  0x4a   :  { %4400 = vmatmul.mubr.msk.f32.vlgmr.msra.gmra.mrb[10].mxu0 %vm140_vm0, %v4073_v23 }
  0x4b   :  { %4671 = vmatpush3.bf16.msra.mxu0 %v4660_v2  ;;  %4420 = vmatprep.mubr.msk.f32.mxu0 %vm140_vm0, %v4092_v24 }
  0x4c   :  { %4418 = vmatprep.subr.mxu0 %v129_v4 }
  0x4f   :  { %4419 = vmatpush3.msra.mxu0 %v129_v4 }
  0x50   :  { %4421 = vmatmul.mubr.msk.f32.vlgmr.msra.gmra.mrb[12].mxu0 %vm140_vm0, %v4093_v25  ;;  %4452 = vmatprep.subr.msk.mxu0 %vm674_vm1, %v793_v35 }
  0x51   :  { %4423 = vmatprep.mubr.msk.f32.mxu0 %vm140_vm0, %v4094_v26  ;;  %4453 = vmatpush3.msk.msra.mxu0 %vm674_vm1, %v793_v35  ;;  %v4113_v35 = vld [vmem:[%s5075_s21] ss:$0 sm:$0xff]  ;;  %s5931_s21 = sld [smem:[#allocation9_spill]] }
  0x52   :  { %4494 = vmatprep.subr.mxu0 %v5039_v36 }
  0x54   :  { %4424 = vmatmul.mubr.msk.f32.gmra.mrb[14].mxu0 %vm140_vm0, %v4095_v27 }
  0x55   :  { %4426 = vmatprep.mubr.msk.f32.mxu0 %vm140_vm0, %v4096_v28 }
  0x58   :  { %4427 = vmatmul.mubr.msk.f32.gmra.mrb[16].mxu0 %vm140_vm0, %v4097_v29 }
  0x59   :  { %4429 = vmatprep.mubr.msk.f32.mxu0 %vm140_vm0, %v4098_v30 }
  0x5c   :  { %4430 = vmatmul.mubr.msk.f32.gmra.mrb[18].mxu0 %vm140_vm0, %v4099_v31 }
  0x5d   :  { %4432 = vmatprep.mubr.msk.f32.mxu0 %vm140_vm0, %v4100_v32 }
  0x60   :  { %4433 = vmatmul.mubr.msk.f32.gmra.mrb[20].mxu0 %vm140_vm0, %v4101_v33  ;;  %vm3512_vm0 = vcmask 523264  }
 0x109   :  { %v4380_v37 = vpop.f32.mrb[0].mxu0 }
 0x10a   :  { %v237_v38 = vpop.f32.mrb[1].mxu0 }
 0x10b   :  { %v4404_v39 = vpop.f32.mrb[0].mxu1 }
 0x10c   :  { %v403_v40 = vpop.f32.mrb[1].mxu1 }
 0x10d   :  { %v4383_v41 = vpop.f32.mrb[2].mxu0 }
 0x10e   :  { %v601_v42 = vmax.f32 %v4383_v41, %v4404_v39  ;;  %v247_v43 = vpop.f32.mrb[3].mxu0 }
 0x10f   :  { %v600_v44 = vmax.f32 %v247_v43, %v403_v40  ;;  %v4407_v45 = vpop.f32.mrb[2].mxu1 }
 0x110   :  { %v413_v46 = vpop.f32.mrb[3].mxu1 }
 0x111   :  { %v4386_v47 = vpop.f32.mrb[4].mxu0 }
 0x112   :  { %v603_v48 = vmax.f32 %v4386_v47, %v4407_v45  ;;  %v257_v49 = vpop.f32.mrb[5].mxu0 }
 0x113   :  { %v602_v50 = vmax.f32 %v257_v49, %v413_v46  ;;  %v4410_v51 = vpop.f32.mrb[4].mxu1 }
 0x114   :  { %v423_v52 = vpop.f32.mrb[5].mxu1 }
 0x115   :  { %v4389_v53 = vpop.f32.mrb[6].mxu0 }
 0x116   :  { %v605_v54 = vmax.f32 %v4389_v53, %v4410_v51  ;;  %v267_v55 = vpop.f32.mrb[7].mxu0 }
 0x117   :  { %v604_v56 = vmax.f32 %v267_v55, %v423_v52  ;;  %v4413_v57 = vpop.f32.mrb[6].mxu1 }
 0x118   :  { %v433_v58 = vpop.f32.mrb[7].mxu1 }
 0x119   :  { %v4392_v59 = vpop.f32.mrb[8].mxu0 }
 0x11a   :  { %v607_v60 = vmax.f32 %v4392_v59, %v4413_v57  ;;  %v277_v61 = vpop.f32.mrb[9].mxu0 }
 0x11b   :  { %v606_v62 = vmax.f32 %v277_v61, %v433_v58 }
 0x11d   :  { %v4401_v63 = vpop.f32.mrb[10].mxu0 }
 0x11e   :  { %v599_v0 = vmax.f32 %v4380_v37, %v4401_v63  ;;  %v393_v1 = vpop.f32.mrb[11].mxu0  ;;  %v5320_v37 = vld [vmem:[%s5085_s29] ss:$0 sm:$0xff]  ;;  %s5933_s29 = sld [smem:[#allocation8_spill]] }
 0x11f   :  { %v598_v2 = vmax.f32 %v237_v38, %v393_v1 }
 0x123   :  { %v4422_v3 = vpop.f32.mrb[12].mxu0 }
 0x124   :  { %v609_v4 = vmax.f32 %v599_v0, %v4422_v3  ;;  %v549_v6 = vpop.f32.mrb[13].mxu0 }
 0x125   :  { %v608_v7 = vmax.f32 %v598_v2, %v549_v6 }
 0x126   :  { %v626_v10 = vadd.f32 %v4112_v5, %v609_v4 }
 0x127   :  { %v625_v8 = vadd.f32 %v4112_v5, %v608_v7  ;;  %v4425_v9 = vpop.f32.mrb[14].mxu0 }
 0x128   :  { %v611_v11 = vmax.f32 %v601_v42, %v4425_v9  ;;  %v559_v12 = vpop.f32.mrb[15].mxu0 }
 0x129   :  { %v610_v14 = vmax.f32 %v600_v44, %v559_v12  ;;  %4437 = vmatprep.mubr.msk.f32.mxu1 %vm643_vm2, %v625_v8  ;;  %4454 = vmatprep.mubr.msk.f32.mxu0 %vm643_vm2, %v625_v8  ;;  %v5370_v12 = vld [vmem:[%s5095_s8] ss:$0 sm:$0xff] }
 0x12a   :  { %4438 = vmatmul.mubr.msk.f32.vlgmr.msra.gmra.mrb[8].mxu1 %vm643_vm2, %v626_v10  ;;  %4455 = vmatmul.mubr.msk.f32.vlgmr.msra.gmra.mrb[22].mxu0 %vm643_vm2, %v626_v10  ;;  %v628_v17 = vadd.f32 %v4112_v5, %v611_v11 }
 0x12b   :  { %v627_v15 = vadd.f32 %v4112_v5, %v610_v14  ;;  %v4428_v16 = vpop.f32.mrb[16].mxu0  ;;  %4470 = vmatpush3.msk.msra.mxu1 %vm674_vm1, %v5280_v13  ;;  %4495 = vmatpush3.msk.msra.mxu0 %vm674_vm1, %v5280_v13 }
 0x12c   :  { %v613_v18 = vmax.f32 %v603_v48, %v4428_v16  ;;  %v569_v19 = vpop.f32.mrb[17].mxu0  ;;  %4474 = vmatprep.subr.mxu1 %v5039_v36  ;;  %4504 = vmatprep.subr.mxu0 %v5039_v36 }
 0x12d   :  { %v612_v20 = vmax.f32 %v602_v50, %v569_v19  ;;  %4440 = vmatprep.mubr.msk.f32.mxu1 %vm643_vm2, %v627_v15  ;;  %4457 = vmatprep.mubr.msk.f32.mxu0 %vm643_vm2, %v627_v15 }
 0x12e   :  { %4441 = vmatmul.mubr.msk.f32.gmra.mrb[10].mxu1 %vm643_vm2, %v628_v17  ;;  %4458 = vmatmul.mubr.msk.f32.gmra.mrb[24].mxu0 %vm643_vm2, %v628_v17  ;;  %v630_v23 = vadd.f32 %v4112_v5, %v613_v18 }
 0x12f   :  { %v629_v21 = vadd.f32 %v4112_v5, %v612_v20  ;;  %v4431_v22 = vpop.f32.mrb[18].mxu0 }
 0x130   :  { %v615_v24 = vmax.f32 %v605_v54, %v4431_v22  ;;  %v579_v25 = vpop.f32.mrb[19].mxu0 }
 0x131   :  { %v614_v26 = vmax.f32 %v604_v56, %v579_v25  ;;  %4443 = vmatprep.mubr.msk.f32.mxu1 %vm643_vm2, %v629_v21  ;;  %4460 = vmatprep.mubr.msk.f32.mxu0 %vm643_vm2, %v629_v21 }
 0x132   :  { %4444 = vmatmul.mubr.msk.f32.gmra.mrb[12].mxu1 %vm643_vm2, %v630_v23  ;;  %4461 = vmatmul.mubr.msk.f32.gmra.mrb[26].mxu0 %vm643_vm2, %v630_v23  ;;  %v632_v29 = vadd.f32 %v4112_v5, %v615_v24 }
 0x133   :  { %v631_v27 = vadd.f32 %v4112_v5, %v614_v26  ;;  %v4434_v28 = vpop.f32.mrb[20].mxu0 }
 0x134   :  { %v617_v30 = vmax.f32 %v607_v60, %v4434_v28  ;;  %v589_v31 = vpop.f32.mrb[21].mxu0 }
 0x135   :  { %v616_v32 = vmax.f32 %v606_v62, %v589_v31  ;;  %4446 = vmatprep.mubr.msk.f32.mxu1 %vm643_vm2, %v631_v27  ;;  %4463 = vmatprep.mubr.msk.f32.mxu0 %vm643_vm2, %v631_v27 }
 0x136   :  { %4447 = vmatmul.mubr.msk.f32.gmra.mrb[14].mxu1 %vm643_vm2, %v632_v29  ;;  %4464 = vmatmul.mubr.msk.f32.gmra.mrb[28].mxu0 %vm643_vm2, %v632_v29  ;;  %v634_v34 = vadd.f32 %v4112_v5, %v617_v30 }
 0x137   :  { %v633_v33 = vadd.f32 %v4112_v5, %v616_v32 }
 0x139   :  { %4449 = vmatprep.mubr.msk.f32.mxu1 %vm643_vm2, %v633_v33  ;;  %4466 = vmatprep.mubr.msk.f32.mxu0 %vm643_vm2, %v633_v33 }
 0x13a   :  { %4450 = vmatmul.mubr.msk.f32.gmra.mrb[16].mxu1 %vm643_vm2, %v634_v34  ;;  %4467 = vmatmul.mubr.msk.f32.gmra.mrb[30].mxu0 %vm643_vm2, %v634_v34 }
 0x13b   :  { %4471 = vmatprep.mubr.msk.f32.mxu1 %vm5040_vm3, %v5039_v36  ;;  %4496 = vmatprep.mubr.msk.f32.mxu0 %vm5040_vm3, %v5039_v36 }
 0x13e   :  { %4472 = vmatmul.mubr.f32.vlgmr.msra.gmra.mrb[18].mxu1 %v5039_v36 }
 0x13f   :  { %4475 = vmatpush3.msk.msra.mxu1 %vm674_vm1, %v5280_v13  ;;  %4476 = vmatprep.mubr.msk.f32.mxu1 %vm5040_vm3, %v5039_v36 }
 0x140   :  { %4479 = vmatprep.subr.mxu1 %v5039_v36 }
 0x1fd   :  { %v4439_v38 = vpop.f32.mrb[8].mxu1  ;;  %v4456_v39 = vpop.f32.mrb[22].mxu0 }
 0x1fe   :  { %v5322_v40 = vadd.f32 %v4439_v38, %v4113_v35  ;;  %v5325_v41 = vadd.f32 %v4456_v39, %v5320_v37  ;;  %v744_v42 = vpop.f32.mrb[9].mxu1  ;;  %v870_v43 = vpop.f32.mrb[23].mxu0 }
 0x1ff   :  { %v5328_v44 = vadd.f32 %v5320_v37, %v870_v43  ;;  %v745_v17 = vadd.f32 %v4113_v35, %v744_v42 }
 0x201   :  { %v4442_v45 = vpop.f32.mrb[10].mxu1  ;;  %v4459_v46 = vpop.f32.mrb[24].mxu0 }
 0x202   :  { %v5330_v47 = vadd.f32 %v4442_v45, %v4113_v35  ;;  %v5333_v48 = vadd.f32 %v4459_v46, %v5320_v37  ;;  %v754_v49 = vpop.f32.mrb[11].mxu1  ;;  %v880_v50 = vpop.f32.mrb[25].mxu0 }
 0x203   :  { %v5335_v51 = vadd.f32 %v4113_v35, %v754_v49  ;;  %v5338_v52 = vadd.f32 %v5320_v37, %v880_v50 }
 0x205   :  { %v4445_v53 = vpop.f32.mrb[12].mxu1  ;;  %v4462_v54 = vpop.f32.mrb[26].mxu0 }
 0x206   :  { %v5340_v55 = vadd.f32 %v4445_v53, %v4113_v35  ;;  %v5343_v56 = vadd.f32 %v4462_v54, %v5320_v37  ;;  %v764_v57 = vpop.f32.mrb[13].mxu1  ;;  %v890_v58 = vpop.f32.mrb[27].mxu0 }
 0x207   :  { %v5345_v59 = vadd.f32 %v4113_v35, %v764_v57  ;;  %v5348_v60 = vadd.f32 %v5320_v37, %v890_v58 }
 0x209   :  { %v4448_v61 = vpop.f32.mrb[14].mxu1  ;;  %v4465_v62 = vpop.f32.mrb[28].mxu0 }
 0x20a   :  { %v5350_v63 = vadd.f32 %v4448_v61, %v4113_v35  ;;  %v5353_v0 = vadd.f32 %v4465_v62, %v5320_v37  ;;  %v774_v1 = vpop.f32.mrb[15].mxu1  ;;  %v900_v2 = vpop.f32.mrb[29].mxu0 }
 0x20b   :  { %v5355_v3 = vadd.f32 %v4113_v35, %v774_v1  ;;  %v5358_v4 = vadd.f32 %v5320_v37, %v900_v2 }
 0x20d   :  { %v4451_v5 = vpop.f32.mrb[16].mxu1  ;;  %v5360_v6 = vpop.f32.mrb[30].mxu0 }
 0x20e   :  { %v5362_v7 = vadd.f32 %v4451_v5, %v4113_v35  ;;  %v784_v8 = vpop.f32.mrb[17].mxu1  ;;  %v910_v9 = vpop.f32.mrb[31].mxu0 }
 0x20f   :  { %v5364_v10 = vadd.f32 %v4113_v35, %v784_v8  ;;  %v5367_v11 = vadd.f32 %v5320_v37, %v910_v9 }
 0x211   :  { %v1001_v14 = vpop.f32.mrb[18].mxu1 }
 0x212   :  { %v1002_v15 = vadd.f32 %v5370_v12, %v1001_v14  ;;  %v4473_v16 = vpop.f32.mrb[19].mxu1 }
 0x214   :  { %1013 = vrot.lane.b32.xlu0 %v1002_v15, %s5041_s0  ;;  %v1005_v18 = vadd.f32 %v1002_v15, %v745_v17 }
 0x216   :  { %v1006_v19 = vsub.f32 0.0, %v1005_v18 }
 0x218   :  { %v1007_v20 = vmul.f32 1.442695, %v1006_v19 }
 0x21a   :  { %4864 = vpow2.f32 %v1007_v20 }
 0x224   :  { %v4865_v21 = vpop.eup %4864 }
 0x225   :  { %v1009_v22 = vadd.f32 1.0, %v4865_v21 }
 0x227   :  { %4866 = vrcp.f32 %v1009_v22 }
 0x231   :  { %v4867_v23 = vpop.eup %4866 }
 0x232   :  { %v1023_v29 = vsub.f32 1.0, %v4867_v23  ;;  %v1029_v31 = vmul.f32 0.0, %v4867_v23 }
 0x286   :  { %v1014_v24 = vpop.permute.xlu0 %1013 }
 0x287   :  { %v1016_v25 = vmul.f32 %v4867_v23, %v1014_v24 }
 0x289   :  { %1018 = vrot.lane.b32.xlu0 %v1016_v25, %s5042_s5 }
 0x2fb   :  { %v1019_v26 = vpop.permute.xlu0 %1018 }
 0x2fc   :  { %v1021_v27 = vadd.f32 %v1019_v26, %v745_v17 }
 0x2fe   :  { %4868 = vtanh.f32 %v1021_v27 }
 0x308   :  { %v4869_v28 = vpop.eup %4868 }
 0x309   :  { %1025 = vrot.lane.b32.xlu1 %v4869_v28, %s5043_s9 }
 0x37b   :  { %v1026_v30 = vpop.permute.xlu1 %1025 }
 0x37c   :  { %v1028_v32 = vmul.f32 %v1026_v30, %v1023_v29 }
 0x37e   :  { %v1030_v33 = vadd.f32 %v1029_v31, %v1028_v32 }
 0x380   :  { %1032 = vrot.lane.b32.xlu1 %v1030_v33, %s5043_s9 }
 0x3f2   :  { %v5377_v34 = vpop.permute.xlu1 %1032 }
 0x3f3   :  { %4477 = vmatmul.mubr.msk.f32.vlgmr.msra.gmra.mrb[20].mxu1 %vm643_vm2, %v5377_v34 }
 0x3f4   :  { %4480 = vmatpush3.msk.msra.mxu1 %vm674_vm1, %v5280_v13  ;;  %4481 = vmatprep.mubr.msk.f32.mxu1 %vm5040_vm3, %v5039_v36 }
 0x3f5   :  { %4484 = vmatprep.subr.mxu1 %v5039_v36 }
 0x4c6   :  { %v1106_v35 = vpop.f32.mrb[20].mxu1 }
 0x4c7   :  { %v1107_v38 = vadd.f32 %v5370_v12, %v1106_v35  ;;  %v4478_v39 = vpop.f32.mrb[21].mxu1 }
 0x4c9   :  { %1118 = vrot.lane.b32.xlu0 %v1107_v38, %s5041_s0  ;;  %v1110_v42 = vadd.f32 %v1107_v38, %v5322_v40 }
 0x4cb   :  { %v1111_v43 = vsub.f32 0.0, %v1110_v42 }
 0x4cd   :  { %v1112_v45 = vmul.f32 1.442695, %v1111_v43 }
 0x4cf   :  { %4870 = vpow2.f32 %v1112_v45 }
 0x4d9   :  { %v4871_v46 = vpop.eup %4870 }
 0x4da   :  { %v1114_v49 = vadd.f32 1.0, %v4871_v46 }
 0x4dc   :  { %4872 = vrcp.f32 %v1114_v49 }
 0x4e6   :  { %v4873_v50 = vpop.eup %4872 }
 0x4e7   :  { %v1128_v62 = vsub.f32 1.0, %v4873_v50  ;;  %v1134_v2 = vmul.f32 %v4873_v50, %v1030_v33 }
 0x53b   :  { %v1119_v53 = vpop.permute.xlu0 %1118 }
 0x53c   :  { %v1121_v54 = vmul.f32 %v4873_v50, %v1119_v53 }
 0x53e   :  { %1123 = vrot.lane.b32.xlu1 %v1121_v54, %s5042_s5 }
 0x5b0   :  { %v1124_v57 = vpop.permute.xlu1 %1123 }
 0x5b1   :  { %v1126_v58 = vadd.f32 %v1124_v57, %v5322_v40 }
 0x5b3   :  { %4874 = vtanh.f32 %v1126_v58 }
 0x5bd   :  { %v4875_v61 = vpop.eup %4874 }
 0x5be   :  { %1130 = vrot.lane.b32.xlu0 %v4875_v61, %s5043_s9 }
 0x630   :  { %v1131_v1 = vpop.permute.xlu0 %1130 }
 0x631   :  { %v1133_v5 = vmul.f32 %v1131_v1, %v1128_v62 }
 0x633   :  { %v1135_v8 = vadd.f32 %v1134_v2, %v1133_v5 }
 0x635   :  { %1137 = vrot.lane.b32.xlu1 %v1135_v8, %s5043_s9 }
 0x6a7   :  { %v5393_v9 = vpop.permute.xlu1 %1137 }
 0x6a8   :  { %4482 = vmatmul.mubr.msk.f32.vlgmr.msra.gmra.mrb[22].mxu1 %vm643_vm2, %v5393_v9 }
 0x6a9   :  { %4485 = vmatpush3.msk.msra.mxu1 %vm674_vm1, %v5280_v13  ;;  %4486 = vmatprep.mubr.msk.f32.mxu1 %vm5040_vm3, %v5039_v36 }
 0x6aa   :  { %4489 = vmatprep.subr.mxu1 %v5039_v36 }
 0x77b   :  { %v1211_v40 = vpop.f32.mrb[22].mxu1 }
 0x77c   :  { %v1212_v14 = vadd.f32 %v5370_v12, %v1211_v40  ;;  %v4483_v15 = vpop.f32.mrb[23].mxu1 }
 0x77e   :  { %1223 = vrot.lane.b32.xlu0 %v1212_v14, %s5041_s0  ;;  %v1215_v16 = vadd.f32 %v1212_v14, %v5335_v51 }
 0x780   :  { %v1216_v17 = vsub.f32 0.0, %v1215_v16 }
 0x782   :  { %v1217_v18 = vmul.f32 1.442695, %v1216_v17 }
 0x784   :  { %4876 = vpow2.f32 %v1217_v18 }
 0x78e   :  { %v4877_v19 = vpop.eup %4876 }
 0x78f   :  { %v1219_v20 = vadd.f32 1.0, %v4877_v19 }
 0x791   :  { %4878 = vrcp.f32 %v1219_v20 }
 0x79b   :  { %v4879_v21 = vpop.eup %4878 }
 0x79c   :  { %v1233_v27 = vsub.f32 1.0, %v4879_v21  ;;  %v1239_v29 = vmul.f32 %v4879_v21, %v1135_v8 }
 0x7f0   :  { %v1224_v22 = vpop.permute.xlu0 %1223 }
 0x7f1   :  { %v1226_v23 = vmul.f32 %v4879_v21, %v1224_v22 }
 0x7f3   :  { %1228 = vrot.lane.b32.xlu1 %v1226_v23, %s5042_s5 }
 0x865   :  { %v1229_v24 = vpop.permute.xlu1 %1228 }
 0x866   :  { %v1231_v25 = vadd.f32 %v1229_v24, %v5335_v51 }
 0x868   :  { %4880 = vtanh.f32 %v1231_v25 }
 0x872   :  { %v4881_v26 = vpop.eup %4880 }
 0x873   :  { %1235 = vrot.lane.b32.xlu0 %v4881_v26, %s5043_s9 }
 0x8e5   :  { %v1236_v28 = vpop.permute.xlu0 %1235 }
 0x8e6   :  { %v1238_v30 = vmul.f32 %v1236_v28, %v1233_v27 }
 0x8e8   :  { %v1240_v31 = vadd.f32 %v1239_v29, %v1238_v30 }
 0x8ea   :  { %1242 = vrot.lane.b32.xlu1 %v1240_v31, %s5043_s9 }
 0x95c   :  { %v5409_v32 = vpop.permute.xlu1 %1242 }
 0x95d   :  { %4487 = vmatmul.mubr.msk.f32.vlgmr.msra.gmra.mrb[24].mxu1 %vm643_vm2, %v5409_v32 }
 0x95e   :  { %4490 = vmatpush3.msk.msra.mxu1 %vm674_vm1, %v5280_v13  ;;  %4491 = vmatprep.mubr.msk.f32.mxu1 %vm5040_vm3, %v5039_v36 }
 0x95f   :  { %4499 = vmatprep.subr.mxu1 %v5039_v36 }
 0xa30   :  { %v1316_v51 = vpop.f32.mrb[24].mxu1 }
 0xa31   :  { %v1317_v33 = vadd.f32 %v5370_v12, %v1316_v51  ;;  %v4488_v35 = vpop.f32.mrb[25].mxu1 }
 0xa33   :  { %1328 = vrot.lane.b32.xlu0 %v1317_v33, %s5041_s0  ;;  %v1320_v38 = vadd.f32 %v1317_v33, %v5330_v47 }
 0xa35   :  { %v1321_v39 = vsub.f32 0.0, %v1320_v38 }
 0xa37   :  { %v1322_v42 = vmul.f32 1.442695, %v1321_v39 }
 0xa39   :  { %4882 = vpow2.f32 %v1322_v42 }
 0xa43   :  { %v4883_v43 = vpop.eup %4882 }
 0xa44   :  { %v1324_v45 = vadd.f32 1.0, %v4883_v43 }
 0xa46   :  { %4884 = vrcp.f32 %v1324_v45 }
 0xa50   :  { %v4885_v46 = vpop.eup %4884 }
 0xa51   :  { %v1338_v58 = vsub.f32 1.0, %v4885_v46  ;;  %v1344_v62 = vmul.f32 %v4885_v46, %v1240_v31 }
 0xaa5   :  { %v1329_v49 = vpop.permute.xlu0 %1328 }
 0xaa6   :  { %v1331_v50 = vmul.f32 %v4885_v46, %v1329_v49 }
 0xaa8   :  { %1333 = vrot.lane.b32.xlu1 %v1331_v50, %s5042_s5 }
 0xb1a   :  { %v1334_v53 = vpop.permute.xlu1 %1333 }
 0xb1b   :  { %v1336_v54 = vadd.f32 %v1334_v53, %v5330_v47 }
 0xb1d   :  { %4886 = vtanh.f32 %v1336_v54 }
 0xb27   :  { %v4887_v57 = vpop.eup %4886 }
 0xb28   :  { %1340 = vrot.lane.b32.xlu0 %v4887_v57, %s5043_s9 }
 0xb9a   :  { %v1341_v61 = vpop.permute.xlu0 %1340 }
 0xb9b   :  { %v1343_v1 = vmul.f32 %v1341_v61, %v1338_v58 }
 0xb9d   :  { %v1345_v2 = vadd.f32 %v1344_v62, %v1343_v1 }
 0xb9f   :  { %1347 = vrot.lane.b32.xlu1 %v1345_v2, %s5043_s9 }
 0xc11   :  { %v5425_v5 = vpop.permute.xlu1 %1347 }
 0xc12   :  { %4492 = vmatmul.mubr.msk.f32.vlgmr.msra.gmra.mrb[26].mxu1 %vm643_vm2, %v5425_v5 }
 0xc13   :  { %4500 = vmatpush3.msk.msra.mxu1 %vm674_vm1, %v5280_v13  ;;  %4501 = vmatprep.mubr.msk.f32.mxu1 %vm5040_vm3, %v5039_v36 }
 0xc14   :  { %4509 = vmatprep.subr.mxu1 %v5039_v36 }
 0xce5   :  { %v1421_v47 = vpop.f32.mrb[26].mxu1 }
 0xce6   :  { %v1422_v8 = vadd.f32 %v5370_v12, %v1421_v47  ;;  %v4493_v40 = vpop.f32.mrb[27].mxu1 }
 0xce8   :  { %1433 = vrot.lane.b32.xlu0 %v1422_v8, %s5041_s0  ;;  %v1425_v14 = vadd.f32 %v1422_v8, %v5345_v59 }
 0xcea   :  { %v1426_v15 = vsub.f32 0.0, %v1425_v14 }
 0xcec   :  { %v1427_v16 = vmul.f32 1.442695, %v1426_v15 }
 0xcee   :  { %4888 = vpow2.f32 %v1427_v16 }
 0xcf8   :  { %v4889_v17 = vpop.eup %4888 }
 0xcf9   :  { %v1429_v18 = vadd.f32 1.0, %v4889_v17 }
 0xcfb   :  { %4890 = vrcp.f32 %v1429_v18 }
 0xd05   :  { %v4891_v19 = vpop.eup %4890 }
 0xd06   :  { %v1443_v25 = vsub.f32 1.0, %v4891_v19  ;;  %v1449_v27 = vmul.f32 %v4891_v19, %v1345_v2 }
 0xd5a   :  { %v1434_v20 = vpop.permute.xlu0 %1433 }
 0xd5b   :  { %v1436_v21 = vmul.f32 %v4891_v19, %v1434_v20 }
 0xd5d   :  { %1438 = vrot.lane.b32.xlu1 %v1436_v21, %s5042_s5 }
 0xdcf   :  { %v1439_v22 = vpop.permute.xlu1 %1438 }
 0xdd0   :  { %v1441_v23 = vadd.f32 %v1439_v22, %v5345_v59 }
 0xdd2   :  { %4892 = vtanh.f32 %v1441_v23 }
 0xddc   :  { %v4893_v24 = vpop.eup %4892 }
 0xddd   :  { %1445 = vrot.lane.b32.xlu0 %v4893_v24, %s5043_s9 }
 0xe4f   :  { %v1446_v26 = vpop.permute.xlu0 %1445 }
 0xe50   :  { %v1448_v28 = vmul.f32 %v1446_v26, %v1443_v25 }
 0xe52   :  { %v1450_v29 = vadd.f32 %v1449_v27, %v1448_v28 }
 0xe54   :  { %1452 = vrot.lane.b32.xlu1 %v1450_v29, %s5043_s9 }
 0xec6   :  { %v5441_v30 = vpop.permute.xlu1 %1452 }
 0xec7   :  { %4497 = vmatmul.mubr.msk.f32.vlgmr.msra.gmra.mrb[32].mxu0 %vm643_vm2, %v5441_v30 }
 0xec8   :  { %4505 = vmatpush3.msk.msra.mxu0 %vm674_vm1, %v5280_v13  ;;  %4506 = vmatprep.mubr.msk.f32.mxu0 %vm5040_vm3, %v5039_v36 }
 0xec9   :  { %4514 = vmatprep.subr.mxu0 %v5039_v36 }
 0xf9a   :  { %v1526_v59 = vpop.f32.mrb[32].mxu0 }
 0xf9b   :  { %v1527_v31 = vadd.f32 %v5370_v12, %v1526_v59  ;;  %v4498_v51 = vpop.f32.mrb[33].mxu0 }
 0xf9d   :  { %1538 = vrot.lane.b32.xlu0 %v1527_v31, %s5041_s0  ;;  %v1530_v33 = vadd.f32 %v1527_v31, %v5340_v55 }
 0xf9f   :  { %v1531_v35 = vsub.f32 0.0, %v1530_v33 }
 0xfa1   :  { %v1532_v38 = vmul.f32 1.442695, %v1531_v35 }
 0xfa3   :  { %4894 = vpow2.f32 %v1532_v38 }
 0xfad   :  { %v4895_v39 = vpop.eup %4894 }
 0xfae   :  { %v1534_v42 = vadd.f32 1.0, %v4895_v39 }
 0xfb0   :  { %4896 = vrcp.f32 %v1534_v42 }
 0xfba   :  { %v4897_v43 = vpop.eup %4896 }
 0xfbb   :  { %v1548_v54 = vsub.f32 1.0, %v4897_v43  ;;  %v1554_v58 = vmul.f32 %v4897_v43, %v1450_v29 }
0x100f   :  { %v1539_v45 = vpop.permute.xlu0 %1538 }
0x1010   :  { %v1541_v46 = vmul.f32 %v4897_v43, %v1539_v45 }
0x1012   :  { %1543 = vrot.lane.b32.xlu1 %v1541_v46, %s5042_s5 }
0x1084   :  { %v1544_v49 = vpop.permute.xlu1 %1543 }
0x1085   :  { %v1546_v50 = vadd.f32 %v1544_v49, %v5340_v55 }
0x1087   :  { %4898 = vtanh.f32 %v1546_v50 }
0x1091   :  { %v4899_v53 = vpop.eup %4898 }
0x1092   :  { %1550 = vrot.lane.b32.xlu0 %v4899_v53, %s5043_s9 }
0x1104   :  { %v1551_v57 = vpop.permute.xlu0 %1550 }
0x1105   :  { %v1553_v61 = vmul.f32 %v1551_v57, %v1548_v54 }
0x1107   :  { %v1555_v62 = vadd.f32 %v1554_v58, %v1553_v61  ;;  %v5490_v58 = vld [vmem:[%s5100_s14] sm:$0xf]  ;;  %s5936_s14 = sld [smem:[#allocation10_spill]] }
0x1109   :  { %1557 = vrot.lane.b32.xlu1 %v1555_v62, %s5043_s9 }
0x117b   :  { %v5457_v1 = vpop.permute.xlu1 %1557 }
0x117c   :  { %4502 = vmatmul.mubr.msk.f32.vlgmr.msra.gmra.mrb[28].mxu1 %vm643_vm2, %v5457_v1 }
0x117d   :  { %4510 = vmatpush3.msk.msra.mxu1 %vm674_vm1, %v5280_v13  ;;  %4511 = vmatprep.mubr.msk.f32.mxu1 %vm5040_vm3, %v5039_v36 }
0x117e   :  { %4519 = vmatprep.subr.mxu1 %v5039_v36 }
0x124f   :  { %v1631_v55 = vpop.f32.mrb[28].mxu1 }
0x1250   :  { %v1632_v2 = vadd.f32 %v5370_v12, %v1631_v55  ;;  %v4503_v47 = vpop.f32.mrb[29].mxu1 }
0x1252   :  { %1643 = vrot.lane.b32.xlu0 %v1632_v2, %s5041_s0  ;;  %v1635_v8 = vadd.f32 %v1632_v2, %v5355_v3  ;;  %v5509_v2 = vld [vmem:[%s5105_s19] ss:$0 sm:$0xff]  ;;  %s5937_s19 = sld [smem:[#allocation11_spill]] }
0x1254   :  { %v1636_v40 = vsub.f32 0.0, %v1635_v8 }
0x1256   :  { %v1637_v14 = vmul.f32 1.442695, %v1636_v40 }
0x1258   :  { %4900 = vpow2.f32 %v1637_v14 }
0x1262   :  { %v4901_v15 = vpop.eup %4900 }
0x1263   :  { %v1639_v16 = vadd.f32 1.0, %v4901_v15  ;;  %v916_v15 = vadd.f32 %v5360_v6, %v5320_v37 }
0x1265   :  { %4902 = vrcp.f32 %v1639_v16 }
0x126f   :  { %v4903_v17 = vpop.eup %4902 }
0x1270   :  { %v1653_v23 = vsub.f32 1.0, %v4903_v17  ;;  %v1659_v25 = vmul.f32 %v4903_v17, %v1555_v62 }
0x12c4   :  { %v1644_v18 = vpop.permute.xlu0 %1643 }
0x12c5   :  { %v1646_v19 = vmul.f32 %v4903_v17, %v1644_v18 }
0x12c7   :  { %1648 = vrot.lane.b32.xlu1 %v1646_v19, %s5042_s5 }
0x1339   :  { %v1649_v20 = vpop.permute.xlu1 %1648 }
0x133a   :  { %v1651_v21 = vadd.f32 %v1649_v20, %v5355_v3 }
0x133c   :  { %4904 = vtanh.f32 %v1651_v21 }
0x1346   :  { %v4905_v22 = vpop.eup %4904 }
0x1347   :  { %1655 = vrot.lane.b32.xlu0 %v4905_v22, %s5043_s9 }
0x13b9   :  { %v1656_v24 = vpop.permute.xlu0 %1655 }
0x13ba   :  { %v1658_v26 = vmul.f32 %v1656_v24, %v1653_v23 }
0x13bc   :  { %v1660_v27 = vadd.f32 %v1659_v25, %v1658_v26 }
0x13be   :  { %1662 = vrot.lane.b32.xlu1 %v1660_v27, %s5043_s9 }
0x1430   :  { %v5473_v28 = vpop.permute.xlu1 %1662 }
0x1431   :  { %4507 = vmatmul.mubr.msk.f32.vlgmr.msra.gmra.mrb[34].mxu0 %vm643_vm2, %v5473_v28 }
0x1432   :  { %4515 = vmatpush3.msk.msra.mxu0 %vm674_vm1, %v5280_v13  ;;  %4516 = vmatprep.mubr.msk.f32.mxu0 %vm5040_vm3, %v5039_v36 }
0x1433   :  { %4524 = vmatprep.subr.mxu0 %v5039_v36 }
0x1504   :  { %v1736_v3 = vpop.f32.mrb[34].mxu0 }
0x1505   :  { %v1737_v29 = vadd.f32 %v5370_v12, %v1736_v3  ;;  %v4508_v59 = vpop.f32.mrb[35].mxu0 }
0x1507   :  { %1748 = vrot.lane.b32.xlu0 %v1737_v29, %s5041_s0  ;;  %v1740_v31 = vadd.f32 %v1737_v29, %v5350_v63 }
0x1509   :  { %v1741_v51 = vsub.f32 0.0, %v1740_v31 }
0x150b   :  { %v1742_v33 = vmul.f32 1.442695, %v1741_v51 }
0x150d   :  { %4906 = vpow2.f32 %v1742_v33 }
0x1517   :  { %v4907_v35 = vpop.eup %4906 }
0x1518   :  { %v1744_v38 = vadd.f32 1.0, %v4907_v35 }
0x151a   :  { %4908 = vrcp.f32 %v1744_v38 }
0x1524   :  { %v4909_v13 = vpop.eup %4908 }
0x1525   :  { %v1758_v49 = vsub.f32 1.0, %v4909_v13  ;;  %v1764_v53 = vmul.f32 %v4909_v13, %v1660_v27 }
0x1579   :  { %v1749_v39 = vpop.permute.xlu0 %1748 }
0x157a   :  { %v1751_v42 = vmul.f32 %v4909_v13, %v1749_v39 }
0x157c   :  { %1753 = vrot.lane.b32.xlu1 %v1751_v42, %s5042_s5 }
0x15ee   :  { %v1754_v43 = vpop.permute.xlu1 %1753 }
0x15ef   :  { %v1756_v45 = vadd.f32 %v1754_v43, %v5350_v63 }
0x15f1   :  { %4910 = vtanh.f32 %v1756_v45 }
0x15fb   :  { %v4911_v46 = vpop.eup %4910 }
0x15fc   :  { %1760 = vrot.lane.b32.xlu0 %v4911_v46, %s5043_s9 }
0x166e   :  { %v1761_v50 = vpop.permute.xlu0 %1760 }
0x166f   :  { %v1763_v54 = vmul.f32 %v1761_v50, %v1758_v49 }
0x1671   :  { %v1765_v57 = vadd.f32 %v1764_v53, %v1763_v54 }
0x1673   :  { %1767 = vrot.lane.b32.xlu1 %v1765_v57, %s5043_s9 }
0x16e5   :  { %v5492_v61 = vpop.permute.xlu1 %1767 }
0x16e6   :  { %4512 = vmatmul.mubr.msk.f32.vlgmr.msra.gmra.mrb[30].mxu1 %vm643_vm2, %v5492_v61 }
0x16e7   :  { %4520 = vmatpush3.msk.msra.mxu1 %vm674_vm1, %v5490_v58  ;;  %4521 = vmatprep.mubr.msk.f32.mxu1 %vm5040_vm3, %v5039_v36 }
0x16e8   :  { %4529 = vmatprep.subr.mxu1 %v5039_v36 }
0x16ea   :  { %4522 = vmatmul.mubr.f32.vlgmr.msra.gmra.mrb[32].mxu1 %v5039_v36 }
0x16eb   :  { %4530 = vmatpush3.msk.msra.mxu1 %vm674_vm1, %v5490_v58  ;;  %4531 = vmatprep.mubr.msk.f32.mxu1 %vm5040_vm3, %v5039_v36 }
0x16ec   :  { %4539 = vmatprep.subr.mxu1 %v5039_v36 }
0x17b9   :  { %v1841_v63 = vpop.f32.mrb[30].mxu1 }
0x17ba   :  { %v1842_v62 = vadd.f32 %v5370_v12, %v1841_v63  ;;  %v4513_v55 = vpop.f32.mrb[31].mxu1 }
0x17bc   :  { %1853 = vrot.lane.b32.xlu0 %v1842_v62, %s5041_s0  ;;  %v1845_v14 = vadd.f32 %v1842_v62, %v5364_v10 }
0x17bd   :  { %v2058_v47 = vpop.f32.mrb[32].mxu1 }
0x17be   :  { %v2059_v8 = vadd.f32 %v5509_v2, %v2058_v47  ;;  %v4523_v40 = vpop.f32.mrb[33].mxu1  ;;  %v1846_v16 = vsub.f32 0.0, %v1845_v14 }
0x17c0   :  { %2070 = vrot.lane.b32.xlu1 %v2059_v8, %s5041_s0  ;;  %v2062_v17 = vadd.f32 %v2059_v8, %v916_v15  ;;  %v1847_v18 = vmul.f32 1.442695, %v1846_v16 }
0x17c2   :  { %v2063_v12 = vsub.f32 0.0, %v2062_v17  ;;  %4912 = vpow2.f32 %v1847_v18 }
0x17c4   :  { %v2064_v19 = vmul.f32 1.442695, %v2063_v12 }
0x17c6   :  { %4914 = vpow2.f32 %v2064_v19 }
0x17cc   :  { %v4913_v20 = vpop.eup %4912 }
0x17cd   :  { %v1849_v21 = vadd.f32 1.0, %v4913_v20 }
0x17cf   :  { %4916 = vrcp.f32 %v1849_v21 }
0x17d0   :  { %v4915_v22 = vpop.eup %4914 }
0x17d1   :  { %v2066_v23 = vadd.f32 1.0, %v4915_v22 }
0x17d3   :  { %4918 = vrcp.f32 %v2066_v23 }
0x17d9   :  { %v4917_v24 = vpop.eup %4916 }
0x17da   :  { %v1863_v35 = vsub.f32 1.0, %v4917_v24  ;;  %v1869_v13 = vmul.f32 %v4917_v24, %v1765_v57 }
0x17dd   :  { %v4919_v27 = vpop.eup %4918 }
0x17de   :  { %v2080_v43 = vsub.f32 1.0, %v4919_v27  ;;  %v2086_v46 = vmul.f32 0.0, %v4919_v27 }
0x182e   :  { %v1854_v25 = vpop.permute.xlu0 %1853 }
0x182f   :  { %v1856_v26 = vmul.f32 %v4917_v24, %v1854_v25 }
0x1831   :  { %1858 = vrot.lane.b32.xlu0 %v1856_v26, %s5042_s5 }
0x1832   :  { %v2071_v37 = vpop.permute.xlu1 %2070 }
0x1833   :  { %v2073_v6 = vmul.f32 %v4919_v27, %v2071_v37 }
0x1835   :  { %2075 = vrot.lane.b32.xlu1 %v2073_v6, %s5042_s5 }
0x18a3   :  { %v1859_v3 = vpop.permute.xlu0 %1858 }
0x18a4   :  { %v1861_v29 = vadd.f32 %v1859_v3, %v5364_v10 }
0x18a6   :  { %4920 = vtanh.f32 %v1861_v29 }
0x18a7   :  { %v2076_v59 = vpop.permute.xlu1 %2075 }
0x18a8   :  { %v2078_v31 = vadd.f32 %v2076_v59, %v916_v15 }
0x18aa   :  { %4922 = vtanh.f32 %v2078_v31 }
0x18b0   :  { %v4921_v51 = vpop.eup %4920 }
0x18b1   :  { %1865 = vrot.lane.b32.xlu0 %v4921_v51, %s5043_s9 }
0x18b4   :  { %v4923_v33 = vpop.eup %4922 }
0x18b5   :  { %2082 = vrot.lane.b32.xlu1 %v4923_v33, %s5043_s9 }
0x1923   :  { %v1866_v38 = vpop.permute.xlu0 %1865 }
0x1924   :  { %v1868_v39 = vmul.f32 %v1866_v38, %v1863_v35 }
0x1926   :  { %v5522_v42 = vadd.f32 %v1869_v13, %v1868_v39 }
0x1927   :  { %v2083_v45 = vpop.permute.xlu1 %2082 }
0x1928   :  { %v2085_v10 = vmul.f32 %v2083_v45, %v2080_v43  ;;  %1872 = vrot.lane.b32.xlu0 %v5522_v42, %s5043_s9 }
0x192a   :  { %v2087_v49 = vadd.f32 %v2086_v46, %v2085_v10 }
0x192c   :  { %2089 = vrot.lane.b32.xlu1 %v2087_v49, %s5043_s9 }
0x199a   :  { %v5527_v50 = vpop.permute.xlu0 %1872 }
0x199b   :  { %4517 = vmatmul.mubr.msk.f32.vlgmr.msra.gmra.mrb[36].mxu0 %vm643_vm2, %v5527_v50 }
0x199c   :  { %4525 = vmatpush3.msk.msra.mxu0 %vm674_vm1, %v5490_v58  ;;  %4526 = vmatprep.mubr.msk.f32.mxu0 %vm5040_vm3, %v5039_v36 }
0x199d   :  { %4534 = vmatprep.subr.mxu0 %v5039_v36 }
0x199e   :  { %v5536_v53 = vpop.permute.xlu1 %2089 }
0x199f   :  { %4527 = vmatmul.mubr.msk.f32.vlgmr.msra.gmra.mrb[38].mxu0 %vm643_vm2, %v5536_v53 }
0x19a0   :  { %4535 = vmatpush3.msk.msra.mxu0 %vm674_vm1, %v5490_v58  ;;  %4536 = vmatprep.mubr.msk.f32.mxu0 %vm5040_vm3, %v5039_v36 }
0x19a1   :  { %4544 = vmatprep.subr.mxu0 %v5039_v36 }
0x1a6e   :  { %v5545_v54 = vpop.f32.mrb[36].mxu0 }
0x1a6f   :  { %v4518_v57 = vpop.f32.mrb[37].mxu0 }
0x1a72   :  { %v2164_v63 = vpop.f32.mrb[38].mxu0 }
0x1a73   :  { %v2165_v62 = vadd.f32 %v5509_v2, %v2164_v63  ;;  %v4528_v55 = vpop.f32.mrb[39].mxu0 }
0x1a75   :  { %2176 = vrot.lane.b32.xlu0 %v2165_v62, %s5041_s0  ;;  %v2168_v47 = vadd.f32 %v2165_v62, %v5367_v11 }
0x1a77   :  { %v2169_v8 = vsub.f32 0.0, %v2168_v47 }
0x1a79   :  { %v2170_v40 = vmul.f32 1.442695, %v2169_v8 }
0x1a7b   :  { %4924 = vpow2.f32 %v2170_v40 }
0x1a85   :  { %v4925_v14 = vpop.eup %4924 }
0x1a86   :  { %v2172_v15 = vadd.f32 1.0, %v4925_v14 }
0x1a88   :  { %4926 = vrcp.f32 %v2172_v15 }
0x1a92   :  { %v4927_v16 = vpop.eup %4926 }
0x1a93   :  { %v2186_v21 = vsub.f32 1.0, %v4927_v16  ;;  %v2192_v23 = vmul.f32 %v4927_v16, %v2087_v49 }
0x1ae7   :  { %v2177_v17 = vpop.permute.xlu0 %2176 }
0x1ae8   :  { %v2179_v18 = vmul.f32 %v4927_v16, %v2177_v17 }
0x1aea   :  { %2181 = vrot.lane.b32.xlu1 %v2179_v18, %s5042_s5 }
0x1b5c   :  { %v2182_v12 = vpop.permute.xlu1 %2181 }
0x1b5d   :  { %v2184_v19 = vadd.f32 %v2182_v12, %v5367_v11 }
0x1b5f   :  { %4928 = vtanh.f32 %v2184_v19 }
0x1b69   :  { %v4929_v20 = vpop.eup %4928 }
0x1b6a   :  { %2188 = vrot.lane.b32.xlu0 %v4929_v20, %s5043_s9 }
0x1bdc   :  { %v2189_v22 = vpop.permute.xlu0 %2188 }
0x1bdd   :  { %v2191_v24 = vmul.f32 %v2189_v22, %v2186_v21 }
0x1bdf   :  { %v2193_v25 = vadd.f32 %v2192_v23, %v2191_v24 }
0x1be1   :  { %2195 = vrot.lane.b32.xlu1 %v2193_v25, %s5043_s9 }
0x1c53   :  { %v5554_v26 = vpop.permute.xlu1 %2195 }
0x1c54   :  { %4532 = vmatmul.mubr.msk.f32.vlgmr.msra.gmra.mrb[34].mxu1 %vm643_vm2, %v5554_v26 }
0x1c55   :  { %4540 = vmatpush3.msk.msra.mxu1 %vm674_vm1, %v5490_v58  ;;  %4541 = vmatprep.mubr.msk.f32.mxu1 %vm5040_vm3, %v5039_v36 }
0x1c56   :  { %4549 = vmatprep.subr.mxu1 %v5039_v36 }
0x1d27   :  { %v2270_v11 = vpop.f32.mrb[34].mxu1 }
0x1d28   :  { %v2271_v27 = vadd.f32 %v5509_v2, %v2270_v11  ;;  %v4533_v37 = vpop.f32.mrb[35].mxu1 }
0x1d2a   :  { %2282 = vrot.lane.b32.xlu0 %v2271_v27, %s5041_s0  ;;  %v2274_v6 = vadd.f32 %v2271_v27, %v5353_v0 }
0x1d2c   :  { %v2275_v3 = vsub.f32 0.0, %v2274_v6 }
0x1d2e   :  { %v2276_v29 = vmul.f32 1.442695, %v2275_v3 }
0x1d30   :  { %4930 = vpow2.f32 %v2276_v29 }
0x1d3a   :  { %v4931_v59 = vpop.eup %4930 }
0x1d3b   :  { %v2278_v31 = vadd.f32 1.0, %v4931_v59 }
0x1d3d   :  { %4932 = vrcp.f32 %v2278_v31 }
0x1d47   :  { %v4933_v51 = vpop.eup %4932 }
0x1d48   :  { %v2292_v43 = vsub.f32 1.0, %v4933_v51  ;;  %v2298_v46 = vmul.f32 %v4933_v51, %v2193_v25 }
0x1d9c   :  { %v2283_v33 = vpop.permute.xlu0 %2282 }
0x1d9d   :  { %v2285_v35 = vmul.f32 %v4933_v51, %v2283_v33 }
0x1d9f   :  { %2287 = vrot.lane.b32.xlu1 %v2285_v35, %s5042_s5 }
0x1e11   :  { %v2288_v38 = vpop.permute.xlu1 %2287 }
0x1e12   :  { %v2290_v13 = vadd.f32 %v2288_v38, %v5353_v0 }
0x1e14   :  { %4934 = vtanh.f32 %v2290_v13 }
0x1e1e   :  { %v4935_v39 = vpop.eup %4934 }
0x1e1f   :  { %2294 = vrot.lane.b32.xlu0 %v4935_v39, %s5043_s9 }
0x1e91   :  { %v2295_v45 = vpop.permute.xlu0 %2294 }
0x1e92   :  { %v2297_v10 = vmul.f32 %v2295_v45, %v2292_v43 }
0x1e94   :  { %v2299_v49 = vadd.f32 %v2298_v46, %v2297_v10 }
0x1e96   :  { %2301 = vrot.lane.b32.xlu1 %v2299_v49, %s5043_s9 }
0x1f08   :  { %v5570_v57 = vpop.permute.xlu1 %2301 }
0x1f09   :  { %4537 = vmatmul.mubr.msk.f32.vlgmr.msra.gmra.mrb[40].mxu0 %vm643_vm2, %v5570_v57 }
0x1f0a   :  { %4545 = vmatpush3.msk.msra.mxu0 %vm674_vm1, %v5490_v58  ;;  %4546 = vmatprep.mubr.msk.f32.mxu0 %vm5040_vm3, %v5039_v36 }
0x1f0b   :  { %4554 = vmatprep.subr.mxu0 %v5039_v36 }
0x1fdc   :  { %v2376_v0 = vpop.f32.mrb[40].mxu0 }
0x1fdd   :  { %v2377_v63 = vadd.f32 %v5509_v2, %v2376_v0  ;;  %v4538_v62 = vpop.f32.mrb[41].mxu0 }
0x1fdf   :  { %2388 = vrot.lane.b32.xlu0 %v2377_v63, %s5041_s0  ;;  %v2380_v55 = vadd.f32 %v2377_v63, %v5358_v4 }
0x1fe1   :  { %v2381_v47 = vsub.f32 0.0, %v2380_v55 }
0x1fe3   :  { %v2382_v8 = vmul.f32 1.442695, %v2381_v47 }
0x1fe5   :  { %4936 = vpow2.f32 %v2382_v8 }
0x1fef   :  { %v4937_v40 = vpop.eup %4936 }
0x1ff0   :  { %v2384_v14 = vadd.f32 1.0, %v4937_v40 }
0x1ff2   :  { %4938 = vrcp.f32 %v2384_v14 }
0x1ffc   :  { %v4939_v15 = vpop.eup %4938 }
0x1ffd   :  { %v2398_v20 = vsub.f32 1.0, %v4939_v15  ;;  %v2404_v22 = vmul.f32 %v4939_v15, %v2299_v49 }
0x2051   :  { %v2389_v16 = vpop.permute.xlu0 %2388 }
0x2052   :  { %v2391_v17 = vmul.f32 %v4939_v15, %v2389_v16 }
0x2054   :  { %2393 = vrot.lane.b32.xlu1 %v2391_v17, %s5042_s5 }
0x20c6   :  { %v2394_v18 = vpop.permute.xlu1 %2393 }
0x20c7   :  { %v2396_v12 = vadd.f32 %v2394_v18, %v5358_v4 }
0x20c9   :  { %4940 = vtanh.f32 %v2396_v12 }
0x20d3   :  { %v4941_v19 = vpop.eup %4940 }
0x20d4   :  { %2400 = vrot.lane.b32.xlu0 %v4941_v19, %s5043_s9 }
0x2146   :  { %v2401_v21 = vpop.permute.xlu0 %2400 }
0x2147   :  { %v2403_v23 = vmul.f32 %v2401_v21, %v2398_v20 }
0x2149   :  { %v2405_v24 = vadd.f32 %v2404_v22, %v2403_v23 }
0x214b   :  { %2407 = vrot.lane.b32.xlu1 %v2405_v24, %s5043_s9 }
0x21bd   :  { %v5586_v25 = vpop.permute.xlu1 %2407 }
0x21be   :  { %4542 = vmatmul.mubr.msk.f32.vlgmr.msra.gmra.mrb[36].mxu1 %vm643_vm2, %v5586_v25 }
0x21bf   :  { %4550 = vmatpush3.msk.msra.mxu1 %vm674_vm1, %v5490_v58  ;;  %4551 = vmatprep.mubr.msk.f32.mxu1 %vm5040_vm3, %v5039_v36 }
0x21c0   :  { %4559 = vmatprep.subr.mxu1 %v5039_v36 }
0x2291   :  { %v2482_v4 = vpop.f32.mrb[36].mxu1 }
0x2292   :  { %v2483_v11 = vadd.f32 %v5509_v2, %v2482_v4  ;;  %v4543_v27 = vpop.f32.mrb[37].mxu1 }
0x2294   :  { %2494 = vrot.lane.b32.xlu0 %v2483_v11, %s5041_s0  ;;  %v2486_v37 = vadd.f32 %v2483_v11, %v5343_v56 }
0x2296   :  { %v2487_v6 = vsub.f32 0.0, %v2486_v37 }
0x2298   :  { %v2488_v3 = vmul.f32 1.442695, %v2487_v6 }
0x229a   :  { %4942 = vpow2.f32 %v2488_v3 }
0x22a4   :  { %v4943_v29 = vpop.eup %4942 }
0x22a5   :  { %v2490_v59 = vadd.f32 1.0, %v4943_v29 }
0x22a7   :  { %4944 = vrcp.f32 %v2490_v59 }
0x22b1   :  { %v4945_v31 = vpop.eup %4944 }
0x22b2   :  { %v2504_v39 = vsub.f32 1.0, %v4945_v31  ;;  %v2510_v45 = vmul.f32 %v4945_v31, %v2405_v24 }
0x2306   :  { %v2495_v51 = vpop.permute.xlu0 %2494 }
0x2307   :  { %v2497_v33 = vmul.f32 %v4945_v31, %v2495_v51 }
0x2309   :  { %2499 = vrot.lane.b32.xlu1 %v2497_v33, %s5042_s5 }
0x237b   :  { %v2500_v35 = vpop.permute.xlu1 %2499 }
0x237c   :  { %v2502_v38 = vadd.f32 %v2500_v35, %v5343_v56 }
0x237e   :  { %4946 = vtanh.f32 %v2502_v38 }
0x2388   :  { %v4947_v13 = vpop.eup %4946 }
0x2389   :  { %2506 = vrot.lane.b32.xlu0 %v4947_v13, %s5043_s9 }
0x23fb   :  { %v2507_v43 = vpop.permute.xlu0 %2506 }
0x23fc   :  { %v2509_v46 = vmul.f32 %v2507_v43, %v2504_v39 }
0x23fe   :  { %v2511_v10 = vadd.f32 %v2510_v45, %v2509_v46 }
0x2400   :  { %2513 = vrot.lane.b32.xlu1 %v2511_v10, %s5043_s9 }
0x2472   :  { %v5602_v49 = vpop.permute.xlu1 %2513 }
0x2473   :  { %4547 = vmatmul.mubr.msk.f32.vlgmr.msra.gmra.mrb[42].mxu0 %vm643_vm2, %v5602_v49 }
0x2474   :  { %4555 = vmatpush3.msk.msra.mxu0 %vm674_vm1, %v5490_v58  ;;  %4556 = vmatprep.mubr.msk.f32.mxu0 %vm5040_vm3, %v5039_v36 }
0x2475   :  { %4564 = vmatprep.subr.mxu0 %v5039_v36 }
0x2546   :  { %v2588_v56 = vpop.f32.mrb[42].mxu0 }
0x2547   :  { %v2589_v0 = vadd.f32 %v5509_v2, %v2588_v56  ;;  %v4548_v63 = vpop.f32.mrb[43].mxu0 }
0x2549   :  { %2600 = vrot.lane.b32.xlu0 %v2589_v0, %s5041_s0  ;;  %v2592_v62 = vadd.f32 %v2589_v0, %v5348_v60 }
0x254b   :  { %v2593_v55 = vsub.f32 0.0, %v2592_v62 }
0x254d   :  { %v2594_v47 = vmul.f32 1.442695, %v2593_v55 }
0x254f   :  { %4948 = vpow2.f32 %v2594_v47 }
0x2559   :  { %v4949_v8 = vpop.eup %4948 }
0x255a   :  { %v2596_v40 = vadd.f32 1.0, %v4949_v8 }
0x255c   :  { %4950 = vrcp.f32 %v2596_v40 }
0x2566   :  { %v4951_v14 = vpop.eup %4950 }
0x2567   :  { %v2610_v19 = vsub.f32 1.0, %v4951_v14  ;;  %v2616_v21 = vmul.f32 %v4951_v14, %v2511_v10 }
0x25bb   :  { %v2601_v15 = vpop.permute.xlu0 %2600 }
0x25bc   :  { %v2603_v16 = vmul.f32 %v4951_v14, %v2601_v15 }
0x25be   :  { %2605 = vrot.lane.b32.xlu1 %v2603_v16, %s5042_s5 }
0x2630   :  { %v2606_v17 = vpop.permute.xlu1 %2605 }
0x2631   :  { %v2608_v18 = vadd.f32 %v2606_v17, %v5348_v60 }
0x2633   :  { %4952 = vtanh.f32 %v2608_v18 }
0x263d   :  { %v4953_v12 = vpop.eup %4952 }
0x263e   :  { %2612 = vrot.lane.b32.xlu0 %v4953_v12, %s5043_s9 }
0x26b0   :  { %v2613_v20 = vpop.permute.xlu0 %2612 }
0x26b1   :  { %v2615_v22 = vmul.f32 %v2613_v20, %v2610_v19 }
0x26b3   :  { %v2617_v23 = vadd.f32 %v2616_v21, %v2615_v22 }
0x26b5   :  { %2619 = vrot.lane.b32.xlu1 %v2617_v23, %s5043_s9 }
0x2727   :  { %v5618_v24 = vpop.permute.xlu1 %2619 }
0x2728   :  { %4552 = vmatmul.mubr.msk.f32.vlgmr.msra.gmra.mrb[38].mxu1 %vm643_vm2, %v5618_v24 }
0x2729   :  { %4560 = vmatpush3.msk.msra.mxu1 %vm674_vm1, %v5490_v58  ;;  %4561 = vmatprep.mubr.msk.f32.mxu1 %vm5040_vm3, %v5039_v36 }
0x27fb   :  { %v2694_v60 = vpop.f32.mrb[38].mxu1 }
0x27fc   :  { %v2695_v4 = vadd.f32 %v5509_v2, %v2694_v60  ;;  %v4553_v11 = vpop.f32.mrb[39].mxu1 }
0x27fe   :  { %2706 = vrot.lane.b32.xlu0 %v2695_v4, %s5041_s0  ;;  %v2698_v27 = vadd.f32 %v2695_v4, %v5333_v48 }
0x2800   :  { %v2699_v37 = vsub.f32 0.0, %v2698_v27 }
0x2802   :  { %v2700_v6 = vmul.f32 1.442695, %v2699_v37 }
0x2804   :  { %4954 = vpow2.f32 %v2700_v6 }
0x280e   :  { %v4955_v3 = vpop.eup %4954 }
0x280f   :  { %v2702_v29 = vadd.f32 1.0, %v4955_v3 }
0x2811   :  { %4956 = vrcp.f32 %v2702_v29 }
0x281b   :  { %v4957_v59 = vpop.eup %4956 }
0x281c   :  { %v2716_v13 = vsub.f32 1.0, %v4957_v59  ;;  %v2722_v43 = vmul.f32 %v4957_v59, %v2617_v23 }
0x2870   :  { %v2707_v31 = vpop.permute.xlu0 %2706 }
0x2871   :  { %v2709_v51 = vmul.f32 %v4957_v59, %v2707_v31 }
0x2873   :  { %2711 = vrot.lane.b32.xlu1 %v2709_v51, %s5042_s5 }
0x28e5   :  { %v2712_v33 = vpop.permute.xlu1 %2711 }
0x28e6   :  { %v2714_v35 = vadd.f32 %v2712_v33, %v5333_v48 }
0x28e8   :  { %4958 = vtanh.f32 %v2714_v35 }
0x28f2   :  { %v4959_v38 = vpop.eup %4958 }
0x28f3   :  { %2718 = vrot.lane.b32.xlu0 %v4959_v38, %s5043_s9 }
0x2965   :  { %v2719_v39 = vpop.permute.xlu0 %2718 }
0x2966   :  { %v2721_v45 = vmul.f32 %v2719_v39, %v2716_v13 }
0x2968   :  { %v2723_v46 = vadd.f32 %v2722_v43, %v2721_v45  ;;  %v4984_v45 = vld [vmem:[%s5095_s8] ss:$0 sm:$0xff]  ;;  %s5935_s8 = sld [smem:[#allocation15_spill]] }
0x296a   :  { %2725 = vrot.lane.b32.xlu1 %v2723_v46, %s5043_s9 }
0x29dc   :  { %v5633_v10 = vpop.permute.xlu1 %2725 }
0x29dd   :  { %4557 = vmatmul.mubr.msk.f32.vlgmr.msra.gmra.mrb[44].mxu0 %vm643_vm2, %v5633_v10 }
0x29de   :  { %4565 = vmatpush3.msk.msra.mxu0 %vm674_vm1, %v5490_v58  ;;  %4566 = vmatprep.mubr.msk.f32.mxu0 %vm5040_vm3, %v5039_v36 }
0x2ab0   :  { %v2800_v48 = vpop.f32.mrb[44].mxu0 }
0x2ab1   :  { %v2801_v56 = vadd.f32 %v5509_v2, %v2800_v48  ;;  %v4558_v0 = vpop.f32.mrb[45].mxu0 }
0x2ab3   :  { %2812 = vrot.lane.b32.xlu0 %v2801_v56, %s5041_s0  ;;  %v2804_v63 = vadd.f32 %v2801_v56, %v5338_v52 }
0x2ab5   :  { %v2805_v62 = vsub.f32 0.0, %v2804_v63 }
0x2ab7   :  { %v2806_v55 = vmul.f32 1.442695, %v2805_v62 }
0x2ab9   :  { %4960 = vpow2.f32 %v2806_v55 }
0x2ac3   :  { %v4961_v47 = vpop.eup %4960 }
0x2ac4   :  { %v2808_v8 = vadd.f32 1.0, %v4961_v47 }
0x2ac6   :  { %4962 = vrcp.f32 %v2808_v8 }
0x2ad0   :  { %v4963_v40 = vpop.eup %4962 }
0x2ad1   :  { %v2822_v18 = vsub.f32 1.0, %v4963_v40  ;;  %v2828_v19 = vmul.f32 %v4963_v40, %v2723_v46  ;;  %v1947_v46 = vadd.f32 %v4984_v45, %v5545_v54 }
0x2b25   :  { %v2813_v14 = vpop.permute.xlu0 %2812 }
0x2b26   :  { %v2815_v58 = vmul.f32 %v4963_v40, %v2813_v14 }
0x2b28   :  { %2817 = vrot.lane.b32.xlu1 %v2815_v58, %s5042_s5 }
0x2b9a   :  { %v2818_v15 = vpop.permute.xlu1 %2817 }
0x2b9b   :  { %v2820_v16 = vadd.f32 %v2818_v15, %v5338_v52 }
0x2b9d   :  { %4964 = vtanh.f32 %v2820_v16 }
0x2ba7   :  { %v4965_v17 = vpop.eup %4964 }
0x2ba8   :  { %2824 = vrot.lane.b32.xlu0 %v4965_v17, %s5043_s9 }
0x2c1a   :  { %v2825_v12 = vpop.permute.xlu0 %2824 }
0x2c1b   :  { %v2827_v20 = vmul.f32 %v2825_v12, %v2822_v18 }
0x2c1d   :  { %v2829_v21 = vadd.f32 %v2828_v19, %v2827_v20 }
0x2c1f   :  { %2831 = vrot.lane.b32.xlu1 %v2829_v21, %s5043_s9 }
0x2c91   :  { %v5648_v22 = vpop.permute.xlu1 %2831 }
0x2c92   :  { %4562 = vmatmul.mubr.msk.f32.vlgmr.msra.gmra.mrb[40].mxu1 %vm643_vm2, %v5648_v22 }
0x2c93   :  { %3159 = vmatprep.mubr.f32.mxu1 %v5039_v36 }
0x2d65   :  { %v2906_v23 = vpop.f32.mrb[40].mxu1 }
0x2d66   :  { %v2907_v52 = vadd.f32 %v5509_v2, %v2906_v23  ;;  %v4563_v60 = vpop.f32.mrb[41].mxu1 }
0x2d68   :  { %2918 = vrot.lane.b32.xlu0 %v2907_v52, %s5041_s0  ;;  %v2910_v4 = vadd.f32 %v2907_v52, %v5325_v41  ;;  %v1350_v52 = vsel %vm643_vm2, %v5425_v5, 0.0 }
0x2d6a   :  { %v2911_v11 = vsub.f32 0.0, %v2910_v4  ;;  %v1665_v4 = vsel %vm643_vm2, %v5473_v28, 0.0 }
0x2d6c   :  { %v2912_v27 = vmul.f32 1.442695, %v2911_v11  ;;  %v1770_v11 = vsel %vm643_vm2, %v5492_v61, 0.0 }
0x2d6e   :  { %4966 = vpow2.f32 %v2912_v27  ;;  %v1875_v27 = vsel %vm643_vm2, %v5527_v50, 0.0 }
0x2d78   :  { %v4967_v37 = vpop.eup %4966 }
0x2d79   :  { %v2914_v6 = vadd.f32 1.0, %v4967_v37 }
0x2d7b   :  { %4968 = vrcp.f32 %v2914_v6 }
0x2d85   :  { %v4969_v3 = vpop.eup %4968 }
0x2d86   :  { %v2928_v35 = vsub.f32 1.0, %v4969_v3  ;;  %v2934_v13 = vmul.f32 %v4969_v3, %v2829_v21 }
0x2dda   :  { %v2919_v29 = vpop.permute.xlu0 %2918 }
0x2ddb   :  { %v2921_v59 = vmul.f32 %v4969_v3, %v2919_v29 }
0x2ddd   :  { %2923 = vrot.lane.b32.xlu1 %v2921_v59, %s5042_s5 }
0x2e4f   :  { %v2924_v31 = vpop.permute.xlu1 %2923 }
0x2e50   :  { %v2926_v51 = vadd.f32 %v2924_v31, %v5325_v41  ;;  %v1950_v41 = vadd.f32 %v1947_v46, %v5362_v7 }
0x2e52   :  { %4970 = vtanh.f32 %v2926_v51  ;;  %v1951_v48 = vsub.f32 0.0, %v1950_v41  ;;  %v3068_v41 = vld [vmem:[%s5110_s24] sm:$0xff] }
0x2e54   :  { %v1952_v56 = vmul.f32 1.442695, %v1951_v48  ;;  %v3070_v48 = vld [vmem:[%s5110_s24 + $0x10] sm:$0x3] }
0x2e56   :  { %4972 = vpow2.f32 %v1952_v56  ;;  %v3169_v56 = vld [vmem:[%s5120_s6 + $0x18] sm:$0xff] }
0x2e5c   :  { %v4971_v33 = vpop.eup %4970 }
0x2e5d   :  { %2930 = vrot.lane.b32.xlu0 %v4971_v33, %s5043_s9 }
0x2e60   :  { %v4973_v0 = vpop.eup %4972 }
0x2e61   :  { %v1954_v63 = vadd.f32 1.0, %v4973_v0  ;;  %v3166_v0 = vld [vmem:[%s5120_s6] sm:$0xff] }
0x2e63   :  { %4974 = vrcp.f32 %v1954_v63 }
0x2e6d   :  { %v4975_v55 = vpop.eup %4974 }
0x2e6e   :  { %v1968_v17 = vsub.f32 1.0, %v4975_v55  ;;  %v1974_v12 = vmul.f32 %v4975_v55, %v5522_v42  ;;  %v1455_v42 = vsel %vm643_vm2, %v5441_v30, 0.0 }
0x2ecf   :  { %v2931_v38 = vpop.permute.xlu0 %2930 }
0x2ed0   :  { %v2933_v39 = vmul.f32 %v2931_v38, %v2928_v35  ;;  %v1035_v35 = vsel %vm643_vm2, %v5377_v34, 0.0  ;;  %v2516_v34 = vsel %vm643_vm2, %v5602_v49, 0.0  ;;  %v3069_v49 = vld [vmem:[%s5110_s24 + $0x8] sm:$0xff] }
0x2ed2   :  { %v5659_v43 = vadd.f32 %v2934_v13, %v2933_v39  ;;  %v2728_v13 = vsel %vm643_vm2, %v5633_v10, 0.0  ;;  %v2622_v39 = vsel %vm643_vm2, %v5618_v24, 0.0  ;;  %v2304_v10 = vsel %vm643_vm2, %v5570_v57, 0.0  ;;  %v3071_v57 = vld [vmem:[%s5110_s24 + $0x18] sm:$0x3]  ;;  %s5938_s24 = sld [smem:[#allocation12_spill]] }
0x2ed3   :  { %v2198_v24 = vsel %vm643_vm2, %v5554_v26, 0.0  ;;  %v4675_v26 = vpack.c.bf16 %v3070_v48, %v3068_v41  ;;  %v3209_v41 = vld [vmem:[%s5120_s6 + $0x158] sm:$0xff] }
0x2ed4   :  { %2937 = vrot.lane.b32.xlu1 %v5659_v43, %s5043_s9 }
0x2ed8   :  { %1958 = vrot.lane.b32.xlu1 %v1947_v46, %s5041_s0  ;;  %v4672_v46 = vpack.c.bf16 %v3071_v57, %v3069_v49  ;;  %v3202_v49 = vld [vmem:[%s5120_s6 + $0x120] sm:$0xff]  ;;  %v3204_v57 = vld [vmem:[%s5120_s6 + $0x130] sm:$0xff] }
0x2ed9   :  { %v4716_v48 = vpack.c.bf16 %v3204_v57, %v3202_v49 }
0x2eda   :  { %4674 = vmatprep.subr.msk.bf16.mxu1 %vm4673_vm6, %v4672_v46  ;;  %v3207_v46 = vld [vmem:[%s5120_s6 + $0x148] sm:$0xff] }
0x2edb   :  { %4677 = vmatpush1.bf16.msk.msra.mxu1 %vm4673_vm6, %v4675_v26  ;;  %v4718_v26 = vpack.c.bf16 %v3209_v41, %v3207_v46 }
0x2f46   :  { %v5667_v62 = vpop.permute.xlu1 %2937 }
0x2f47   :  { %4567 = vmatmul.mubr.msk.f32.vlgmr.msra.gmra.mrb[46].mxu0 %vm643_vm2, %v5667_v62  ;;  %v2940_v38 = vsel %vm643_vm2, %v5667_v62, 0.0  ;;  %v3168_v62 = vld [vmem:[%s5120_s6 + $0x10] sm:$0xff] }
0x2f4a   :  { %v1959_v47 = vpop.permute.xlu1 %1958 }
0x2f4b   :  { %v1961_v8 = vmul.f32 %v4975_v55, %v1959_v47  ;;  %v3171_v55 = vld [vmem:[%s5120_s6 + $0x28] sm:$0xff]  ;;  %v3173_v47 = vld [vmem:[%s5120_s6 + $0x38] sm:$0xff] }
0x2f4d   :  { %1963 = vrot.lane.b32.xlu1 %v1961_v8, %s5042_s5  ;;  %v4680_v8 = vpack.c.bf16 %v3168_v62, %v3166_v0  ;;  %v3211_v0 = vld [vmem:[%s5120_s6 + $0x168] sm:$0xff] }
0x2fbf   :  { %v1964_v54 = vpop.permute.xlu1 %1963 }
0x2fc0   :  { %v1966_v40 = vadd.f32 %v1964_v54, %v5362_v7  ;;  %v1140_v7 = vsel %vm643_vm2, %v5393_v9, 0.0  ;;  %v1560_v9 = vsel %vm643_vm2, %v5457_v1, 0.0  ;;  %v4682_v54 = vpack.c.bf16 %v3173_v47, %v3171_v55  ;;  %v3210_v47 = vld [vmem:[%s5120_s6 + $0x160] sm:$0xff] }
0x2fc2   :  { %4976 = vtanh.f32 %v1966_v40  ;;  %v3170_v40 = vld [vmem:[%s5120_s6 + $0x20] sm:$0xff] }
0x2fcc   :  { %v4977_v14 = vpop.eup %4976 }
0x2fcd   :  { %1970 = vrot.lane.b32.xlu1 %v4977_v14, %s5043_s9  ;;  %v3172_v14 = vld [vmem:[%s5120_s6 + $0x30] sm:$0xff] }
0x301a   :  { %v3012_v58 = vpop.f32.mrb[46].mxu0 }
0x301b   :  { %v3013_v15 = vadd.f32 %v5509_v2, %v3012_v58  ;;  %v4568_v16 = vpop.f32.mrb[47].mxu0  ;;  %v1245_v2 = vsel %vm643_vm2, %v5409_v32, 0.0  ;;  %v3175_v58 = vld [vmem:[%s5120_s6 + $0x48] sm:$0xff] }
0x301c   :  { %v4684_v16 = vpack.c.bf16 %v3172_v14, %v3170_v40  ;;  %v3217_v40 = vld [vmem:[%s5120_s6 + $0x198] sm:$0xff] }
0x301d   :  { %3024 = vrot.lane.b32.xlu0 %v3013_v15, %s5041_s0  ;;  %v3016_v21 = vadd.f32 %v3013_v15, %v5328_v44  ;;  %v3177_v15 = vld [vmem:[%s5120_s6 + $0x58] sm:$0xff] }
0x301f   :  { %v3017_v23 = vsub.f32 0.0, %v3016_v21 }
0x3021   :  { %v3018_v60 = vmul.f32 1.442695, %v3017_v23  ;;  %v3180_v23 = vld [vmem:[%s5120_s6 + $0x70] sm:$0xff] }
0x3023   :  { %4978 = vpow2.f32 %v3018_v60  ;;  %v3185_v60 = vld [vmem:[%s5120_s6 + $0x98] sm:$0xff] }
0x302d   :  { %v4979_v32 = vpop.eup %4978 }
0x302e   :  { %v3020_v5 = vadd.f32 1.0, %v4979_v32  ;;  %v3184_v32 = vld [vmem:[%s5120_s6 + $0x90] sm:$0xff] }
0x3030   :  { %4980 = vrcp.f32 %v3020_v5  ;;  %v3189_v5 = vld [vmem:[%s5120_s6 + $0xb8] sm:$0xff] }
0x303a   :  { %v4981_v30 = vpop.eup %4980 }
0x303b   :  { %v3034_v59 = vsub.f32 1.0, %v4981_v30  ;;  %v3040_v31 = vmul.f32 %v4981_v30, %v5659_v43  ;;  %v2410_v43 = vsel %vm643_vm2, %v5586_v25, 0.0  ;;  %v2092_v25 = vsel %vm643_vm2, %v5536_v53, 0.0  ;;  %v3167_v53 = vld [vmem:[%s5120_s6 + $0x8] sm:$0xff] }
0x303c   :  { %v4678_v63 = vpack.c.bf16 %v3169_v56, %v3167_v53  ;;  %v3206_v53 = vld [vmem:[%s5120_s6 + $0x140] sm:$0xff]  ;;  %v3208_v56 = vld [vmem:[%s5120_s6 + $0x150] sm:$0xff] }
0x303d   :  { %v4720_v62 = vpack.c.bf16 %v3208_v56, %v3206_v53 }
0x303e   :  { %4679 = vmatprep.subr.bf16.mxu0 %v4678_v63  ;;  %v3213_v63 = vld [vmem:[%s5120_s6 + $0x178] sm:$0xff] }
0x303f   :  { %v1971_v18 = vpop.permute.xlu1 %1970  ;;  %4681 = vmatpush1.bf16.msra.mxu0 %v4680_v8  ;;  %v4722_v55 = vpack.c.bf16 %v3213_v63, %v3211_v0  ;;  %v3212_v8 = vld [vmem:[%s5120_s6 + $0x170] sm:$0xff] }
0x3040   :  { %v1973_v19 = vmul.f32 %v1971_v18, %v1968_v17  ;;  %4683 = vmatprep.subr.bf16.mxu0 %v4682_v54  ;;  %v4686_v17 = vpack.c.bf16 %v3177_v15, %v3175_v58  ;;  %v3174_v18 = vld [vmem:[%s5120_s6 + $0x40] sm:$0xff]  ;;  %v3215_v54 = vld [vmem:[%s5120_s6 + $0x188] sm:$0xff]  ;;  %v4724_v14 = vpack.c.bf16 %v3212_v8, %v3210_v47 }
0x3041   :  { %v4726_v58 = vpack.c.bf16 %v3217_v40, %v3215_v54  ;;  %v3214_v15 = vld [vmem:[%s5120_s6 + $0x180] sm:$0xff]  ;;  %v3228_v54 = vld [vmem:[%s5120_s6 + $0x1f0] sm:$0xff] }
0x3042   :  { %v1975_v20 = vadd.f32 %v1974_v12, %v1973_v19  ;;  %v3176_v12 = vld [vmem:[%s5120_s6 + $0x50] sm:$0xff]  ;;  %v3179_v19 = vld [vmem:[%s5120_s6 + $0x68] sm:$0xff]  ;;  %v3226_v8 = vld [vmem:[%s5120_s6 + $0x1e0] sm:$0xff] }
0x3043   :  { %4685 = vmatpush1.bf16.msra.mxu0 %v4684_v16  ;;  %v3216_v16 = vld [vmem:[%s5120_s6 + $0x190] sm:$0xff]  ;;  %v4740_v40 = vpack.c.bf16 %v3228_v54, %v3226_v8 }
0x3044   :  { %1977 = vrot.lane.b32.xlu1 %v1975_v20, %s5043_s9  ;;  %v3181_v20 = vld [vmem:[%s5120_s6 + $0x78] sm:$0xff]  ;;  %4687 = vmatprep.subr.bf16.mxu0 %v4686_v17  ;;  %v3219_v17 = vld [vmem:[%s5120_s6 + $0x1a8] sm:$0xff] }
0x3045   :  { %v4690_v21 = vpack.c.bf16 %v3181_v20, %v3179_v19  ;;  %v3218_v20 = vld [vmem:[%s5120_s6 + $0x1a0] sm:$0xff] }
0x3068   :  { %1141 = vadd.xlane.f32.xlu1 %v1140_v7  ;;  %v4688_v7 = vpack.c.bf16 %v3176_v12, %v3174_v18  ;;  %v3221_v18 = vld [vmem:[%s5120_s6 + $0x1b8] sm:$0xff]  ;;  %v4728_v12 = vpack.c.bf16 %v3216_v16, %v3214_v15  ;;  %v3313_v15 = vld [vmem:[%s5135_s27] sm:$0xff] }
0x3069   :  { %v4730_v19 = vpack.c.bf16 %v3221_v18, %v3219_v17  ;;  %v3314_v17 = vld [vmem:[%s5135_s27 + $0x8] sm:$0xff]  ;;  %v3331_v18 = vld [vmem:[%s5135_s27 + $0x90] sm:$0xff] }
0x306a   :  { %4689 = vmatpush1.bf16.msra.mxu0 %v4688_v7  ;;  %v3220_v7 = vld [vmem:[%s5120_s6 + $0x1b0] sm:$0xff] }
0x306b   :  { %4691 = vmatprep.subr.bf16.mxu0 %v4690_v21  ;;  %v3223_v21 = vld [vmem:[%s5120_s6 + $0x1c8] sm:$0xff] }
0x306c   :  { %1246 = vadd.xlane.f32.xlu1 %v1245_v2  ;;  %v3178_v2 = vld [vmem:[%s5120_s6 + $0x60] sm:$0xff] }
0x3070   :  { %1351 = vadd.xlane.f32.xlu1 %v1350_v52  ;;  %v3183_v52 = vld [vmem:[%s5120_s6 + $0x88] sm:$0xff] }
0x3074   :  { %1456 = vadd.xlane.f32.xlu1 %v1455_v42  ;;  %v4692_v42 = vpack.c.bf16 %v3180_v23, %v3178_v2  ;;  %v3225_v2 = vld [vmem:[%s5120_s6 + $0x1d8] sm:$0xff]  ;;  %v4732_v23 = vpack.c.bf16 %v3220_v7, %v3218_v20  ;;  %v3315_v7 = vld [vmem:[%s5135_s27 + $0x10] sm:$0xff] }
0x3076   :  { %4693 = vmatpush1.bf16.msra.mxu0 %v4692_v42  ;;  %v3224_v42 = vld [vmem:[%s5120_s6 + $0x1d0] sm:$0xff] }
0x3078   :  { %1561 = vadd.xlane.f32.xlu1 %v1560_v9  ;;  %v4694_v9 = vpack.c.bf16 %v3185_v60, %v3183_v52  ;;  %v4734_v52 = vpack.c.bf16 %v3225_v2, %v3223_v21  ;;  %v3222_v60 = vld [vmem:[%s5120_s6 + $0x1c0] sm:$0xff]  ;;  %v3316_v21 = vld [vmem:[%s5135_s27 + $0x18] sm:$0xff] }
0x3079   :  { %v3333_v2 = vld [vmem:[%s5135_s27 + $0xa0] sm:$0xff] }
0x307a   :  { %4695 = vmatprep.subr.bf16.mxu0 %v4694_v9  ;;  %v4736_v9 = vpack.c.bf16 %v3224_v42, %v3222_v60  ;;  %v3317_v42 = vld [vmem:[%s5135_s27 + $0x20] sm:$0xff] }
0x307c   :  { %1666 = vadd.xlane.f32.xlu1 %v1665_v4  ;;  %v3182_v4 = vld [vmem:[%s5120_s6 + $0x80] sm:$0xff] }
0x3080   :  { %1771 = vadd.xlane.f32.xlu1 %v1770_v11  ;;  %v3187_v11 = vld [vmem:[%s5120_s6 + $0xa8] sm:$0xff] }
0x3084   :  { %1876 = vadd.xlane.f32.xlu1 %v1875_v27  ;;  %v4696_v27 = vpack.c.bf16 %v3184_v32, %v3182_v4 }
0x3086   :  { %4697 = vmatpush1.bf16.msra.mxu0 %v4696_v27 }
0x308f   :  { %v3025_v37 = vpop.permute.xlu0 %3024 }
0x3090   :  { %v3027_v6 = vmul.f32 %v4981_v30, %v3025_v37  ;;  %v4698_v30 = vpack.c.bf16 %v3189_v5, %v3187_v11  ;;  %v3186_v37 = vld [vmem:[%s5120_s6 + $0xa0] sm:$0xff] }
0x3092   :  { %3029 = vrot.lane.b32.xlu0 %v3027_v6, %s5042_s5  ;;  %v3188_v6 = vld [vmem:[%s5120_s6 + $0xb0] sm:$0xff]  ;;  %4699 = vmatprep.subr.bf16.mxu0 %v4698_v30 }
0x30b6   :  { %v1978_v1 = vpop.permute.xlu1 %1977 }
0x30b7   :  { %v1980_v28 = vsel %vm643_vm2, %v1978_v1, 0.0  ;;  %v3191_v1 = vld [vmem:[%s5120_s6 + $0xc8] sm:$0xff] }
0x30b8   :  { %1981 = vadd.xlane.f32.xlu1 %v1980_v28  ;;  %v3193_v28 = vld [vmem:[%s5120_s6 + $0xd8] sm:$0xff] }
0x30f5   :  { %v1142_v11 = vpop.xlane.xlu1 %1141 }
0x30f9   :  { %v1247_v27 = vpop.xlane.xlu1 %1246 }
0x3104   :  { %v3030_v3 = vpop.permute.xlu0 %3029 }
0x3105   :  { %v3032_v29 = vadd.f32 %v3030_v3, %v5328_v44  ;;  %v2834_v44 = vsel %vm643_vm2, %v5648_v22, 0.0  ;;  %v4700_v3 = vpack.c.bf16 %v3188_v6, %v3186_v37  ;;  %v1352_v37 = vpop.xlane.xlu1 %1351 }
0x3107   :  { %4982 = vtanh.f32 %v3032_v29  ;;  %v4702_v29 = vpack.c.bf16 %v3193_v28, %v3191_v1  ;;  %4701 = vmatpush1.bf16.msra.mxu0 %v4700_v3 }
0x3109   :  { %4703 = vmatprep.subr.bf16.mxu0 %v4702_v29  ;;  %v1457_v1 = vpop.xlane.xlu1 %1456 }
0x310d   :  { %v1562_v3 = vpop.xlane.xlu1 %1561 }
0x3111   :  { %v4983_v61 = vpop.eup %4982 }
0x3112   :  { %3036 = vrot.lane.b32.xlu0 %v4983_v61, %s5043_s9  ;;  %v3190_v61 = vld [vmem:[%s5120_s6 + $0xc0] sm:$0xff] }
0x3184   :  { %v3037_v50 = vpop.permute.xlu0 %3036 }
0x3185   :  { %v3039_v51 = vmul.f32 %v3037_v50, %v3034_v59  ;;  %v3192_v59 = vld [vmem:[%s5120_s6 + $0xd0] sm:$0xff]  ;;  %v3195_v50 = vld [vmem:[%s5120_s6 + $0xe8] sm:$0xff] }
0x3187   :  { %v3041_v33 = vadd.f32 %v3040_v31, %v3039_v51  ;;  %v3197_v31 = vld [vmem:[%s5120_s6 + $0xf8] sm:$0xff]  ;;  %v4704_v51 = vpack.c.bf16 %v3192_v59, %v3190_v61  ;;  %v1667_v61 = vpop.xlane.xlu1 %1666 }
0x3189   :  { %3043 = vrot.lane.b32.xlu0 %v3041_v33, %s5043_s9  ;;  %v4706_v33 = vpack.c.bf16 %v3197_v31, %v3195_v50  ;;  %4705 = vmatpush1.bf16.msra.mxu0 %v4704_v51 }
0x318b   :  { %4707 = vmatprep.subr.bf16.mxu0 %v4706_v33  ;;  %v1772_v50 = vpop.xlane.xlu1 %1771 }
0x31a8   :  { %1036 = vadd.xlane.f32.xlu0 %v1035_v35  ;;  %v3194_v35 = vld [vmem:[%s5120_s6 + $0xe0] sm:$0xff] }
0x31ac   :  { %2941 = vadd.xlane.f32.xlu0 %v2940_v38  ;;  %v3196_v38 = vld [vmem:[%s5120_s6 + $0xf0] sm:$0xff] }
0x31b0   :  { %2835 = vadd.xlane.f32.xlu0 %v2834_v44  ;;  %v3199_v44 = vld [vmem:[%s5120_s6 + $0x108] sm:$0xff] }
0x31b4   :  { %2729 = vadd.xlane.f32.xlu0 %v2728_v13  ;;  %v3201_v13 = vld [vmem:[%s5120_s6 + $0x118] sm:$0xff] }
0x31b8   :  { %2623 = vadd.xlane.f32.xlu0 %v2622_v39  ;;  %v4708_v39 = vpack.c.bf16 %v3196_v38, %v3194_v35 }
0x31ba   :  { %4709 = vmatpush1.bf16.msra.mxu0 %v4708_v39 }
0x31bc   :  { %2517 = vadd.xlane.f32.xlu0 %v2516_v34  ;;  %v4710_v34 = vpack.c.bf16 %v3201_v13, %v3199_v44  ;;  %v1877_v13 = vpop.xlane.xlu1 %1876 }
0x31be   :  { %4711 = vmatprep.subr.bf16.mxu0 %v4710_v34 }
0x31c0   :  { %2411 = vadd.xlane.f32.xlu0 %v2410_v43  ;;  %v3198_v43 = vld [vmem:[%s5120_s6 + $0x100] sm:$0xff]  ;;  %v1982_v57 = vpop.xlane.xlu1 %1981 }
0x31c4   :  { %2305 = vadd.xlane.f32.xlu0 %v2304_v10  ;;  %v3200_v10 = vld [vmem:[%s5120_s6 + $0x110] sm:$0xff] }
0x31fb   :  { %v3044_v22 = vpop.permute.xlu0 %3043 }
0x31fc   :  { %v3046_v45 = vsel %vm643_vm2, %v3044_v22, 0.0  ;;  %v3203_v22 = vld [vmem:[%s5120_s6 + $0x128] sm:$0xff] }
0x31fd   :  { %3047 = vadd.xlane.f32.xlu0 %v3046_v45  ;;  %v3205_v45 = vld [vmem:[%s5120_s6 + $0x138] sm:$0xff] }
0x3201   :  { %2199 = vadd.xlane.f32.xlu0 %v2198_v24  ;;  %v4712_v24 = vpack.c.bf16 %v3200_v10, %v3198_v43 }
0x3203   :  { %4713 = vmatpush1.bf16.msra.mxu0 %v4712_v24 }
0x3205   :  { %2093 = vadd.xlane.f32.xlu0 %v2092_v25  ;;  %v4714_v25 = vpack.c.bf16 %v3205_v45, %v3203_v22 }
0x3207   :  { %4715 = vmatprep.subr.bf16.mxu0 %v4714_v25 }
0x3208   :  { %4717 = vmatpush1.bf16.msra.mxu0 %v4716_v48 }
0x3209   :  { %4719 = vmatprep.subr.bf16.mxu0 %v4718_v26 }
0x320c   :  { %4721 = vmatpush1.bf16.msra.mxu0 %v4720_v62  ;;  %v3227_v62 = vld [vmem:[%s5120_s6 + $0x1e8] sm:$0xff] }
0x320d   :  { %4723 = vmatprep.subr.bf16.mxu0 %v4722_v55  ;;  %v3229_v55 = vld [vmem:[%s5120_s6 + $0x1f8] sm:$0xff]  ;;  %s5939_s6 = sld [smem:[#allocation14_spill]] }
0x320e   :  { %v4738_v47 = vpack.c.bf16 %v3229_v55, %v3227_v62  ;;  %v3328_v62 = vld [vmem:[%s5135_s27 + $0x78] sm:$0xff] }
0x3210   :  { %4725 = vmatpush1.bf16.msra.mxu0 %v4724_v14  ;;  %v3329_v14 = vld [vmem:[%s5135_s27 + $0x80] sm:$0xff] }
0x3211   :  { %4727 = vmatprep.subr.bf16.mxu0 %v4726_v58  ;;  %v3330_v58 = vld [vmem:[%s5135_s27 + $0x88] sm:$0xff] }
0x3212   :  { %v4742_v16 = vpack.c.bf16 %v3330_v58, %v3329_v14 }
0x3214   :  { %4729 = vmatpush1.bf16.msra.mxu0 %v4728_v12  ;;  %v3332_v12 = vld [vmem:[%s5135_s27 + $0x98] sm:$0xff]  ;;  %4743 = vmatprep.subr.bf16.mxu1 %v4742_v16  ;;  %v5045_v16 = vmov 0.0|0.0  }
0x3215   :  { %4731 = vmatprep.subr.bf16.mxu0 %v4730_v19  ;;  %v4744_v19 = vpack.c.bf16 %v3314_v17, %v3313_v15  ;;  %v4746_v20 = vpack.c.bf16 %v3332_v12, %v3331_v18  ;;  %v3497_v17 = vld [vmem:[%s5931_s21] sm:$0xff]  ;;  %v3498_v18 = vld [vmem:[%s5931_s21 + $0x8] sm:$0xff] }
0x3218   :  { %4733 = vmatpush1.bf16.msra.mxu0 %v4732_v23  ;;  %v3334_v23 = vld [vmem:[%s5135_s27 + $0xa8] sm:$0xff] }
0x3219   :  { %4735 = vmatprep.subr.bf16.mxu0 %v4734_v52  ;;  %v4748_v52 = vpack.c.bf16 %v3316_v21, %v3315_v7  ;;  %v4750_v60 = vpack.c.bf16 %v3334_v23, %v3333_v2  ;;  %v3415_v7 = vld [vmem:[%s5932_s25] sm:$0xff]  ;;  %v4775_v21 = vpack.c.bf16 %v3498_v18, %v3497_v17  ;;  %v3499_v2 = vld [vmem:[%s5931_s21 + $0x10] sm:$0xff]  ;;  %v3500_v23 = vld [vmem:[%s5931_s21 + $0x18] sm:$0xff] }
0x321a   :  { %v3780_v18 = vld [vmem:[%s5941_s15] sm:$0x3f] }
0x321c   :  { %4737 = vmatpush1.bf16.msra.mxu0 %v4736_v9  ;;  %v3318_v9 = vld [vmem:[%s5135_s27 + $0x28] sm:$0xff] }
0x321d   :  { %4739 = vmatprep.subr.bf16.mxu0 %v4738_v47  ;;  %v3230_v47 = vld [vmem:[%s5930_s17] sm:$0x3] }
0x3220   :  { %4741 = vmatpush1.bf16.msra.mxu0 %v4740_v40 }
0x3221   :  { %4798 = vmatprep.subr.bf16.mxu0 %v5045_v16 }
0x3235   :  { %v1037_v4 = vpop.xlane.xlu0 %1036 }
0x3239   :  { %v2942_v32 = vpop.xlane.xlu0 %2941 }
0x323a   :  { %v2943_v51 = vadd.f32 %v2942_v32, %v1142_v11  ;;  %v3336_v32 = vld [vmem:[%s5135_s27 + $0xb8] sm:$0xff]  ;;  %v4752_v11 = vpack.c.bf16 %v3318_v9, %v3317_v42  ;;  %v3502_v42 = vld [vmem:[%s5931_s21 + $0x28] sm:$0xff] }
0x323d   :  { %v2836_v5 = vpop.xlane.xlu0 %2835 }
0x323e   :  { %v2837_v35 = vadd.f32 %v2836_v5, %v1247_v27  ;;  %v3319_v27 = vld [vmem:[%s5135_s27 + $0x30] sm:$0xff] }
0x3241   :  { %v2730_v30 = vpop.xlane.xlu0 %2729 }
0x3242   :  { %v2731_v38 = vadd.f32 %v2730_v30, %v1352_v37  ;;  %v3320_v30 = vld [vmem:[%s5135_s27 + $0x38] sm:$0xff]  ;;  %v3337_v37 = vld [vmem:[%s5135_s27 + $0xc0] sm:$0xff] }
0x3245   :  { %v2624_v6 = vpop.xlane.xlu0 %2623 }
0x3246   :  { %v2625_v39 = vadd.f32 %v2624_v6, %v1457_v1  ;;  %v3338_v6 = vld [vmem:[%s5135_s27 + $0xc8] sm:$0xff]  ;;  %v4756_v1 = vpack.c.bf16 %v3320_v30, %v3319_v27  ;;  %v3603_v27 = vld [vmem:[%s5934_s3] sm:$0xff] }
0x3247   :  { %v3604_v30 = vld [vmem:[%s5934_s3 + $0x8] sm:$0xff] }
0x3249   :  { %v2518_v28 = vpop.xlane.xlu0 %2517 }
0x324a   :  { %v2519_v10 = vadd.f32 %v2518_v28, %v1562_v3  ;;  %v4758_v28 = vpack.c.bf16 %v3338_v6, %v3337_v37  ;;  %v3321_v3 = vld [vmem:[%s5135_s27 + $0x40] sm:$0xff] }
0x324d   :  { %v2412_v29 = vpop.xlane.xlu0 %2411 }
0x324e   :  { %v2413_v45 = vadd.f32 %v2412_v29, %v1667_v61  ;;  %v3322_v29 = vld [vmem:[%s5135_s27 + $0x48] sm:$0xff]  ;;  %v3339_v61 = vld [vmem:[%s5135_s27 + $0xd0] sm:$0xff] }
0x3251   :  { %v2306_v59 = vpop.xlane.xlu0 %2305 }
0x3252   :  { %v2307_v25 = vadd.f32 %v2306_v59, %v1772_v50  ;;  %v3340_v59 = vld [vmem:[%s5135_s27 + $0xd8] sm:$0xff]  ;;  %v4760_v50 = vpack.c.bf16 %v3322_v29, %v3321_v3  ;;  %v3605_v29 = vld [vmem:[%s5934_s3 + $0x10] sm:$0xff] }
0x328a   :  { %v3048_v31 = vpop.xlane.xlu0 %3047 }
0x328b   :  { %v3049_v33 = vadd.f32 %v3048_v31, %v1037_v4  ;;  %v3335_v4 = vld [vmem:[%s5135_s27 + $0xb0] sm:$0xff]  ;;  %v4762_v31 = vpack.c.bf16 %v3340_v59, %v3339_v61  ;;  %v3606_v61 = vld [vmem:[%s5934_s3 + $0x18] sm:$0xff] }
0x328c   :  { %v4754_v5 = vpack.c.bf16 %v3336_v32, %v3335_v4  ;;  %v3503_v4 = vld [vmem:[%s5931_s21 + $0x30] sm:$0xff]  ;;  %v3504_v32 = vld [vmem:[%s5931_s21 + $0x38] sm:$0xff]  ;;  %v4790_v59 = vpack.c.bf16 %v3606_v61, %v3605_v29 }
0x328d   :  { %v3051_v44 = vsel %vm3050_vm7, %v3049_v33, %v2943_v51  ;;  %v3323_v51 = vld [vmem:[%s5135_s27 + $0x50] sm:$0xff]  ;;  %v3324_v33 = vld [vmem:[%s5135_s27 + $0x58] sm:$0xff] }
0x328e   :  { %v3053_v34 = vsel %vm3052_vm8, %v3051_v44, %v2837_v35  ;;  %v2200_v43 = vpop.xlane.xlu0 %2199  ;;  %v3341_v35 = vld [vmem:[%s5135_s27 + $0xe0] sm:$0xff]  ;;  %v4764_v44 = vpack.c.bf16 %v3324_v33, %v3323_v51  ;;  %v3609_v33 = vld [vmem:[%s5934_s3 + $0x30] sm:$0xff] }
0x328f   :  { %v3055_v22 = vsel %vm3054_vm9, %v3053_v34, %v2731_v38  ;;  %v2201_v41 = vadd.f32 %v2200_v43, %v1877_v13  ;;  %v3342_v38 = vld [vmem:[%s5135_s27 + $0xe8] sm:$0xff] }
0x3290   :  { %v3056_v24 = vsel %vm643_vm2, %v3055_v22, %v2625_v39  ;;  %v4766_v13 = vpack.c.bf16 %v3342_v38, %v3341_v35  ;;  %v3325_v39 = vld [vmem:[%s5135_s27 + $0x60] sm:$0xff]  ;;  %v3326_v34 = vld [vmem:[%s5135_s27 + $0x68] sm:$0xff]  ;;  %v3610_v35 = vld [vmem:[%s5934_s3 + $0x38] sm:$0xff] }
0x3291   :  { %v3058_v49 = vsel %vm3057_vm10, %v3056_v24, %v2519_v10  ;;  %v4768_v43 = vpack.c.bf16 %v3326_v34, %v3325_v39  ;;  %v3074_v10 = vlaneseq  ;;  %v3072_v24 = vld [vmem:[%s5929_s13] sm:$0x3]  ;;  %v4796_v38 = vpack.c.bf16 %v3610_v35, %v3609_v33  ;;  %v3694_v39 = vld [vmem:[%s5935_s8 + $0x10] sm:$0xff] }
0x3292   :  { %v3060_v46 = vsel %vm3059_vm11, %v3058_v49, %v2413_v45  ;;  %v2094_v48 = vpop.xlane.xlu0 %2093 }
0x3293   :  { %v3062_v26 = vsel %vm3061_vm12, %v3060_v46, %v2307_v25  ;;  %v2095_v53 = vadd.f32 %v2094_v48, %v1982_v57  ;;  %v3075_v22 = vshrl.u32 %v3074_v10, 7 }
0x3294   :  { %v3064_v56 = vsel %vm3063_vm13, %v3062_v26, %v2201_v41 }
0x3295   :  { %v3066_v0 = vsel %vm3065_vm14, %v3064_v56, %v2095_v53  ;;  %v3080_v45 = vsub.s32 1, %v3075_v22  ;;  %v3076_v25 = vsub.s32 0, %v3075_v22  ;;  %v3343_v53 = vld [vmem:[%s5135_s27 + $0xf0] sm:$0xff]  ;;  %v3344_v56 = vld [vmem:[%s5135_s27 + $0xf8] sm:$0xff]  ;;  %v3696_v22 = vld [vmem:[%s5935_s8 + $0x20] sm:$0xff] }
0x3296   :  { %v3067_v63 = vmul.f32 0.125, %v3066_v0  ;;  %v4770_v0 = vpack.c.bf16 %v3344_v56, %v3343_v53 }
0x3297   :  { %v3081_v49 = vrot.slane %v3072_v24, %v3080_v45  ;;  %v3077_v57 = vrot.slane %v3072_v24, %v3076_v25  ;;  %v3239_v8 = vrot.slane %v3230_v47, %v3080_v45  ;;  %v3235_v54 = vrot.slane %v3230_v47, %v3076_v25  ;;  %v3697_v45 = vld [vmem:[%s5935_s8 + $0x28] sm:$0xff]  ;;  %v4182_v25 = vld [vmem:[%s5936_s14] ss:$0 sm:$0xff] }
0x3298   :  { %4179 = vmatmul.mubr.msk.f32.vlgmr.msra.gmra.mrb[42].mxu1 %vm3084_vm15, %v3067_v63  ;;  %v3327_v63 = vld [vmem:[%s5135_s27 + $0x70] sm:$0xff]  ;;  %v4805_v24 = vpack.c.bf16 %v3697_v45, %v3696_v22  ;;  %s5940_s27 = sld [smem:[#allocation16_spill]] }
0x3299   :  { %4745 = vmatpush3.bf16.msra.mxu1 %v4744_v19  ;;  %v4772_v55 = vpack.c.bf16 %v3328_v62, %v3327_v63  ;;  %v3699_v63 = vld [vmem:[%s5935_s8 + $0x38] sm:$0xff] }
0x329a   :  { %4747 = vmatprep.subr.bf16.mxu1 %v4746_v20 }
0x329d   :  { %4749 = vmatpush3.bf16.msra.mxu1 %v4748_v52  ;;  %v4778_v52 = vpack.c.bf16 %v3500_v23, %v3499_v2  ;;  %v3932_v2 = vld [vmem:[%s5195_s30 + $0x18] sm:$0xff] }
0x329e   :  { %4751 = vmatprep.subr.bf16.mxu1 %v4750_v60  ;;  %v3501_v60 = vld [vmem:[%s5931_s21 + $0x20] sm:$0xff] }
0x329f   :  { %v4781_v9 = vpack.c.bf16 %v3502_v42, %v3501_v60  ;;  %v3934_v60 = vld [vmem:[%s5195_s30 + $0x28] sm:$0xff] }
0x32a1   :  { %4753 = vmatpush3.bf16.msra.mxu1 %v4752_v11  ;;  %v4784_v11 = vpack.c.bf16 %v3504_v32, %v3503_v4  ;;  %v3936_v4 = vld [vmem:[%s5195_s30 + $0x38] sm:$0xff] }
0x32a2   :  { %4755 = vmatprep.subr.bf16.mxu1 %v4754_v5  ;;  %v4180_v5 = vld [vmem:[%s5933_s29] ss:$0 sm:$0xff] }
0x32a5   :  { %4757 = vmatpush3.bf16.msra.mxu1 %v4756_v1 }
0x32a6   :  { %4759 = vmatprep.subr.bf16.mxu1 %v4758_v28  ;;  %v4787_v28 = vpack.c.bf16 %v3604_v30, %v3603_v27 }
0x32a9   :  { %4761 = vmatpush3.bf16.msra.mxu1 %v4760_v50  ;;  %v3607_v50 = vld [vmem:[%s5934_s3 + $0x20] sm:$0xff] }
0x32aa   :  { %4763 = vmatprep.subr.bf16.mxu1 %v4762_v31  ;;  %v3608_v31 = vld [vmem:[%s5934_s3 + $0x28] sm:$0xff] }
0x32ab   :  { %v4793_v51 = vpack.c.bf16 %v3608_v31, %v3607_v50 }
0x32ad   :  { %4765 = vmatpush3.bf16.msra.mxu1 %v4764_v44  ;;  %v3692_v44 = vld [vmem:[%s5935_s8] sm:$0xff] }
0x32ae   :  { %4767 = vmatprep.subr.bf16.mxu1 %v4766_v13  ;;  %v3693_v13 = vld [vmem:[%s5935_s8 + $0x8] sm:$0xff] }
0x32af   :  { %v4799_v34 = vpack.c.bf16 %v3693_v13, %v3692_v44 }
0x32b1   :  { %4769 = vmatpush3.bf16.msra.mxu1 %v4768_v43  ;;  %v3695_v43 = vld [vmem:[%s5935_s8 + $0x18] sm:$0xff] }
0x32b2   :  { %4771 = vmatprep.subr.bf16.mxu1 %v4770_v0  ;;  %v4802_v10 = vpack.c.bf16 %v3695_v43, %v3694_v39  ;;  %v3698_v0 = vld [vmem:[%s5935_s8 + $0x30] sm:$0xff] }
0x32b3   :  { %v4808_v62 = vpack.c.bf16 %v3699_v63, %v3698_v0 }
0x32b5   :  { %4773 = vmatpush3.bf16.msra.mxu1 %v4772_v55  ;;  %v4186_v55 = vld [vmem:[%s5939_s6] ss:$0 sm:$0xff] }
0x32b6   :  { %4569 = vmatprep.subr.mxu1 %v5039_v36 }
0x336b   :  { %v3161_v46 = vpop.f32.mrb[42].mxu1 }
0x336c   :  { %v3163_v41 = vpop.f32.mrb[43].mxu1  ;;  %v3162_v26 = vadd.f32 %v3161_v46, %v3077_v57 }
0x336d   :  { %v3164_v48 = vadd.f32 %v3163_v41, %v3081_v49  ;;  %v4184_v41 = vld [vmem:[%s5937_s19] ss:$0 sm:$0xff] }
0x336f   :  { %3306 = vmatprep.mubr.f32.mxu0 %v3164_v48 }
0x3370   :  { %3307 = vmatmul.mubr.f32.vlgmr.msra.gmra.mrb[48].mxu0 %v3162_v26  ;;  %v4185_v26 = vld [vmem:[%s5938_s24] ss:$0 sm:$0xff] }
0x3371   :  { %4628 = vmatprep.mubr.msk.f32.mxu0 %vm5040_vm3, %v5039_v36  ;;  %4800 = vmatpush3.bf16.msra.mxu0 %v4799_v34 }
0x3372   :  { %4801 = vmatprep.subr.bf16.mxu0 %v5045_v16 }
0x3375   :  { %4803 = vmatpush3.bf16.msra.mxu0 %v4802_v10 }
0x3376   :  { %4804 = vmatprep.subr.bf16.mxu0 %v5045_v16 }
0x3379   :  { %4806 = vmatpush3.bf16.msra.mxu0 %v4805_v24 }
0x337a   :  { %4807 = vmatprep.subr.bf16.mxu0 %v5045_v16 }
0x337d   :  { %4809 = vmatpush3.bf16.msra.mxu0 %v4808_v62 }
0x3443   :  { %v3308_v40 = vpop.f32.mrb[48].mxu0 }
0x3444   :  { %v3310_v14 = vpop.f32.mrb[49].mxu0  ;;  %v3309_v15 = vadd.f32 %v3308_v40, %v3235_v54 }
0x3445   :  { %v3311_v58 = vadd.f32 %v3310_v14, %v3239_v8  ;;  %v4188_v14 = vld [vmem:[%s5940_s27] ss:$0 sm:$0xff] }
0x3447   :  { %3409 = vmatprep.mubr.f32.mxu1 %v3311_v58 }
0x3448   :  { %3410 = vmatmul.mubr.f32.vlgmr.msra.gmra.mrb[44].mxu1 %v3309_v15 }
0x3449   :  { %4571 = vmatprep.mubr.msk.f32.mxu1 %vm5040_vm3, %v5039_v36 }
0x351b   :  { %v4327_v12 = vpop.f32.mrb[44].mxu1 }
0x351c   :  { %v4328_v19 = vpop.f32.mrb[45].mxu1 }
0x351d   :  { %v4329_v20 = vadd.f32 %v4328_v19, %v4327_v12  ;;  %v3929_v12 = vld [vmem:[%s5195_s30] sm:$0xff]  ;;  %v3930_v19 = vld [vmem:[%s5195_s30 + $0x8] sm:$0xff] }
0x351f   :  { %4570 = vmatpush3.msra.mxu1 %v4329_v20  ;;  %v3854_v20 = vld [vmem:[%s5190_s20] sm:$0x3f]  ;;  %s5046_s20 = smov [#allocation2]  }
0x3520   :  { %4572 = vmatmul.mubr.msk.f32.vlgmr.msra.gmra.mrb[46].mxu1 %vm3063_vm13, %v3415_v7  ;;  %4774 = vmatprep.subr.bf16.mxu1 %v5045_v16  ;;  %v4811_v7 = vpack.c.bf16 %v3930_v19, %v3929_v12  ;;  %s4024_s16 = sshll.u32 %s5046_s20, 4  ;;  %s4025_s16 = int_to_ptr.vmem [resolvable:$true] %s4024_s16 }
0x3521   :  { %4776 = vmatpush3.bf16.msra.mxu1 %v4775_v21  ;;  %4590 = vmatprep.mubr.msk.f32.mxu1 %vm5040_vm3, %v5039_v36  ;;  %v3931_v21 = vld [vmem:[%s5195_s30 + $0x10] sm:$0xff]  ;;  %s4985_s18 = scalar_lea.vmem %s4025_s16, 128  ;;  %p4990_p1 = scmp.lt.s32.totalorder %s4025_s16, %s4025_s16 }
0x3522   :  { %4777 = vmatprep.subr.bf16.mxu1 %v5045_v16  ;;  %v4814_v23 = vpack.c.bf16 %v3932_v2, %v3931_v21  ;;  %p4986_p0 = scmp.ne.s32.totalorder %s4025_s16, %s4985_s18  ;;  %p4991_p2 = scmp.lt.s32.totalorder %s4985_s18, %s4985_s18 }
0x3524   :  { %p4992_p3 = por %p4991_p2, %p4990_p1 }
0x3525   :  { %4779 = vmatpush3.bf16.msra.mxu1 %v4778_v52  ;;  %v3933_v52 = vld [vmem:[%s5195_s30 + $0x20] sm:$0xff] }
0x3526   :  { %4780 = vmatprep.subr.bf16.mxu1 %v5045_v16  ;;  %v4817_v42 = vpack.c.bf16 %v3934_v60, %v3933_v52  ;;  %p4993_p4 = pnand %p4992_p3, %p4986_p0 }
0x3529   :  { %4782 = vmatpush3.bf16.msra.mxu1 %v4781_v9  ;;  %v3935_v9 = vld [vmem:[%s5195_s30 + $0x30] sm:$0xff] }
0x352a   :  { %4783 = vmatprep.subr.bf16.mxu1 %v5045_v16  ;;  %v4820_v32 = vpack.c.bf16 %v3936_v4, %v3935_v9 }
0x352d   :  { %4785 = vmatpush3.bf16.msra.mxu1 %v4784_v11 }
0x352e   :  { %4786 = vmatprep.subr.bf16.mxu1 %v5045_v16 }
0x35f3   :  { %v3492_v37 = vpop.f32.mrb[46].mxu1 }
0x35f4   :  { %v3493_v6 = vadd.f32 %v4180_v5, %v3492_v37  ;;  %v4573_v1 = vpop.f32.mrb[47].mxu1  ;;  %v4192_v37 = vld [vmem:[%s5200_s4] ss:$0 sm:$0xff] }
0x35f6   :  { %v3496_v3 = vmax.f32 %v3493_v6, 0.0 }
0x35f8   :  { %4591 = vmatmul.mubr.msk.f32.vlgmr.msra.gmra.mrb[48].mxu1 %vm3512_vm0, %v3496_v3 }
0x35f9   :  { %4788 = vmatpush3.bf16.msra.mxu1 %v4787_v28  ;;  %4609 = vmatprep.mubr.msk.f32.mxu1 %vm5040_vm3, %v5039_v36 }
0x35fa   :  { %4789 = vmatprep.subr.bf16.mxu1 %v5045_v16 }
0x35fd   :  { %4791 = vmatpush3.bf16.msra.mxu1 %v4790_v59 }
0x35fe   :  { %4792 = vmatprep.subr.bf16.mxu1 %v5045_v16 }
0x3601   :  { %4794 = vmatpush3.bf16.msra.mxu1 %v4793_v51 }
0x3602   :  { %4795 = vmatprep.subr.bf16.mxu1 %v5045_v16 }
0x3605   :  { %4797 = vmatpush3.bf16.msra.mxu1 %v4796_v38 }
0x3606   :  { %4631 = vmatprep.subr.mxu1 %v5039_v36 }
0x36cb   :  { %v3582_v49 = vpop.f32.mrb[48].mxu1 }
0x36cc   :  { %v3583_v57 = vadd.f32 %v4182_v25, %v3582_v49  ;;  %v4592_v46 = vpop.f32.mrb[49].mxu1 }
0x36ce   :  { %v3586_v48 = vmax.f32 %v3583_v57, 0.0 }
0x36d0   :  { %v3594_v53 = vmul.f32 %v4184_v41, %v3586_v48 }
0x36d2   :  { %v3602_v56 = vadd.f32 %v4185_v26, %v3594_v53 }
0x36d4   :  { %4610 = vmatmul.mubr.msk.f32.vlgmr.msra.gmra.mrb[50].mxu1 %vm3512_vm0, %v3602_v56 }
0x36d5   :  { %4633 = vmatprep.mubr.msk.f32.mxu1 %vm5040_vm3, %v5039_v36 }
0x37a7   :  { %v3687_v47 = vpop.f32.mrb[50].mxu1 }
0x37a8   :  { %v3688_v8 = vadd.f32 %v4186_v55, %v3687_v47  ;;  %v4611_v54 = vpop.f32.mrb[51].mxu1 }
0x37aa   :  { %v3691_v40 = vmax.f32 %v3688_v8, 0.0 }
0x37ac   :  { %4629 = vmatmul.mubr.msk.f32.vlgmr.msra.gmra.mrb[50].mxu0 %vm3512_vm0, %v3691_v40 }
0x387f   :  { %v3776_v58 = vpop.f32.mrb[50].mxu0 }
0x3880   :  { %v3777_v15 = vadd.f32 %v4188_v14, %v3776_v58  ;;  %v4630_v17 = vpop.f32.mrb[51].mxu0 }
0x3882   :  { %4632 = vmatpush3.msra.mxu1 %v3777_v15 }
0x3883   :  { %4634 = vmatmul.mubr.msk.f32.vlgmr.msra.gmra.mrb[52].mxu1 %vm3063_vm13, %v3780_v18  ;;  %4636 = vmatprep.subr.mxu1 %v5039_v36 }
0x3884   :  { %4637 = vmatpush3.msra.mxu1 %v3777_v15  ;;  %4638 = vmatprep.mubr.msk.f32.mxu1 %vm5040_vm3, %v5039_v36 }
0x3885   :  { %4810 = vmatprep.subr.bf16.mxu1 %v5045_v16 }
0x3887   :  { %4639 = vmatmul.mubr.msk.f32.vlgmr.msra.gmra.mrb[54].mxu1 %vm3063_vm13, %v3854_v20 }
0x3888   :  { %4812 = vmatpush3.bf16.msra.mxu1 %v4811_v7  ;;  %4657 = vmatprep.mubr.msk.f32.mxu1 %vm5040_vm3, %v5039_v36 }
0x3889   :  { %4813 = vmatprep.subr.bf16.mxu1 %v5045_v16 }
0x388c   :  { %4815 = vmatpush3.bf16.msra.mxu1 %v4814_v23 }
0x388d   :  { %4816 = vmatprep.subr.bf16.mxu1 %v5045_v16 }
0x3890   :  { %4818 = vmatpush3.bf16.msra.mxu1 %v4817_v42 }
0x3891   :  { %4819 = vmatprep.subr.bf16.mxu1 %v5045_v16 }
0x3894   :  { %4821 = vmatpush3.bf16.msra.mxu1 %v4820_v32 }
0x3956   :  { %v3850_v11 = vpop.f32.mrb[52].mxu1 }
0x3957   :  { %v4635_v5 = vpop.f32.mrb[53].mxu1 }
0x395a   :  { %v3924_v27 = vpop.f32.mrb[54].mxu1 }
0x395b   :  { %v3928_v36 = vmul.f32 %v3924_v27, %v3850_v11  ;;  %v4640_v30 = vpop.f32.mrb[55].mxu1 }
0x395d   :  { %4658 = vmatmul.mubr.msk.f32.vlgmr.msra.gmra.mrb[56].mxu1 %vm3512_vm0, %v3928_v36 }
0x3a30   :  { %v4013_v6 = vpop.f32.mrb[56].mxu1 }
0x3a31   :  { %v4014_v1 = vadd.f32 %v4192_v37, %v4013_v6  ;;  %v4659_v28 = vpop.f32.mrb[57].mxu1 }
0x3a33   :  { %4017 = vst [vmem:[#allocation2] sm:$0x3f] %v4014_v1 }
0x3a34   :  { %4996 = shalt.err (!%p4993_p4)
}
0x3a35   :  { %s4997_s30 = scalar_lea.hbm %s5205_s12, 128 }
0x3a36   :  { %p4998_p5 = scmp.ne.s32.totalorder %s5205_s12, %s4997_s30  ;;  %p5001_p6 = scmp.lt.u32.totalorder %s4997_s30, %s5205_s12 }
0x3a38   :  { %p5003_p7 = pnand %p5001_p6, %p4998_p5 }
0x3a3a   :  { %5006 = shalt.err (!%p5003_p7)
}
0x3a3b   :  { %4027 = dma.vmem_to_hbm [thread:$0]  %s4025_s16, 128, %s5205_s12, [#allocation3]  }
0x3a3c   :  { %5007 = dma.done.wait [#allocation3], 128  }
0x3a3d   :  { %5008 = vsyncadd [#allocation3], 4294967168 }
0x3a3e   :  { %4031 = vsyncpa [#allocation3], 1 }

</bundles_post_ra>
